<compile_context>
chip_gen: v5e
topology: v5e:2x2
jax: 0.10.0
libtpu: 0.0.40
codegen_flags: <defaults>
</compile_context>

<pallas_src>
import functools

import jax
import jax.numpy as jnp
from jax.experimental import pallas as pl
from jax.experimental.pallas import tpu as pltpu

# ---------------- dimensions ----------------
B = 2                   # batch
C_IN, H, W = 4, 16, 16  # vision input channels / spatial
HW = H * W
S, D_TXT_IN = 8, 32     # text sequence length / token feature dim
D_TXT = 768             # text feature dim (fixed by module: Linear(768, 384))
D_PROJ = 384            # instruct_proj output dim
N_EXPERTS = 8           # moe_n_experts
TOP_K = 1               # moe_top_k
NUM_CLASSES = 16


# ---------------- fused forward kernel (one grid step per batch) ----------------
def fused_kernel(txt_ref, noise_ref, x_ref,
                 wt_ref, bt_ref, w1_ref, b1_ref, wm_ref, bm_ref,
                 wef_ref, bef_ref, wc_ref, bc_ref,
                 logits_ref, scores_ref, *, n_experts, c_in, top_k):
    f32 = jnp.float32

    # ---- synthetic text encoder: mean-pool + Linear + tanh -> (1, 768) ----
    pooled = jnp.mean(txt_ref[0], axis=0, keepdims=True)               # (1, D_txt_in)
    tf = jnp.tanh(jnp.dot(pooled.astype(jnp.bfloat16), wt_ref[...],
                          preferred_element_type=f32) + bt_ref[...])   # (1, 768)
    tf_bf = tf.astype(jnp.bfloat16)

    # ---- instruct_proj: Linear(768,384) (BN eval folded in wrapper) + exact GELU ----
    y = jnp.dot(tf_bf, w1_ref[...], preferred_element_type=f32) + b1_ref[...]
    proj = 0.5 * y * (1.0 + jax.lax.erf(y * 0.7071067811865476))       # (1, D_proj)

    # ---- moe_proj routing: Linear(768, E) + noise + softmax ----
    lg = jnp.dot(tf_bf, wm_ref[...], preferred_element_type=f32) + bm_ref[...]
    lg = lg + noise_ref[0]               # noise pre-scaled by 1/E^2 in wrapper
    mx = jnp.max(lg, axis=-1, keepdims=True)
    ex = jnp.exp(lg - mx)
    scores = ex / jnp.sum(ex, axis=-1, keepdims=True)                  # (1, E)
    scores = scores / float(top_k)
    scores_ref[0] = scores               # losses computed from this in the wrapper

    # one-hot top-1 mask, first-index tie-break like torch.topk; the hard-mask
    # gate of the selected expert is exactly 1.0 (dense_routing=False).
    ii = jax.lax.broadcasted_iota(jnp.int32, scores.shape, 1)
    smax = jnp.max(scores, axis=-1, keepdims=True)
    first = jnp.min(jnp.where(scores >= smax, ii, n_experts),
                    axis=-1, keepdims=True)                            # (1, 1) i32
    onehot = (ii == first).astype(f32)                                 # (1, E)
    # TODO(synk): generalize to moe_top_k > 1 / dense_routing=True (gate by scores)

    # ---- select the folded expert (conv1x1 already folded in): masked sum ----
    d_proj = b1_ref.shape[-1]
    ones_row = jnp.ones((1, d_proj), f32)
    g_row = onehot[:, 0:1] * ones_row                                  # (1, D_proj)
    w_sel = wef_ref[0] * g_row                                         # (C_in, D_proj)
    b_sel = bef_ref[0] * g_row                                         # (1, D_proj)
    for e in range(1, n_experts):
        g_row = onehot[:, e:e + 1] * ones_row
        w_sel = w_sel + wef_ref[e] * g_row
        b_sel = b_sel + bef_ref[e] * g_row

    # ---- vision head: folded (conv1x1 -> expert) as C_in VPU MACs, + text, ReLU ----
    x = x_ref[0]                                                       # (HW, C_in) f32
    acc = b_sel + proj                   # fold expert bias + text instruction add
    out = x[:, 0:1] * w_sel[0:1, :] + acc                              # (HW, D_proj)
    for c in range(1, c_in):
        out = out + x[:, c:c + 1] * w_sel[c:c + 1, :]
    fused = jnp.maximum(out, 0.0)

    # ---- classifier ----
    logits_ref[0] = (jnp.dot(fused.astype(jnp.bfloat16), wc_ref[...],
                             preferred_element_type=f32) + bc_ref[...])  # (HW, NC)


def _inv2(b):
    return (0, 0)


def _inv3(b):
    return (0, 0, 0)


def _per_batch3(b):
    return (b, 0, 0)


# ---------------- parameter init (deterministic, synthetic) ----------------
def init_params(key):
    ks = jax.random.split(key, 16)
    n = lambda k, shp, s=0.02: s * jax.random.normal(k, shp, jnp.float32)
    return {
        # synthetic text encoder
        "wt": n(ks[0], (D_TXT_IN, D_TXT), 0.1),
        "bt": n(ks[1], (D_TXT,), 0.1),
        # instruct_proj: Linear(768, 384) + BatchNorm1d(384) + GELU
        "w1": n(ks[2], (D_TXT, D_PROJ)),
        "b1": n(ks[3], (D_PROJ,)),
        "bn_gamma": 1.0 + n(ks[4], (D_PROJ,), 0.05),
        "bn_beta": n(ks[5], (D_PROJ,), 0.05),
        "bn_rmean": n(ks[6], (D_PROJ,), 0.05),
        "bn_rvar": 1.0 + jnp.abs(n(ks[7], (D_PROJ,), 0.05)),
        # moe_proj: Linear(768, n_experts)
        "wm": n(ks[8], (D_TXT, N_EXPERTS), 0.05),
        "bm": n(ks[9], (N_EXPERTS,), 0.05),
        # synthetic vision model: 1x1 conv, per-expert linear, classifier
        "wv": n(ks[10], (D_PROJ, C_IN), 0.1),
        "bv": n(ks[11], (D_PROJ,), 0.1),
        "we": n(ks[12], (N_EXPERTS, D_PROJ, D_PROJ)),
        "be": n(ks[13], (N_EXPERTS, D_PROJ), 0.02),
        "wc": n(ks[14], (NUM_CLASSES, D_PROJ), 0.05),
        "bc": n(ks[15], (NUM_CLASSES,), 0.05),
    }


def prepare_params(p):
    """One-time (outside-kernel) algebraic folds + layout/dtype prep."""
    # BatchNorm1d (eval mode) folded into the instruct_proj Linear — exact.
    scale = p["bn_gamma"] * jax.lax.rsqrt(p["bn_rvar"] + 1e-5)
    w1_eff = p["w1"] * scale[None, :]
    b1_eff = (p["b1"] - p["bn_rmean"]) * scale + p["bn_beta"]
    # 1x1 conv folded into every expert (exact: both are linear, ReLU is later):
    #   W'_e = W_e @ W_v  (stored transposed as (E, C_in, D_proj)),
    #   b'_e = W_e @ b_v + b_e.
    we_fold = jnp.einsum("eij,jc->eci", p["we"], p["wv"])              # (E, C_in, D_proj)
    be_fold = (jnp.einsum("eij,j->ei", p["we"], p["bv"]) +
               p["be"]).reshape(N_EXPERTS, 1, D_PROJ)                  # (E, 1, D_proj)
    return {
        "wt": p["wt"].astype(jnp.bfloat16),
        "bt": p["bt"].reshape(1, D_TXT),
        "w1": w1_eff.astype(jnp.bfloat16),
        "b1": b1_eff.reshape(1, D_PROJ),
        "wm": p["wm"].astype(jnp.bfloat16),
        "bm": p["bm"].reshape(1, N_EXPERTS),
        "we_fold": we_fold,                      # f32: feeds VPU MACs (v5e-safe)
        "be_fold": be_fold,
        "wc": p["wc"].T.astype(jnp.bfloat16),    # (D_proj, NC), MXU RHS
        "bc": p["bc"].reshape(1, NUM_CLASSES),
    }


# ---------------- forward_instruct_moe_t2v ----------------
def forward_instruct_moe_t2v(params, vision_input_nchw, text_input, noise):
    # NCHW -> (B, HW, C_in): tiny XLA transpose; puts D_proj on lanes in-kernel.
    x_t = vision_input_nchw.reshape(B, C_IN, HW).transpose(0, 2, 1)
    noise3 = noise.reshape(B, 1, N_EXPERTS)

    kern = functools.partial(fused_kernel, n_experts=N_EXPERTS, c_in=C_IN,
                             top_k=TOP_K)
    logits_flat, scores3 = pl.pallas_call(
        kern,
        out_shape=(
            jax.ShapeDtypeStruct((B, HW, NUM_CLASSES), jnp.float32),
            jax.ShapeDtypeStruct((B, 1, N_EXPERTS), jnp.float32),
        ),
        grid=(B,),
        in_specs=[
            # per-batch blocks
            pl.BlockSpec((1, S, D_TXT_IN), _per_batch3),
            pl.BlockSpec((1, 1, N_EXPERTS), _per_batch3),
            pl.BlockSpec((1, HW, C_IN), _per_batch3),
            # grid-invariant weights (DMA'd once, stay resident)
            pl.BlockSpec((D_TXT_IN, D_TXT), _inv2),
            pl.BlockSpec((1, D_TXT), _inv2),
            pl.BlockSpec((D_TXT, D_PROJ), _inv2),
            pl.BlockSpec((1, D_PROJ), _inv2),
            pl.BlockSpec((D_TXT, N_EXPERTS), _inv2),
            pl.BlockSpec((1, N_EXPERTS), _inv2),
            pl.BlockSpec((N_EXPERTS, C_IN, D_PROJ), _inv3),
            pl.BlockSpec((N_EXPERTS, 1, D_PROJ), _inv3),
            pl.BlockSpec((D_PROJ, NUM_CLASSES), _inv2),
            pl.BlockSpec((1, NUM_CLASSES), _inv2),
        ],
        out_specs=(
            pl.BlockSpec((1, HW, NUM_CLASSES), _per_batch3),
            pl.BlockSpec((1, 1, N_EXPERTS), _per_batch3),
        ),
        compiler_params=pltpu.CompilerParams(
            dimension_semantics=("parallel",),   # B=2 -> one batch per TC on v7x
            vmem_limit_bytes=16 << 20,           # footprint ~2 MiB; plenty of headroom
        ),
    )(text_input, noise3, x_t,
      params["wt"], params["bt"], params["w1"], params["b1"],
      params["wm"], params["bm"], params["we_fold"], params["be_fold"],
      params["wc"], params["bc"])

    moe_scores = scores3.reshape(B, N_EXPERTS)

    # Batch-reduced losses on the tiny (B, E) scores — done in XLA so the
    # Pallas kernel stays per-batch independent (parallel grid on v7x).
    sum_scores = jnp.sum(moe_scores, axis=0)
    mean_s = jnp.mean(sum_scores)
    std_s = jnp.std(sum_scores, ddof=1)          # torch.std default (unbiased)
    importance_loss = (std_s / mean_s) ** 2
    entropy_loss = jnp.mean(-jnp.sum(moe_scores * jnp.log(moe_scores + 1e-8),
                                     axis=1))

    extra_out = {
        "moe_scores": moe_scores,
        "importance_loss": importance_loss,
        "entropy_loss": entropy_loss,
    }
    logits = logits_flat.reshape(B, H, W, NUM_CLASSES)   # NHWC, no transpose needed
    return logits, extra_out


if __name__ == "__main__":
    key = jax.random.PRNGKey(0)
    k_param, k_vis, k_txt, k_noise = jax.random.split(key, 4)

    params = prepare_params(init_params(k_param))
    vision_input = jax.random.normal(k_vis, (B, C_IN, H, W), jnp.float32)  # NCHW like PyTorch
    text_input = jax.random.normal(k_txt, (B, S, D_TXT_IN), jnp.float32)
    # noise = randn(moe_logits.shape) / n_experts**2  (deterministic here)
    noise = jax.random.normal(k_noise, (B, N_EXPERTS), jnp.float32) / (N_EXPERTS ** 2)

    fwd = jax.jit(forward_instruct_moe_t2v)
    logits, extra = fwd(params, vision_input, text_input, noise)
    jax.block_until_ready((logits, extra))

    assert logits.shape == (B, H, W, NUM_CLASSES)
    assert extra["moe_scores"].shape == (B, N_EXPERTS)
    assert jnp.isfinite(logits).all()
    assert jnp.isfinite(extra["importance_loss"])
    assert jnp.isfinite(extra["entropy_loss"])
    print("KERNEL_OK")
</pallas_src>

<mosaic_0001>
module attributes {stable_mosaic.version = 11 : i64} {
  func.func @fused_kernel(%arg0: i32, %arg1: memref<1x8x32xf32, #tpu.memory_space<vmem>>, %arg2: memref<1x1x8xf32, #tpu.memory_space<vmem>>, %arg3: memref<1x256x4xf32, #tpu.memory_space<vmem>>, %arg4: memref<32x768xbf16, #tpu.memory_space<vmem>>, %arg5: memref<1x768xf32, #tpu.memory_space<vmem>>, %arg6: memref<768x384xbf16, #tpu.memory_space<vmem>>, %arg7: memref<1x384xf32, #tpu.memory_space<vmem>>, %arg8: memref<768x8xbf16, #tpu.memory_space<vmem>>, %arg9: memref<1x8xf32, #tpu.memory_space<vmem>>, %arg10: memref<8x4x384xf32, #tpu.memory_space<vmem>>, %arg11: memref<8x1x384xf32, #tpu.memory_space<vmem>>, %arg12: memref<384x16xbf16, #tpu.memory_space<vmem>>, %arg13: memref<1x16xf32, #tpu.memory_space<vmem>>, %arg14: memref<1x256x16xf32, #tpu.memory_space<vmem>>, %arg15: memref<1x1x8xf32, #tpu.memory_space<vmem>>) attributes {dimension_semantics = [#tpu.dimension_semantics<parallel>], iteration_bounds = array<i64: 2>, scalar_prefetch = 0 : i64, scratch_operands = 0 : i64, tpu.core_type = #tpu.core_type<tc>, window_params = [{transform_indices = @transform_0, window_bounds = array<i64: 1, 8, 32>}, {transform_indices = @transform_1, window_bounds = array<i64: 1, 1, 8>}, {transform_indices = @transform_2, window_bounds = array<i64: 1, 256, 4>}, {pipeline_mode = #tpu.pipeline_mode<synchronous>, transform_indices = @transform_3, window_bounds = array<i64: 32, 768>}, {pipeline_mode = #tpu.pipeline_mode<synchronous>, transform_indices = @transform_4, window_bounds = array<i64: 1, 768>}, {pipeline_mode = #tpu.pipeline_mode<synchronous>, transform_indices = @transform_5, window_bounds = array<i64: 768, 384>}, {pipeline_mode = #tpu.pipeline_mode<synchronous>, transform_indices = @transform_6, window_bounds = array<i64: 1, 384>}, {pipeline_mode = #tpu.pipeline_mode<synchronous>, transform_indices = @transform_7, window_bounds = array<i64: 768, 8>}, {pipeline_mode = #tpu.pipeline_mode<synchronous>, transform_indices = @transform_8, window_bounds = array<i64: 1, 8>}, {pipeline_mode = #tpu.pipeline_mode<synchronous>, transform_indices = @transform_9, window_bounds = array<i64: 8, 4, 384>}, {pipeline_mode = #tpu.pipeline_mode<synchronous>, transform_indices = @transform_10, window_bounds = array<i64: 8, 1, 384>}, {pipeline_mode = #tpu.pipeline_mode<synchronous>, transform_indices = @transform_11, window_bounds = array<i64: 384, 16>}, {pipeline_mode = #tpu.pipeline_mode<synchronous>, transform_indices = @transform_12, window_bounds = array<i64: 1, 16>}, {transform_indices = @transform_13, window_bounds = array<i64: 1, 256, 16>}, {transform_indices = @transform_14, window_bounds = array<i64: 1, 1, 8>}]} {
    %c0 = arith.constant 0 : index
    %c0_0 = arith.constant 0 : index
    %c0_1 = arith.constant 0 : index
    %0 = vector.load %arg1[%c0, %c0_0, %c0_1] : memref<1x8x32xf32, #tpu.memory_space<vmem>>, vector<1x8x32xf32>
    %1 = vector.shape_cast %0 : vector<1x8x32xf32> to vector<8x32xf32>
    %cst = arith.constant dense<0.000000e+00> : vector<32xf32>
    %2 = vector.multi_reduction <add>, %1, %cst [0] : vector<8x32xf32> to vector<32xf32>
    %3 = vector.shape_cast %2 : vector<32xf32> to vector<1x32xf32>
    %cst_2 = arith.constant 8.000000e+00 : f32
    %4 = vector.broadcast %cst_2 : f32 to vector<1x32xf32>
    %5 = arith.divf %3, %4 : vector<1x32xf32>
    %6 = arith.truncf %5 : vector<1x32xf32> to vector<1x32xbf16>
    %c0_3 = arith.constant 0 : index
    %c0_4 = arith.constant 0 : index
    %7 = vector.load %arg4[%c0_3, %c0_4] : memref<32x768xbf16, #tpu.memory_space<vmem>>, vector<32x768xbf16>
    %cst_5 = arith.constant dense<0.000000e+00> : vector<1x768xf32>
    %8 = tpu.matmul %6, %7, %cst_5 {dimension_numbers = #tpu.dot_dimension_numbers<[1], [0], [0], [1], [0, 0, 1, 1], [], []>} : vector<1x32xbf16>, vector<32x768xbf16>, vector<1x768xf32> -> vector<1x768xf32>
    %c0_6 = arith.constant 0 : index
    %c0_7 = arith.constant 0 : index
    %9 = vector.load %arg5[%c0_6, %c0_7] : memref<1x768xf32, #tpu.memory_space<vmem>>, vector<1x768xf32>
    %10 = arith.addf %8, %9 : vector<1x768xf32>
    %11 = math.tanh %10 : vector<1x768xf32>
    %12 = arith.truncf %11 : vector<1x768xf32> to vector<1x768xbf16>
    %c0_8 = arith.constant 0 : index
    %c0_9 = arith.constant 0 : index
    %13 = vector.load %arg6[%c0_8, %c0_9] : memref<768x384xbf16, #tpu.memory_space<vmem>>, vector<768x384xbf16>
    %cst_10 = arith.constant dense<0.000000e+00> : vector<1x384xf32>
    %14 = tpu.matmul %12, %13, %cst_10 {dimension_numbers = #tpu.dot_dimension_numbers<[1], [0], [0], [1], [0, 0, 1, 1], [], []>} : vector<1x768xbf16>, vector<768x384xbf16>, vector<1x384xf32> -> vector<1x384xf32>
    %c0_11 = arith.constant 0 : index
    %c0_12 = arith.constant 0 : index
    %15 = vector.load %arg7[%c0_11, %c0_12] : memref<1x384xf32, #tpu.memory_space<vmem>>, vector<1x384xf32>
    %16 = arith.addf %14, %15 : vector<1x384xf32>
    %cst_13 = arith.constant 5.000000e-01 : f32
    %17 = vector.broadcast %cst_13 : f32 to vector<1x384xf32>
    %18 = arith.mulf %17, %16 : vector<1x384xf32>
    %cst_14 = arith.constant 0.707106769 : f32
    %19 = vector.broadcast %cst_14 : f32 to vector<1x384xf32>
    %20 = arith.mulf %16, %19 : vector<1x384xf32>
    %21 = math.erf %20 : vector<1x384xf32>
    %cst_15 = arith.constant 1.000000e+00 : f32
    %22 = vector.broadcast %cst_15 : f32 to vector<1x384xf32>
    %23 = arith.addf %22, %21 : vector<1x384xf32>
    %24 = arith.mulf %18, %23 : vector<1x384xf32>
    %c0_16 = arith.constant 0 : index
    %c0_17 = arith.constant 0 : index
    %25 = vector.load %arg8[%c0_16, %c0_17] : memref<768x8xbf16, #tpu.memory_space<vmem>>, vector<768x8xbf16>
    %cst_18 = arith.constant dense<0.000000e+00> : vector<1x8xf32>
    %26 = tpu.matmul %12, %25, %cst_18 {dimension_numbers = #tpu.dot_dimension_numbers<[1], [0], [0], [1], [0, 0, 1, 1], [], []>} : vector<1x768xbf16>, vector<768x8xbf16>, vector<1x8xf32> -> vector<1x8xf32>
    %c0_19 = arith.constant 0 : index
    %c0_20 = arith.constant 0 : index
    %27 = vector.load %arg9[%c0_19, %c0_20] : memref<1x8xf32, #tpu.memory_space<vmem>>, vector<1x8xf32>
    %28 = arith.addf %26, %27 : vector<1x8xf32>
    %c0_21 = arith.constant 0 : index
    %c0_22 = arith.constant 0 : index
    %c0_23 = arith.constant 0 : index
    %29 = vector.load %arg2[%c0_21, %c0_22, %c0_23] : memref<1x1x8xf32, #tpu.memory_space<vmem>>, vector<1x1x8xf32>
    %30 = vector.shape_cast %29 : vector<1x1x8xf32> to vector<1x8xf32>
    %31 = arith.addf %28, %30 : vector<1x8xf32>
    %cst_24 = arith.constant dense<0xFF800000> : vector<1xf32>
    %32 = vector.multi_reduction <maximumf>, %31, %cst_24 [1] : vector<1x8xf32> to vector<1xf32>
    %33 = vector.shape_cast %32 : vector<1xf32> to vector<1x1xf32>
    %34 = vector.broadcast %33 : vector<1x1xf32> to vector<1x8xf32>
    %35 = arith.subf %31, %34 : vector<1x8xf32>
    %36 = math.exp %35 : vector<1x8xf32>
    %cst_25 = arith.constant dense<0.000000e+00> : vector<1xf32>
    %37 = vector.multi_reduction <add>, %36, %cst_25 [1] : vector<1x8xf32> to vector<1xf32>
    %38 = vector.shape_cast %37 : vector<1xf32> to vector<1x1xf32>
    %39 = vector.broadcast %38 : vector<1x1xf32> to vector<1x8xf32>
    %40 = arith.divf %36, %39 : vector<1x8xf32>
    %cst_26 = arith.constant 1.000000e+00 : f32
    %41 = vector.broadcast %cst_26 : f32 to vector<1x8xf32>
    %42 = arith.divf %40, %41 : vector<1x8xf32>
    %c0_27 = arith.constant 0 : index
    %c0_28 = arith.constant 0 : index
    %c0_29 = arith.constant 0 : index
    %43 = vector.load %arg15[%c0_27, %c0_28, %c0_29] : memref<1x1x8xf32, #tpu.memory_space<vmem>>, vector<1x1x8xf32>
    %44 = vector.shape_cast %43 : vector<1x1x8xf32> to vector<1x8xf32>
    %45 = vector.shape_cast %42 : vector<1x8xf32> to vector<1x1x8xf32>
    tpu.vector_store %arg15[%c0_27, %c0_28, %c0_29], %45 {strides = array<i32>} : memref<1x1x8xf32, #tpu.memory_space<vmem>>, vector<1x1x8xf32>,
    %46 = tpu.iota {dimensions = array<i32: 1>} : vector<1x8xi32>
    %cst_30 = arith.constant dense<0xFF800000> : vector<1xf32>
    %47 = vector.multi_reduction <maximumf>, %42, %cst_30 [1] : vector<1x8xf32> to vector<1xf32>
    %48 = vector.shape_cast %47 : vector<1xf32> to vector<1x1xf32>
    %49 = vector.broadcast %48 : vector<1x1xf32> to vector<1x8xf32>
    %50 = arith.cmpf oge, %42, %49 : vector<1x8xf32>
    %c8_i32 = arith.constant 8 : i32
    %51 = vector.broadcast %c8_i32 : i32 to vector<1x8xi32>
    %52 = arith.select %50, %46, %51 : vector<1x8xi1>, vector<1x8xi32>
    %cst_31 = arith.constant dense<2147483647> : vector<1xi32>
    %53 = vector.multi_reduction <minsi>, %52, %cst_31 [1] : vector<1x8xi32> to vector<1xi32>
    %54 = vector.shape_cast %53 : vector<1xi32> to vector<1x1xi32>
    %55 = vector.broadcast %54 : vector<1x1xi32> to vector<1x8xi32>
    %56 = arith.cmpi eq, %46, %55 : vector<1x8xi32>
    %57 = arith.extui %56 : vector<1x8xi1> to vector<1x8xi32>
    %58 = arith.sitofp %57 : vector<1x8xi32> to vector<1x8xf32>
    %cst_32 = arith.constant 1.000000e+00 : f32
    %59 = vector.broadcast %cst_32 : f32 to vector<1x384xf32>
    %60 = vector.extract_strided_slice %58 {offsets = [0, 0], sizes = [1, 1], strides = [1, 1]} : vector<1x8xf32> to vector<1x1xf32>
    %61 = vector.broadcast %60 : vector<1x1xf32> to vector<1x384xf32>
    %62 = arith.mulf %61, %59 : vector<1x384xf32>
    %c0_33 = arith.constant 0 : index
    %c0_34 = arith.constant 0 : index
    %c0_35 = arith.constant 0 : index
    %63 = vector.load %arg10[%c0_33, %c0_34, %c0_35] : memref<8x4x384xf32, #tpu.memory_space<vmem>>, vector<1x4x384xf32>
    %64 = vector.shape_cast %63 : vector<1x4x384xf32> to vector<4x384xf32>
    %65 = vector.broadcast %62 : vector<1x384xf32> to vector<4x384xf32>
    %66 = arith.mulf %64, %65 : vector<4x384xf32>
    %c0_36 = arith.constant 0 : index
    %c0_37 = arith.constant 0 : index
    %c0_38 = arith.constant 0 : index
    %67 = vector.load %arg11[%c0_36, %c0_37, %c0_38] : memref<8x1x384xf32, #tpu.memory_space<vmem>>, vector<1x1x384xf32>
    %68 = vector.shape_cast %67 : vector<1x1x384xf32> to vector<1x384xf32>
    %69 = arith.mulf %68, %62 : vector<1x384xf32>
    %70 = vector.extract_strided_slice %58 {offsets = [0, 1], sizes = [1, 1], strides = [1, 1]} : vector<1x8xf32> to vector<1x1xf32>
    %71 = vector.broadcast %70 : vector<1x1xf32> to vector<1x384xf32>
    %72 = arith.mulf %71, %59 : vector<1x384xf32>
    %c1 = arith.constant 1 : index
    %c0_39 = arith.constant 0 : index
    %c0_40 = arith.constant 0 : index
    %73 = vector.load %arg10[%c1, %c0_39, %c0_40] : memref<8x4x384xf32, #tpu.memory_space<vmem>>, vector<1x4x384xf32>
    %74 = vector.shape_cast %73 : vector<1x4x384xf32> to vector<4x384xf32>
    %75 = vector.broadcast %72 : vector<1x384xf32> to vector<4x384xf32>
    %76 = arith.mulf %74, %75 : vector<4x384xf32>
    %77 = arith.addf %66, %76 : vector<4x384xf32>
    %c1_41 = arith.constant 1 : index
    %c0_42 = arith.constant 0 : index
    %c0_43 = arith.constant 0 : index
    %78 = vector.load %arg11[%c1_41, %c0_42, %c0_43] : memref<8x1x384xf32, #tpu.memory_space<vmem>>, vector<1x1x384xf32>
    %79 = vector.shape_cast %78 : vector<1x1x384xf32> to vector<1x384xf32>
    %80 = arith.mulf %79, %72 : vector<1x384xf32>
    %81 = arith.addf %69, %80 : vector<1x384xf32>
    %82 = vector.extract_strided_slice %58 {offsets = [0, 2], sizes = [1, 1], strides = [1, 1]} : vector<1x8xf32> to vector<1x1xf32>
    %83 = vector.broadcast %82 : vector<1x1xf32> to vector<1x384xf32>
    %84 = arith.mulf %83, %59 : vector<1x384xf32>
    %c2 = arith.constant 2 : index
    %c0_44 = arith.constant 0 : index
    %c0_45 = arith.constant 0 : index
    %85 = vector.load %arg10[%c2, %c0_44, %c0_45] : memref<8x4x384xf32, #tpu.memory_space<vmem>>, vector<1x4x384xf32>
    %86 = vector.shape_cast %85 : vector<1x4x384xf32> to vector<4x384xf32>
    %87 = vector.broadcast %84 : vector<1x384xf32> to vector<4x384xf32>
    %88 = arith.mulf %86, %87 : vector<4x384xf32>
    %89 = arith.addf %77, %88 : vector<4x384xf32>
    %c2_46 = arith.constant 2 : index
    %c0_47 = arith.constant 0 : index
    %c0_48 = arith.constant 0 : index
    %90 = vector.load %arg11[%c2_46, %c0_47, %c0_48] : memref<8x1x384xf32, #tpu.memory_space<vmem>>, vector<1x1x384xf32>
    %91 = vector.shape_cast %90 : vector<1x1x384xf32> to vector<1x384xf32>
    %92 = arith.mulf %91, %84 : vector<1x384xf32>
    %93 = arith.addf %81, %92 : vector<1x384xf32>
    %94 = vector.extract_strided_slice %58 {offsets = [0, 3], sizes = [1, 1], strides = [1, 1]} : vector<1x8xf32> to vector<1x1xf32>
    %95 = vector.broadcast %94 : vector<1x1xf32> to vector<1x384xf32>
    %96 = arith.mulf %95, %59 : vector<1x384xf32>
    %c3 = arith.constant 3 : index
    %c0_49 = arith.constant 0 : index
    %c0_50 = arith.constant 0 : index
    %97 = vector.load %arg10[%c3, %c0_49, %c0_50] : memref<8x4x384xf32, #tpu.memory_space<vmem>>, vector<1x4x384xf32>
    %98 = vector.shape_cast %97 : vector<1x4x384xf32> to vector<4x384xf32>
    %99 = vector.broadcast %96 : vector<1x384xf32> to vector<4x384xf32>
    %100 = arith.mulf %98, %99 : vector<4x384xf32>
    %101 = arith.addf %89, %100 : vector<4x384xf32>
    %c3_51 = arith.constant 3 : index
    %c0_52 = arith.constant 0 : index
    %c0_53 = arith.constant 0 : index
    %102 = vector.load %arg11[%c3_51, %c0_52, %c0_53] : memref<8x1x384xf32, #tpu.memory_space<vmem>>, vector<1x1x384xf32>
    %103 = vector.shape_cast %102 : vector<1x1x384xf32> to vector<1x384xf32>
    %104 = arith.mulf %103, %96 : vector<1x384xf32>
    %105 = arith.addf %93, %104 : vector<1x384xf32>
    %106 = vector.extract_strided_slice %58 {offsets = [0, 4], sizes = [1, 1], strides = [1, 1]} : vector<1x8xf32> to vector<1x1xf32>
    %107 = vector.broadcast %106 : vector<1x1xf32> to vector<1x384xf32>
    %108 = arith.mulf %107, %59 : vector<1x384xf32>
    %c4 = arith.constant 4 : index
    %c0_54 = arith.constant 0 : index
    %c0_55 = arith.constant 0 : index
    %109 = vector.load %arg10[%c4, %c0_54, %c0_55] : memref<8x4x384xf32, #tpu.memory_space<vmem>>, vector<1x4x384xf32>
    %110 = vector.shape_cast %109 : vector<1x4x384xf32> to vector<4x384xf32>
    %111 = vector.broadcast %108 : vector<1x384xf32> to vector<4x384xf32>
    %112 = arith.mulf %110, %111 : vector<4x384xf32>
    %113 = arith.addf %101, %112 : vector<4x384xf32>
    %c4_56 = arith.constant 4 : index
    %c0_57 = arith.constant 0 : index
    %c0_58 = arith.constant 0 : index
    %114 = vector.load %arg11[%c4_56, %c0_57, %c0_58] : memref<8x1x384xf32, #tpu.memory_space<vmem>>, vector<1x1x384xf32>
    %115 = vector.shape_cast %114 : vector<1x1x384xf32> to vector<1x384xf32>
    %116 = arith.mulf %115, %108 : vector<1x384xf32>
    %117 = arith.addf %105, %116 : vector<1x384xf32>
    %118 = vector.extract_strided_slice %58 {offsets = [0, 5], sizes = [1, 1], strides = [1, 1]} : vector<1x8xf32> to vector<1x1xf32>
    %119 = vector.broadcast %118 : vector<1x1xf32> to vector<1x384xf32>
    %120 = arith.mulf %119, %59 : vector<1x384xf32>
    %c5 = arith.constant 5 : index
    %c0_59 = arith.constant 0 : index
    %c0_60 = arith.constant 0 : index
    %121 = vector.load %arg10[%c5, %c0_59, %c0_60] : memref<8x4x384xf32, #tpu.memory_space<vmem>>, vector<1x4x384xf32>
    %122 = vector.shape_cast %121 : vector<1x4x384xf32> to vector<4x384xf32>
    %123 = vector.broadcast %120 : vector<1x384xf32> to vector<4x384xf32>
    %124 = arith.mulf %122, %123 : vector<4x384xf32>
    %125 = arith.addf %113, %124 : vector<4x384xf32>
    %c5_61 = arith.constant 5 : index
    %c0_62 = arith.constant 0 : index
    %c0_63 = arith.constant 0 : index
    %126 = vector.load %arg11[%c5_61, %c0_62, %c0_63] : memref<8x1x384xf32, #tpu.memory_space<vmem>>, vector<1x1x384xf32>
    %127 = vector.shape_cast %126 : vector<1x1x384xf32> to vector<1x384xf32>
    %128 = arith.mulf %127, %120 : vector<1x384xf32>
    %129 = arith.addf %117, %128 : vector<1x384xf32>
    %130 = vector.extract_strided_slice %58 {offsets = [0, 6], sizes = [1, 1], strides = [1, 1]} : vector<1x8xf32> to vector<1x1xf32>
    %131 = vector.broadcast %130 : vector<1x1xf32> to vector<1x384xf32>
    %132 = arith.mulf %131, %59 : vector<1x384xf32>
    %c6 = arith.constant 6 : index
    %c0_64 = arith.constant 0 : index
    %c0_65 = arith.constant 0 : index
    %133 = vector.load %arg10[%c6, %c0_64, %c0_65] : memref<8x4x384xf32, #tpu.memory_space<vmem>>, vector<1x4x384xf32>
    %134 = vector.shape_cast %133 : vector<1x4x384xf32> to vector<4x384xf32>
    %135 = vector.broadcast %132 : vector<1x384xf32> to vector<4x384xf32>
    %136 = arith.mulf %134, %135 : vector<4x384xf32>
    %137 = arith.addf %125, %136 : vector<4x384xf32>
    %c6_66 = arith.constant 6 : index
    %c0_67 = arith.constant 0 : index
    %c0_68 = arith.constant 0 : index
    %138 = vector.load %arg11[%c6_66, %c0_67, %c0_68] : memref<8x1x384xf32, #tpu.memory_space<vmem>>, vector<1x1x384xf32>
    %139 = vector.shape_cast %138 : vector<1x1x384xf32> to vector<1x384xf32>
    %140 = arith.mulf %139, %132 : vector<1x384xf32>
    %141 = arith.addf %129, %140 : vector<1x384xf32>
    %142 = vector.extract_strided_slice %58 {offsets = [0, 7], sizes = [1, 1], strides = [1, 1]} : vector<1x8xf32> to vector<1x1xf32>
    %143 = vector.broadcast %142 : vector<1x1xf32> to vector<1x384xf32>
    %144 = arith.mulf %143, %59 : vector<1x384xf32>
    %c7 = arith.constant 7 : index
    %c0_69 = arith.constant 0 : index
    %c0_70 = arith.constant 0 : index
    %145 = vector.load %arg10[%c7, %c0_69, %c0_70] : memref<8x4x384xf32, #tpu.memory_space<vmem>>, vector<1x4x384xf32>
    %146 = vector.shape_cast %145 : vector<1x4x384xf32> to vector<4x384xf32>
    %147 = vector.broadcast %144 : vector<1x384xf32> to vector<4x384xf32>
    %148 = arith.mulf %146, %147 : vector<4x384xf32>
    %149 = arith.addf %137, %148 : vector<4x384xf32>
    %c7_71 = arith.constant 7 : index
    %c0_72 = arith.constant 0 : index
    %c0_73 = arith.constant 0 : index
    %150 = vector.load %arg11[%c7_71, %c0_72, %c0_73] : memref<8x1x384xf32, #tpu.memory_space<vmem>>, vector<1x1x384xf32>
    %151 = vector.shape_cast %150 : vector<1x1x384xf32> to vector<1x384xf32>
    %152 = arith.mulf %151, %144 : vector<1x384xf32>
    %153 = arith.addf %141, %152 : vector<1x384xf32>
    %c0_74 = arith.constant 0 : index
    %c0_75 = arith.constant 0 : index
    %c0_76 = arith.constant 0 : index
    %154 = vector.load %arg3[%c0_74, %c0_75, %c0_76] : memref<1x256x4xf32, #tpu.memory_space<vmem>>, vector<1x256x4xf32>
    %155 = vector.shape_cast %154 : vector<1x256x4xf32> to vector<256x4xf32>
    %156 = arith.addf %153, %24 : vector<1x384xf32>
    %157 = vector.extract_strided_slice %155 {offsets = [0, 0], sizes = [256, 1], strides = [1, 1]} : vector<256x4xf32> to vector<256x1xf32>
    %158 = vector.extract_strided_slice %149 {offsets = [0, 0], sizes = [1, 384], strides = [1, 1]} : vector<4x384xf32> to vector<1x384xf32>
    %159 = vector.broadcast %157 : vector<256x1xf32> to vector<256x384xf32>
    %160 = vector.broadcast %158 : vector<1x384xf32> to vector<256x384xf32>
    %161 = arith.mulf %159, %160 : vector<256x384xf32>
    %162 = vector.broadcast %156 : vector<1x384xf32> to vector<256x384xf32>
    %163 = arith.addf %161, %162 : vector<256x384xf32>
    %164 = vector.extract_strided_slice %155 {offsets = [0, 1], sizes = [256, 1], strides = [1, 1]} : vector<256x4xf32> to vector<256x1xf32>
    %165 = vector.extract_strided_slice %149 {offsets = [1, 0], sizes = [1, 384], strides = [1, 1]} : vector<4x384xf32> to vector<1x384xf32>
    %166 = vector.broadcast %164 : vector<256x1xf32> to vector<256x384xf32>
    %167 = vector.broadcast %165 : vector<1x384xf32> to vector<256x384xf32>
    %168 = arith.mulf %166, %167 : vector<256x384xf32>
    %169 = arith.addf %163, %168 : vector<256x384xf32>
    %170 = vector.extract_strided_slice %155 {offsets = [0, 2], sizes = [256, 1], strides = [1, 1]} : vector<256x4xf32> to vector<256x1xf32>
    %171 = vector.extract_strided_slice %149 {offsets = [2, 0], sizes = [1, 384], strides = [1, 1]} : vector<4x384xf32> to vector<1x384xf32>
    %172 = vector.broadcast %170 : vector<256x1xf32> to vector<256x384xf32>
    %173 = vector.broadcast %171 : vector<1x384xf32> to vector<256x384xf32>
    %174 = arith.mulf %172, %173 : vector<256x384xf32>
    %175 = arith.addf %169, %174 : vector<256x384xf32>
    %176 = vector.extract_strided_slice %155 {offsets = [0, 3], sizes = [256, 1], strides = [1, 1]} : vector<256x4xf32> to vector<256x1xf32>
    %177 = vector.extract_strided_slice %149 {offsets = [3, 0], sizes = [1, 384], strides = [1, 1]} : vector<4x384xf32> to vector<1x384xf32>
    %178 = vector.broadcast %176 : vector<256x1xf32> to vector<256x384xf32>
    %179 = vector.broadcast %177 : vector<1x384xf32> to vector<256x384xf32>
    %180 = arith.mulf %178, %179 : vector<256x384xf32>
    %181 = arith.addf %175, %180 : vector<256x384xf32>
    %cst_77 = arith.constant 0.000000e+00 : f32
    %182 = vector.broadcast %cst_77 : f32 to vector<256x384xf32>
    %183 = arith.maximumf %181, %182 : vector<256x384xf32>
    %184 = arith.truncf %183 : vector<256x384xf32> to vector<256x384xbf16>
    %c0_78 = arith.constant 0 : index
    %c0_79 = arith.constant 0 : index
    %185 = vector.load %arg12[%c0_78, %c0_79] : memref<384x16xbf16, #tpu.memory_space<vmem>>, vector<384x16xbf16>
    %cst_80 = arith.constant dense<0.000000e+00> : vector<256x16xf32>
    %186 = tpu.matmul %184, %185, %cst_80 {dimension_numbers = #tpu.dot_dimension_numbers<[1], [0], [0], [1], [0, 0, 1, 1], [], []>} : vector<256x384xbf16>, vector<384x16xbf16>, vector<256x16xf32> -> vector<256x16xf32>
    %c0_81 = arith.constant 0 : index
    %c0_82 = arith.constant 0 : index
    %187 = vector.load %arg13[%c0_81, %c0_82] : memref<1x16xf32, #tpu.memory_space<vmem>>, vector<1x16xf32>
    %188 = vector.broadcast %187 : vector<1x16xf32> to vector<256x16xf32>
    %189 = arith.addf %186, %188 : vector<256x16xf32>
    %c0_83 = arith.constant 0 : index
    %c0_84 = arith.constant 0 : index
    %c0_85 = arith.constant 0 : index
    %190 = vector.load %arg14[%c0_83, %c0_84, %c0_85] : memref<1x256x16xf32, #tpu.memory_space<vmem>>, vector<1x256x16xf32>
    %191 = vector.shape_cast %190 : vector<1x256x16xf32> to vector<256x16xf32>
    %192 = vector.shape_cast %189 : vector<256x16xf32> to vector<1x256x16xf32>
    tpu.vector_store %arg14[%c0_83, %c0_84, %c0_85], %192 {strides = array<i32>} : memref<1x256x16xf32, #tpu.memory_space<vmem>>, vector<1x256x16xf32>,
    return
  }
  func.func @transform_0(%arg0: i32) -> (i32, i32, i32) {
    %c0_i32 = arith.constant 0 : i32
    %c0_i32_0 = arith.constant 0 : i32
    %c0_i32_1 = arith.constant 0 : i32
    return %arg0, %c0_i32, %c0_i32_0 : i32, i32, i32
  }
  func.func @transform_1(%arg0: i32) -> (i32, i32, i32) {
    %c0_i32 = arith.constant 0 : i32
    %c0_i32_0 = arith.constant 0 : i32
    %c0_i32_1 = arith.constant 0 : i32
    return %arg0, %c0_i32, %c0_i32_0 : i32, i32, i32
  }
  func.func @transform_2(%arg0: i32) -> (i32, i32, i32) {
    %c0_i32 = arith.constant 0 : i32
    %c0_i32_0 = arith.constant 0 : i32
    %c0_i32_1 = arith.constant 0 : i32
    return %arg0, %c0_i32, %c0_i32_0 : i32, i32, i32
  }
  func.func @transform_3(%arg0: i32) -> (i32, i32) {
    %c0_i32 = arith.constant 0 : i32
    %c0_i32_0 = arith.constant 0 : i32
    %c0_i32_1 = arith.constant 0 : i32
    return %c0_i32, %c0_i32_0 : i32, i32
  }
  func.func @transform_4(%arg0: i32) -> (i32, i32) {
    %c0_i32 = arith.constant 0 : i32
    %c0_i32_0 = arith.constant 0 : i32
    %c0_i32_1 = arith.constant 0 : i32
    return %c0_i32, %c0_i32_0 : i32, i32
  }
  func.func @transform_5(%arg0: i32) -> (i32, i32) {
    %c0_i32 = arith.constant 0 : i32
    %c0_i32_0 = arith.constant 0 : i32
    %c0_i32_1 = arith.constant 0 : i32
    return %c0_i32, %c0_i32_0 : i32, i32
  }
  func.func @transform_6(%arg0: i32) -> (i32, i32) {
    %c0_i32 = arith.constant 0 : i32
    %c0_i32_0 = arith.constant 0 : i32
    %c0_i32_1 = arith.constant 0 : i32
    return %c0_i32, %c0_i32_0 : i32, i32
  }
  func.func @transform_7(%arg0: i32) -> (i32, i32) {
    %c0_i32 = arith.constant 0 : i32
    %c0_i32_0 = arith.constant 0 : i32
    %c0_i32_1 = arith.constant 0 : i32
    return %c0_i32, %c0_i32_0 : i32, i32
  }
  func.func @transform_8(%arg0: i32) -> (i32, i32) {
    %c0_i32 = arith.constant 0 : i32
    %c0_i32_0 = arith.constant 0 : i32
    %c0_i32_1 = arith.constant 0 : i32
    return %c0_i32, %c0_i32_0 : i32, i32
  }
  func.func @transform_9(%arg0: i32) -> (i32, i32, i32) {
    %c0_i32 = arith.constant 0 : i32
    %c0_i32_0 = arith.constant 0 : i32
    %c0_i32_1 = arith.constant 0 : i32
    %c0_i32_2 = arith.constant 0 : i32
    return %c0_i32, %c0_i32_0, %c0_i32_1 : i32, i32, i32
  }
  func.func @transform_10(%arg0: i32) -> (i32, i32, i32) {
    %c0_i32 = arith.constant 0 : i32
    %c0_i32_0 = arith.constant 0 : i32
    %c0_i32_1 = arith.constant 0 : i32
    %c0_i32_2 = arith.constant 0 : i32
    return %c0_i32, %c0_i32_0, %c0_i32_1 : i32, i32, i32
  }
  func.func @transform_11(%arg0: i32) -> (i32, i32) {
    %c0_i32 = arith.constant 0 : i32
    %c0_i32_0 = arith.constant 0 : i32
    %c0_i32_1 = arith.constant 0 : i32
    return %c0_i32, %c0_i32_0 : i32, i32
  }
  func.func @transform_12(%arg0: i32) -> (i32, i32) {
    %c0_i32 = arith.constant 0 : i32
    %c0_i32_0 = arith.constant 0 : i32
    %c0_i32_1 = arith.constant 0 : i32
    return %c0_i32, %c0_i32_0 : i32, i32
  }
  func.func @transform_13(%arg0: i32) -> (i32, i32, i32) {
    %c0_i32 = arith.constant 0 : i32
    %c0_i32_0 = arith.constant 0 : i32
    %c0_i32_1 = arith.constant 0 : i32
    return %arg0, %c0_i32, %c0_i32_0 : i32, i32, i32
  }
  func.func @transform_14(%arg0: i32) -> (i32, i32, i32) {
    %c0_i32 = arith.constant 0 : i32
    %c0_i32_0 = arith.constant 0 : i32
    %c0_i32_1 = arith.constant 0 : i32
    return %arg0, %c0_i32, %c0_i32_0 : i32, i32, i32
  }
}

</mosaic_0001>

<bundles_post_ra>
// kernel: forward_instruct_moe_t2v.1
= control target key start
LH: loop header
LB: loop body
LE: loop exit
PB: predicated region body
PF: predicated region fallthrough
CT: control target
= control target key end

     0   :  { %s9955_s0 = inlined_call_operand.vmem [shape: f32[2,8,32], index: 0, kind: input, shape index: {}]   ;;  %s9956_s1 = inlined_call_operand.vmem [shape: f32[2,1,8], index: 1, kind: input, shape index: {}]   ;;  %s9957_s2 = inlined_call_operand.vmem [shape: f32[2,256,4], index: 2, kind: input, shape index: {}]   ;;  %s9958_s3 = inlined_call_operand.vmem [shape: bf16[32,768], index: 3, kind: input, shape index: {}]   ;;  %s9959_s4 = inlined_call_operand.vmem [shape: f32[1,768], index: 4, kind: input, shape index: {}]   ;;  %s9960_s5 = inlined_call_operand.hbm [shape: bf16[768,384], index: 5, kind: input, shape index: {}]   ;;  %s9961_s6 = inlined_call_operand.vmem [shape: f32[1,384], index: 6, kind: input, shape index: {}]   ;;  %s9962_s7 = inlined_call_operand.vmem [shape: bf16[768,8], index: 7, kind: input, shape index: {}]   ;;  %s9963_s8 = inlined_call_operand.vmem [shape: f32[1,8], index: 8, kind: input, shape index: {}]   ;;  %s9964_s9 = inlined_call_operand.vmem [shape: f32[8,4,384], index: 9, kind: input, shape index: {}]   ;;  %s9965_s10 = inlined_call_operand.vmem [shape: f32[8,1,384], index: 10, kind: input, shape index: {}]   ;;  %s9966_s11 = inlined_call_operand.vmem [shape: bf16[384,16], index: 11, kind: input, shape index: {}]   ;;  %s9967_s12 = inlined_call_operand.vmem [shape: f32[1,16], index: 12, kind: input, shape index: {}]   ;;  %s9968_s13 = inlined_call_operand.hbm [shape: f32[2,256,16], index: 13, kind: output, shape index: {0}]   ;;  %s9969_s14 = inlined_call_operand.vmem [shape: f32[2,1,8], index: 14, kind: output, shape index: {1}]  }
   0x1   :  { %10046 = sst [smem:[#allocation188_spill]] %s9960_s5 }
   0x2   :  { %20 = vsyncpa [#allocation3], 0 }
   0x3   :  { %21 = vsyncpa [#allocation4], 0 }
   0x4   :  { %23 = vsyncpa [#allocation4 + $0x1], 0  ;;  %s6497_s29 = smov 0   ;;  %s6499_s30 = smov 0  }
   0x5   :  { %s6501_s15 = smov 0   ;;  %s6503_s16 = smov 0  }
   0x6 LB: > { %10047 = sst [smem:[#allocation8_spill]] %s6386_s29  ;;  %s6518_s17 = sadd.s32 4294967295, %s6398_s16   ;;  %s6398_s16 = sphi %s6503_s16, %s10732_s16   ;;  %s6394_s15 = sphi %s6501_s15, %s10734_s15   ;;  %s6390_s30 = sphi %s6499_s30, %s10736_s30   ;;  %s6386_s29 = sphi %s6497_s29, %s10735_s29  }
   0x7   : > { %10048 = sst [smem:[#allocation9_spill]] %s6394_s15  ;;  %s4909_s18 = sadd.s32 4294967294, %s6398_s16  }
   0x8   : > { %s6522_s19 = sadd.s32 1, %s6398_s16   ;;  %s324_s20 = sadd.s32 1, %s6394_s15 }
   0x9   : > { %10049 = sst [smem:[#allocation10_spill]] %s6522_s19  ;;  %s321_s21 = ssub.s32 %s6398_s16, %s6522_s19 }
   0xa   : > { %p334_p0 = scmp.ne.s32.totalorder %s6394_s15, %s6390_s30  ;;  %p322_p1 = scmp.eq.s32.totalorder %s321_s21, 0 }
   0xb   : > { %p335_p2 = scmp.eq.s32.totalorder %s6518_s17, 1  ;;  %p340_p3 = scmp.ne.s32.totalorder %s6390_s30, %s6386_s29 }
   0xc   : > { %p341_p4 = scmp.eq.s32.totalorder %s4909_s18, 1  ;;  %p4910_p7 = scmp.ge.s32.totalorder %s6398_s16, 1 }
   0xd   : > { %s6533_s22 = scalar_select %p322_p1, %s6394_s15, %s324_s20  }
   0xe   : > { %p6535_p5 = por %p335_p2, %p334_p0  ;;  %p6539_p6 = por %p341_p4, %p340_p3 }
   0xf   : > { %10050 = sst [smem:[#allocation11_spill]] %s6533_s22  ;;  %p374_p8 = scmp.lt.s32.totalorder %s6398_s16, 3 }
  0x10   : > { %s10052_s24 = scalar_select %p6539_p6, 1, 0 }
  0x11   : > { %p6151_p9 = scmp.eq.s32.totalorder %s6518_s17, 0  ;;  %p375_p10 = pnand %p4910_p7, %p374_p8 }
  0x12   : > { %10053 = sst [smem:[#allocation12_spill]] %s10052_s24  ;;  %s6400_s28 = smov [#allocation2]  }
  0x13   : > { %s10054_s5 = sld [smem:[#allocation188_spill]]  ;;  %p6143_p11 = pneg %p375_p10 }
  0x14   : > { %s393_s18 = sshll.u32 %s6400_s28, 4  ;;  %s6401_s20 = smov 192   ;;  %s394_s18 = int_to_ptr.vmem [resolvable:$true] %s393_s18 }
  0x15   : > { %p6144_p12 = pnand %p6151_p9, %p6143_p11  ;;  %s6402_s21 = smov 12  }
  0x16   : > { %451 = sbr.rel (%p375_p10) target bundleno = 1954 (0x7a2), region = 72 }
  0x19   : > { %s391_s27 = sshll.u32 %s10054_s5, 4  ;;  %s392_s27 = int_to_ptr.hbm [resolvable:$true] %s391_s27 }
  0x1a   : > { %6146 = dma.hbm_to_vmem [thread:$0]  (!%p6144_p12), %s392_s27, 18432, %s394_s18, [#allocation3], %s6401_s20, %s6401_s20, %s6402_s21  }
  0x1b   : > { %6377 = dma.done.wait (%p6151_p9), [#allocation3], 18432  }
  0x1c   : > { %6379 = vsyncadd (%p6151_p9), [#allocation3], 4294948864  ;;  %p508_p13 = scmp.lt.s32.totalorder %s6518_s17, 1  ;;  %v6403_v0 = vmov 8.0   ;;  %vm525_vm0 = vcmask 261120   ;;  %vm2770_vm10 = vcmask 1040384  }
  0x1d   : > { %6267 = vrcp.f32 %v6403_v0  ;;  %v4945_v1 = vld [vmem:[%s9958_s3 + $0x30] sm:$0xf]  ;;  %v5877_v2 = vld [vmem:[%s9958_s3 + $0x44] sm:$0xf0]  ;;  %v4953_v3 = vld [vmem:[%s9958_s3 + $0x38] sm:$0xf] }
  0x1e   : > { %s6557_s25 = scalar_select %p508_p13, %s6518_s17, 1  ;;  %v4946_v5 = vor.u32 %v5877_v2, %v4945_v1  ;;  %v5878_v6 = vld [vmem:[%s9958_s3 + $0x4c] sm:$0xf0]  ;;  %v5875_v7 = vld [vmem:[%s9958_s3 + $0x3c] sm:$0xf]  ;;  %vm2520_vm11 = vcmask 57344  }
  0x1f   : > { %v4955_v8 = vld [vmem:[%s9958_s3 + $0x50] sm:$0xf0]  ;;  %v4954_v9 = vor.u32 %v5878_v6, %v4953_v3  ;;  %v4921_v11 = vld [vmem:[%s9958_s3] sm:$0xf]  ;;  %v5871_v12 = vld [vmem:[%s9958_s3 + $0x14] sm:$0xf0] }
  0x20   : > { %s4916_s26 = sshll.u32 %s6557_s25, 3  ;;  %v4958_v10 = vor.u32 %v5875_v7, %v4955_v8  ;;  %v4929_v13 = vld [vmem:[%s9958_s3 + $0x8] sm:$0xf]  ;;  %637 = vmatpush.bf16.msra.mxu1 %v4946_v5  ;;  %v4922_v14 = vor.u32 %v5871_v12, %v4921_v11  ;;  %v5872_v15 = vld [vmem:[%s9958_s3 + $0x1c] sm:$0xf0]  ;;  %s5867_s24 = sshll.u32 %s6557_s25, 8 }
  0x21   : > { %s511_s29 = scalar_lea.vmem %s9955_s0, %s4916_s26  ;;  %v5869_v16 = vld [vmem:[%s9958_s3 + $0xc] sm:$0xf]  ;;  %v4931_v17 = vld [vmem:[%s9958_s3 + $0x20] sm:$0xf0]  ;;  %663 = vmatpush.bf16.msra.mxu2 %v4954_v9  ;;  %v4930_v18 = vor.u32 %v5872_v15, %v4929_v13  ;;  %v5874_v22 = vld [vmem:[%s9958_s3 + $0x34] sm:$0xf]  ;;  %s6894_s26 = scalar_lea.vmem %s9957_s2, %s5867_s24 }
  0x22   : > { %676 = vmatpush.bf16.msra.mxu3 %v4958_v10  ;;  %v4934_v19 = vor.u32 %v5869_v16, %v4931_v17  ;;  %v524_v20 = vld [vmem:[%s511_s29] sm:$0xff]  ;;  %v4947_v23 = vld [vmem:[%s9958_s3 + $0x48] sm:$0xf0]  ;;  %v5879_v27 = vld [vmem:[%s9958_s3 + $0x54] sm:$0xf0]  ;;  %s514_s21 = scalar_lea.vmem %s9956_s1, %s6557_s25  ;;  %s522_s19 = scalar_lea.vmem %s9969_s14, %s6557_s25 }
  0x23   : > { %v6268_v4 = vpop.eup %6267  ;;  %v526_v24 = vsel %vm525_vm0, %v524_v20, 0.0  ;;  %v4950_v25 = vor.u32 %v5874_v22, %v4947_v23  ;;  %v4961_v26 = vld [vmem:[%s9958_s3 + $0x40] sm:$0xf]  ;;  %v5868_v31 = vld [vmem:[%s9958_s3 + $0x4] sm:$0xf]  ;;  %s6408_s25 = smov 127  }
  0x24   : > { %v534_v21 = vmul.f32 8.0, %v6268_v4  ;;  %v527_v28 = vrot.slane %v526_v24, 4  ;;  %v4962_v30 = vor.u32 %v5879_v27, %v4961_v26  ;;  %v4923_v32 = vld [vmem:[%s9958_s3 + $0x18] sm:$0xf0]  ;;  %638 = vmatpush.bf16.msra.mxu1 %v4922_v14  ;;  %v4937_v33 = vld [vmem:[%s9958_s3 + $0x10] sm:$0xf]  ;;  %vm538_vm1 = vweird.f32 %v6268_v4 }
  0x25   : > { %v5873_v34 = vld [vmem:[%s9958_s3 + $0x24] sm:$0xf0]  ;;  %664 = vmatpush.bf16.msra.mxu2 %v4930_v18  ;;  %v4926_v37 = vor.u32 %v5868_v31, %v4923_v32  ;;  %v5876_v45 = vld [vmem:[%s9958_s3 + $0x44] sm:$0xf]  ;;  %v4963_v46 = vld [vmem:[%s9958_s3 + $0x58] sm:$0xf0] }
  0x26   : > { %v535_v29 = vsub.f32 1.0, %v534_v21  ;;  %677 = vmatpush.bf16.msra.mxu3 %v4934_v19  ;;  %v528_v35 = vadd.f32 %v527_v28, %v526_v24  ;;  %689 = vmatpush.bf16.msra.mxu0 %v4962_v30  ;;  %v4938_v38 = vor.u32 %v5873_v34, %v4937_v33  ;;  %v4966_v49 = vor.u32 %v5876_v45, %v4963_v46  ;;  %v5870_v50 = vld [vmem:[%s9958_s3 + $0x14] sm:$0xf]  ;;  %v4939_v51 = vld [vmem:[%s9958_s3 + $0x28] sm:$0xf0]  ;;  %s6409_s24 = smov 124  }
  0x27   : > { %v5059_v52 = vld [vmem:[#allocation2 + $0xa8] sm:$0xf]  ;;  %v5902_v53 = vld [vmem:[#allocation2 + $0xb0] sm:$0xf0]  ;;  %v5047_v54 = vld [vmem:[#allocation2 + $0x90] sm:$0xf]  ;;  %v4942_v59 = vor.u32 %v5870_v50, %v4939_v51 }
  0x28   : > { %v536_v36 = vmul.f32 %v6268_v4, %v535_v29  ;;  %650 = vmatpush.bf16.msrb.mxu1 %v4950_v25  ;;  %v529_v39 = vrot.slane %v528_v35, 2  ;;  %v5060_v55 = vor.u32 %v5902_v53, %v5059_v52  ;;  %v5899_v56 = vld [vmem:[#allocation2 + $0x98] sm:$0xf0]  ;;  %v5251_v57 = vld [vmem:[#allocation2 + $0x228] sm:$0xf]  ;;  %s6413_s5 = smov 126  }
  0x29   : > { %v5950_v58 = vld [vmem:[#allocation2 + $0x230] sm:$0xf0]  ;;  %v5048_v61 = vor.u32 %v5899_v56, %v5047_v54  ;;  %v5239_v62 = vld [vmem:[#allocation2 + $0x210] sm:$0xf]  ;;  %v5947_v63 = vld [vmem:[#allocation2 + $0x218] sm:$0xf0] }
  0x2a   : > { %v537_v40 = vadd.f32 %v6268_v4, %v536_v36  ;;  %v530_v41 = vadd.f32 %v529_v39, %v528_v35  ;;  %690 = vmatpush.bf16.msra.mxu0 %v4938_v38  ;;  %v5252_v60 = vor.u32 %v5950_v58, %v5251_v57  ;;  %1689 = vmatpush.bf16.msrb.mxu2 %v5060_v55  ;;  %v5035_v0 = vld [vmem:[#allocation2 + $0x78] sm:$0xf]  ;;  %v5896_v1 = vld [vmem:[#allocation2 + $0x80] sm:$0xf0]  ;;  %v5155_v6 = vld [vmem:[#allocation2 + $0x168] sm:$0xf] }
  0x2b   : > { %v5240_v2 = vor.u32 %v5947_v63, %v5239_v62  ;;  %v5227_v3 = vld [vmem:[#allocation2 + $0x1f8] sm:$0xf]  ;;  %v5036_v5 = vor.u32 %v5896_v1, %v5035_v0  ;;  %v5926_v7 = vld [vmem:[#allocation2 + $0x170] sm:$0xf0]  ;;  %v5023_v8 = vld [vmem:[#allocation2 + $0x60] sm:$0xf] }
  0x2c   : > { %651 = vmatpush.bf16.msrb.mxu1 %v4926_v37  ;;  %v531_v42 = vrot.slane %v530_v41, 1  ;;  %v539_v43 = vsel %vm538_vm1, %v6268_v4, %v537_v40  ;;  %v5944_v4 = vld [vmem:[#allocation2 + $0x200] sm:$0xf0]  ;;  %v5893_v9 = vld [vmem:[#allocation2 + $0x68] sm:$0xf0]  ;;  %v5156_v11 = vor.u32 %v5926_v7, %v5155_v6  ;;  %s6415_s28 = smov 123  }
  0x2d   : > { %v5228_v10 = vor.u32 %v5944_v4, %v5227_v3  ;;  %v5347_v12 = vld [vmem:[#allocation2 + $0x2e8] sm:$0xf]  ;;  %v5215_v13 = vld [vmem:[#allocation2 + $0x1e0] sm:$0xf]  ;;  %v5941_v14 = vld [vmem:[#allocation2 + $0x1e8] sm:$0xf0]  ;;  %v5024_v18 = vor.u32 %v5893_v9, %v5023_v8 }
  0x2e   : > { %v532_v44 = vadd.f32 %v531_v42, %v530_v41  ;;  %1715 = vmatpush.bf16.msrb.mxu0 %v5252_v60  ;;  %1690 = vmatpush.bf16.msrb.mxu2 %v5048_v61  ;;  %v5974_v15 = vld [vmem:[#allocation2 + $0x2f0] sm:$0xf0]  ;;  %v5143_v16 = vld [vmem:[#allocation2 + $0x150] sm:$0xf]  ;;  %v5923_v17 = vld [vmem:[#allocation2 + $0x158] sm:$0xf0]  ;;  %v5216_v22 = vor.u32 %v5941_v14, %v5215_v13 }
  0x2f   : > { %1702 = vmatpush.bf16.msrb.mxu3 %v5156_v11  ;;  %v5144_v19 = vor.u32 %v5923_v17, %v5143_v16  ;;  %v5011_v20 = vld [vmem:[#allocation2 + $0x48] sm:$0xf]  ;;  %v5890_v21 = vld [vmem:[#allocation2 + $0x50] sm:$0xf0]  ;;  %v5131_v23 = vld [vmem:[#allocation2 + $0x138] sm:$0xf]  ;;  %v5348_v24 = vor.u32 %v5974_v15, %v5347_v12 }
  0x30   : > { %v540_v47 = vmul.f32 %v539_v43, %v532_v44  ;;  %v5203_v25 = vld [vmem:[#allocation2 + $0x1c8] sm:$0xf]  ;;  %v5938_v26 = vld [vmem:[#allocation2 + $0x1d0] sm:$0xf0]  ;;  %v5920_v27 = vld [vmem:[#allocation2 + $0x140] sm:$0xf0]  ;;  %v5012_v31 = vor.u32 %v5890_v21, %v5011_v20 }
  0x31   : > { %v5335_v28 = vld [vmem:[#allocation2 + $0x2d0] sm:$0xf]  ;;  %v5971_v29 = vld [vmem:[#allocation2 + $0x2d8] sm:$0xf0]  ;;  %v5132_v30 = vor.u32 %v5920_v27, %v5131_v23  ;;  %v5119_v32 = vld [vmem:[#allocation2 + $0x120] sm:$0xf]  ;;  %v5204_v36 = vor.u32 %v5938_v26, %v5203_v25 }
  0x32   : > { %v6630_v48 = vpack.c.bf16 %v540_v47, %v540_v47  ;;  %1716 = vmatpush.bf16.msrb.mxu0 %v5240_v2  ;;  %1691 = vmatpush.bf16.msrb.mxu2 %v5036_v5  ;;  %v5917_v33 = vld [vmem:[#allocation2 + $0x128] sm:$0xf0]  ;;  %v4999_v34 = vld [vmem:[#allocation2 + $0x30] sm:$0xf]  ;;  %v5887_v35 = vld [vmem:[#allocation2 + $0x38] sm:$0xf0]  ;;  %v5336_v37 = vor.u32 %v5971_v29, %v5335_v28 }
  0x33   : > { %1703 = vmatpush.bf16.msrb.mxu3 %v5144_v19  ;;  %v5191_v38 = vld [vmem:[#allocation2 + $0x1b0] sm:$0xf]  ;;  %v5935_v39 = vld [vmem:[#allocation2 + $0x1b8] sm:$0xf0]  ;;  %v5323_v40 = vld [vmem:[#allocation2 + $0x2b8] sm:$0xf]  ;;  %v5120_v42 = vor.u32 %v5917_v33, %v5119_v32  ;;  %v5000_v43 = vor.u32 %v5887_v35, %v4999_v34 }
  0x34   : > { %4967 = vmatmul.msk.bf16.vlgmr.msra.gmra.mxu1 %vm525_vm0, %v6630_v48  ;;  %4969 = vmatmul.msk.bf16.vlgmr.msra.gmra.mxu2 %vm525_vm0, %v6630_v48  ;;  %v5968_v41 = vld [vmem:[#allocation2 + $0x2c0] sm:$0xf0]  ;;  %v5107_v44 = vld [vmem:[#allocation2 + $0x108] sm:$0xf]  ;;  %v5914_v45 = vld [vmem:[#allocation2 + $0x110] sm:$0xf0] }
  0x35   : > { %4970 = vmatmul.msk.bf16.vlgmr.msra.gmra.mxu3 %vm525_vm0, %v6630_v48  ;;  %4971 = vmatmul.msk.bf16.vlgmr.msra.gmra.mxu0 %vm525_vm0, %v6630_v48  ;;  %v4987_v46 = vld [vmem:[#allocation2 + $0x18] sm:$0xf]  ;;  %v5884_v47 = vld [vmem:[#allocation2 + $0x20] sm:$0xf0]  ;;  %v5324_v50 = vor.u32 %v5968_v41, %v5323_v40  ;;  %v5311_v53 = vld [vmem:[#allocation2 + $0x2a0] sm:$0xf]  ;;  %v5108_v55 = vor.u32 %v5914_v45, %v5107_v44 }
  0x36   : > { %702 = vmatpush.bf16.msra.mxu1 %v4966_v49  ;;  %1717 = vmatpush.bf16.msrb.mxu0 %v5228_v10  ;;  %v5192_v49 = vor.u32 %v5935_v39, %v5191_v38  ;;  %v5179_v51 = vld [vmem:[#allocation2 + $0x198] sm:$0xf]  ;;  %v5932_v52 = vld [vmem:[#allocation2 + $0x1a0] sm:$0xf0]  ;;  %v5965_v54 = vld [vmem:[#allocation2 + $0x2a8] sm:$0xf0]  ;;  %v4988_v56 = vor.u32 %v5884_v47, %v4987_v46 }
  0x37   : > { %1692 = vmatpush.bf16.msrb.mxu2 %v5024_v18  ;;  %1704 = vmatpush.bf16.msrb.mxu3 %v5132_v30  ;;  %v5095_v57 = vld [vmem:[#allocation2 + $0xf0] sm:$0xf]  ;;  %v5911_v58 = vld [vmem:[#allocation2 + $0xf8] sm:$0xf0]  ;;  %v4975_v60 = vld [vmem:[#allocation2] sm:$0xf]  ;;  %v5180_v62 = vor.u32 %v5932_v52, %v5179_v51  ;;  %v5312_v63 = vor.u32 %v5965_v54, %v5311_v53 }
  0x38   : > { %v5881_v61 = vld [vmem:[#allocation2 + $0x8] sm:$0xf0]  ;;  %v5962_v0 = vld [vmem:[#allocation2 + $0x290] sm:$0xf0]  ;;  %v5443_v1 = vld [vmem:[#allocation2 + $0x3a8] sm:$0xf]  ;;  %v5096_v6 = vor.u32 %v5911_v58, %v5095_v57 }
  0x39   : > { %v5998_v2 = vld [vmem:[#allocation2 + $0x3b0] sm:$0xf0]  ;;  %v5167_v3 = vld [vmem:[#allocation2 + $0x180] sm:$0xf]  ;;  %v5929_v4 = vld [vmem:[#allocation2 + $0x188] sm:$0xf0]  ;;  %v4976_v7 = vor.u32 %v5881_v61, %v4975_v60 }
  0x3a   : > { %703 = vmatpush.bf16.msra.mxu1 %v4942_v59  ;;  %1718 = vmatpush.bf16.msrb.mxu0 %v5216_v22  ;;  %v5299_v59 = vld [vmem:[#allocation2 + $0x288] sm:$0xf]  ;;  %v5901_v5 = vld [vmem:[#allocation2 + $0xac] sm:$0xf]  ;;  %v5061_v8 = vld [vmem:[#allocation2 + $0xb4] sm:$0xf0]  ;;  %v5444_v11 = vor.u32 %v5998_v2, %v5443_v1  ;;  %v5168_v15 = vor.u32 %v5929_v4, %v5167_v3 }
  0x3b   : > { %1693 = vmatpush.bf16.msrb.mxu2 %v5012_v31  ;;  %1705 = vmatpush.bf16.msrb.mxu3 %v5120_v42  ;;  %v5083_v9 = vld [vmem:[#allocation2 + $0xd8] sm:$0xf]  ;;  %v5908_v10 = vld [vmem:[#allocation2 + $0xe0] sm:$0xf0]  ;;  %v5300_v12 = vor.u32 %v5962_v0, %v5299_v59  ;;  %v5431_v13 = vld [vmem:[#allocation2 + $0x390] sm:$0xf]  ;;  %v5064_v18 = vor.u32 %v5901_v5, %v5061_v8 }
  0x3c   : > { %v5995_v14 = vld [vmem:[#allocation2 + $0x398] sm:$0xf0]  ;;  %v5287_v16 = vld [vmem:[#allocation2 + $0x270] sm:$0xf]  ;;  %v5898_v19 = vld [vmem:[#allocation2 + $0x94] sm:$0xf]  ;;  %v5084_v20 = vor.u32 %v5908_v10, %v5083_v9 }
  0x3d   : > { %v5959_v17 = vld [vmem:[#allocation2 + $0x278] sm:$0xf0]  ;;  %v5049_v21 = vld [vmem:[#allocation2 + $0x9c] sm:$0xf0]  ;;  %v5905_v23 = vld [vmem:[#allocation2 + $0xc8] sm:$0xf0] }
  0x3e   : > { %1719 = vmatpush.bf16.msrb.mxu0 %v5204_v36  ;;  %v5071_v22 = vld [vmem:[#allocation2 + $0xc0] sm:$0xf]  ;;  %v5539_v25 = vld [vmem:[#allocation2 + $0x468] sm:$0xf]  ;;  %v6022_v26 = vld [vmem:[#allocation2 + $0x470] sm:$0xf0]  ;;  %v5288_v27 = vor.u32 %v5959_v17, %v5287_v16  ;;  %v5052_v32 = vor.u32 %v5898_v19, %v5049_v21 }
  0x3f   : > { %1694 = vmatpush.bf16.msrb.mxu2 %v5000_v43  ;;  %1706 = vmatpush.bf16.msrb.mxu3 %v5108_v55  ;;  %v5419_v28 = vld [vmem:[#allocation2 + $0x378] sm:$0xf]  ;;  %v5992_v29 = vld [vmem:[#allocation2 + $0x380] sm:$0xf0]  ;;  %v5072_v33 = vor.u32 %v5905_v23, %v5071_v22  ;;  %v5895_v34 = vld [vmem:[#allocation2 + $0x7c] sm:$0xf]  ;;  %v5540_v36 = vor.u32 %v6022_v26, %v5539_v25 }
  0x40   : > { %v5275_v30 = vld [vmem:[#allocation2 + $0x258] sm:$0xf]  ;;  %v5956_v31 = vld [vmem:[#allocation2 + $0x260] sm:$0xf0]  ;;  %v5037_v35 = vld [vmem:[#allocation2 + $0x84] sm:$0xf0] }
  0x41   : > { %v5407_v38 = vld [vmem:[#allocation2 + $0x360] sm:$0xf]  ;;  %v5989_v39 = vld [vmem:[#allocation2 + $0x368] sm:$0xf0]  ;;  %v5040_v42 = vor.u32 %v5895_v34, %v5037_v35  ;;  %v5157_v44 = vld [vmem:[#allocation2 + $0x174] sm:$0xf0] }
  0x42   : > { %1720 = vmatpush.bf16.msrb.mxu0 %v5192_v49  ;;  %v5263_v40 = vld [vmem:[#allocation2 + $0x240] sm:$0xf]  ;;  %v5953_v41 = vld [vmem:[#allocation2 + $0x248] sm:$0xf0]  ;;  %v5408_v45 = vor.u32 %v5989_v39, %v5407_v38  ;;  %v5395_v47 = vld [vmem:[#allocation2 + $0x348] sm:$0xf] }
  0x43   : > { %1695 = vmatpush.bf16.msrb.mxu2 %v4988_v56  ;;  %1707 = vmatpush.bf16.msrb.mxu3 %v5096_v6  ;;  %v5925_v43 = vld [vmem:[#allocation2 + $0x16c] sm:$0xf]  ;;  %v5264_v46 = vor.u32 %v5953_v41, %v5263_v40  ;;  %v5986_v49 = vld [vmem:[#allocation2 + $0x350] sm:$0xf0]  ;;  %v5145_v52 = vld [vmem:[#allocation2 + $0x15c] sm:$0xf0] }
  0x44   : > { %4968 = vmatmul.msk.bf16.vlgmr.msrb.gmra.mxu1 %vm525_vm0, %v6630_v48  ;;  %v5922_v51 = vld [vmem:[#allocation2 + $0x154] sm:$0xf]  ;;  %v5396_v53 = vor.u32 %v5986_v49, %v5395_v47  ;;  %v5919_v55 = vld [vmem:[#allocation2 + $0x13c] sm:$0xf]  ;;  %v5133_v56 = vld [vmem:[#allocation2 + $0x144] sm:$0xf0] }
  0x45   : > { %1728 = vmatpush.bf16.msrb.mxu1 %v5348_v24  ;;  %v5432_v24 = vor.u32 %v5995_v14, %v5431_v13  ;;  %v5148_v54 = vor.u32 %v5922_v51, %v5145_v52  ;;  %v5136_v57 = vor.u32 %v5919_v55, %v5133_v56  ;;  %v5892_v58 = vld [vmem:[#allocation2 + $0x64] sm:$0xf]  ;;  %v5025_v59 = vld [vmem:[#allocation2 + $0x6c] sm:$0xf0]  ;;  %v5983_v1 = vld [vmem:[#allocation2 + $0x338] sm:$0xf0] }
  0x46   : > { %1721 = vmatpush.bf16.msrb.mxu0 %v5180_v62  ;;  %v5916_v60 = vld [vmem:[#allocation2 + $0x124] sm:$0xf]  ;;  %v5028_v61 = vor.u32 %v5892_v58, %v5025_v59  ;;  %v5121_v62 = vld [vmem:[#allocation2 + $0x12c] sm:$0xf0]  ;;  %v6019_v4 = vld [vmem:[#allocation2 + $0x458] sm:$0xf0] }
  0x47   : > { %1696 = vmatpush.bf16.msrb.mxu2 %v4976_v7  ;;  %1708 = vmatpush.bf16.msrb.mxu3 %v5084_v20  ;;  %v5383_v0 = vld [vmem:[#allocation2 + $0x330] sm:$0xf]  ;;  %v5889_v6 = vld [vmem:[#allocation2 + $0x4c] sm:$0xf]  ;;  %v5013_v7 = vld [vmem:[#allocation2 + $0x54] sm:$0xf0] }
  0x48   : > { %v5527_v2 = vld [vmem:[#allocation2 + $0x450] sm:$0xf]  ;;  %v5384_v3 = vor.u32 %v5983_v1, %v5383_v0  ;;  %v5913_v8 = vld [vmem:[#allocation2 + $0x10c] sm:$0xf]  ;;  %v5016_v9 = vor.u32 %v5889_v6, %v5013_v7  ;;  %v5109_v10 = vld [vmem:[#allocation2 + $0x114] sm:$0xf0] }
  0x49   : > { %1729 = vmatpush.bf16.msrb.mxu1 %v5336_v37  ;;  %v5276_v37 = vor.u32 %v5956_v31, %v5275_v30  ;;  %v5528_v5 = vor.u32 %v6019_v4, %v5527_v2  ;;  %v5980_v13 = vld [vmem:[#allocation2 + $0x320] sm:$0xf0]  ;;  %v5515_v14 = vld [vmem:[#allocation2 + $0x438] sm:$0xf]  ;;  %v5001_v19 = vld [vmem:[#allocation2 + $0x3c] sm:$0xf0] }
  0x4a   : > { %1722 = vmatpush.bf16.msrb.mxu0 %v5168_v15  ;;  %v6016_v16 = vld [vmem:[#allocation2 + $0x440] sm:$0xf0]  ;;  %v5910_v20 = vld [vmem:[#allocation2 + $0xf4] sm:$0xf]  ;;  %v5097_v22 = vld [vmem:[#allocation2 + $0xfc] sm:$0xf0] }
  0x4b   : > { %1741 = vmatpush.bf16.msra.mxu2 %v5444_v11  ;;  %1709 = vmatpush.bf16.msrb.mxu3 %v5072_v33  ;;  %v5112_v11 = vor.u32 %v5913_v8, %v5109_v10  ;;  %v5516_v17 = vor.u32 %v6016_v16, %v5515_v14  ;;  %v5100_v23 = vor.u32 %v5910_v20, %v5097_v22  ;;  %v5977_v25 = vld [vmem:[#allocation2 + $0x308] sm:$0xf0]  ;;  %v5503_v26 = vld [vmem:[#allocation2 + $0x420] sm:$0xf]  ;;  %v5883_v30 = vld [vmem:[#allocation2 + $0x1c] sm:$0xf] }
  0x4c   : > { %v4989_v31 = vld [vmem:[#allocation2 + $0x24] sm:$0xf0]  ;;  %v5880_v38 = vld [vmem:[#allocation2 + $0x4] sm:$0xf]  ;;  %v4977_v39 = vld [vmem:[#allocation2 + $0xc] sm:$0xf0] }
  0x4d   : > { %1730 = vmatpush.bf16.msrb.mxu1 %v5324_v50  ;;  %v5160_v50 = vor.u32 %v5925_v43, %v5157_v44  ;;  %v4992_v33 = vor.u32 %v5883_v30, %v4989_v31  ;;  %v5085_v34 = vld [vmem:[#allocation2 + $0xe4] sm:$0xf0]  ;;  %v5904_v40 = vld [vmem:[#allocation2 + $0xc4] sm:$0xf]  ;;  %v4980_v41 = vor.u32 %v5880_v38, %v4977_v39  ;;  %v5479_v44 = vld [vmem:[#allocation2 + $0x3f0] sm:$0xf] }
  0x4e   : > { %1767 = vmatpush.bf16.msra.mxu0 %v5064_v18  ;;  %v5886_v18 = vld [vmem:[#allocation2 + $0x34] sm:$0xf]  ;;  %v5467_v47 = vld [vmem:[#allocation2 + $0x3d8] sm:$0xf]  ;;  %v6004_v49 = vld [vmem:[#allocation2 + $0x3e0] sm:$0xf0] }
  0x4f   : > { %1742 = vmatpush.bf16.msra.mxu2 %v5432_v24  ;;  %1754 = vmatpush.bf16.msra.mxu3 %v5540_v36  ;;  %v5004_v21 = vor.u32 %v5886_v18, %v5001_v19  ;;  %v5359_v24 = vld [vmem:[#allocation2 + $0x300] sm:$0xf]  ;;  %v5491_v36 = vld [vmem:[#allocation2 + $0x408] sm:$0xf]  ;;  %v6021_v16 = vld [vmem:[#allocation2 + $0x46c] sm:$0xf] }
  0x50   : > { %v6653_v51 = vld [vmem:[%s9959_s4] sm:$0x3f]  ;;  %v5943_v18 = vld [vmem:[#allocation2 + $0x1fc] sm:$0xf]  ;;  %v5229_v19 = vld [vmem:[#allocation2 + $0x204] sm:$0xf0] }
  0x51   : > { %1731 = vmatpush.bf16.msrb.mxu1 %v5312_v63  ;;  %v5124_v63 = vor.u32 %v5916_v60, %v5121_v62  ;;  %v5455_v52 = vld [vmem:[#allocation2 + $0x3c0] sm:$0xf]  ;;  %v616_v55 = vperm.slane %v6653_v51, 0  ;;  %v618_v59 = vperm.slane %v6653_v51, 2  ;;  %v619_v60 = vperm.slane %v6653_v51, 3  ;;  %s6416_s29 = smov 125  }
  0x52   : > { %1768 = vmatpush.bf16.msra.mxu0 %v5052_v32  ;;  %v5907_v32 = vld [vmem:[#allocation2 + $0xdc] sm:$0xf]  ;;  %v5949_v62 = vld [vmem:[#allocation2 + $0x22c] sm:$0xf]  ;;  %v620_v4 = vperm.slane %v6653_v51, 4  ;;  %v617_v14 = vperm.slane %v6653_v51, 1 }
  0x53   : > { %1755 = vmatpush.bf16.msra.mxu3 %v5528_v5  ;;  %v5088_v35 = vor.u32 %v5907_v32, %v5085_v34  ;;  %v5241_v10 = vld [vmem:[#allocation2 + $0x21c] sm:$0xf0]  ;;  %v5232_v32 = vor.u32 %v5943_v18, %v5229_v19  ;;  %v5991_v38 = vld [vmem:[#allocation2 + $0x37c] sm:$0xf]  ;;  %v5421_v39 = vld [vmem:[#allocation2 + $0x384] sm:$0xf0] }
  0x54   : > { %4972 = vmatmul.msk.bf16.vlgmr.msra.gmra.mxu1 %vm525_vm0, %v6630_v48  ;;  %v5420_v48 = vor.u32 %v5992_v29, %v5419_v28  ;;  %v6013_v28 = vld [vmem:[#allocation2 + $0x428] sm:$0xf0]  ;;  %v5529_v34 = vld [vmem:[#allocation2 + $0x45c] sm:$0xf0]  ;;  %v5982_v19 = vld [vmem:[#allocation2 + $0x334] sm:$0xf] }
  0x55   : > { %1732 = vmatpush.bf16.msrb.mxu1 %v5300_v12  ;;  %v5371_v12 = vld [vmem:[#allocation2 + $0x318] sm:$0xf]  ;;  %v5504_v29 = vor.u32 %v6013_v28, %v5503_v26  ;;  %v5994_v28 = vld [vmem:[#allocation2 + $0x394] sm:$0xf]  ;;  %vm2772_vm0 = vcmask 1041408   ;;  %s6418_s27 = smov 122  }
  0x56   : > { %1743 = vmatpush.bf16.msra.mxu2 %v5420_v48  ;;  %1769 = vmatpush.bf16.msra.mxu0 %v5040_v42  ;;  %v5372_v15 = vor.u32 %v5980_v13, %v5371_v12  ;;  %v6010_v48 = vld [vmem:[#allocation2 + $0x410] sm:$0xf0]  ;;  %v5073_v42 = vld [vmem:[#allocation2 + $0xcc] sm:$0xf0]  ;;  %v5997_v12 = vld [vmem:[#allocation2 + $0x3ac] sm:$0xf] }
  0x57   : > { %1756 = vmatpush.bf16.msra.mxu3 %v5516_v17  ;;  %v5076_v43 = vor.u32 %v5904_v40, %v5073_v42  ;;  %v5445_v13 = vld [vmem:[#allocation2 + $0x3b4] sm:$0xf0]  ;;  %v5517_v42 = vld [vmem:[#allocation2 + $0x444] sm:$0xf0]  ;;  %s6419_s18 = smov 121  }
  0x58   : > { %v5541_v17 = vld [vmem:[#allocation2 + $0x474] sm:$0xf0]  ;;  %v5448_v22 = vor.u32 %v5997_v12, %v5445_v13  ;;  %v5967_v12 = vld [vmem:[#allocation2 + $0x2bc] sm:$0xf]  ;;  %v5325_v13 = vld [vmem:[#allocation2 + $0x2c4] sm:$0xf0] }
  0x59   : > { %1733 = vmatpush.bf16.msrb.mxu1 %v5288_v27  ;;  %v5360_v27 = vor.u32 %v5977_v25, %v5359_v24 }
  0x5a   : > { %1744 = vmatpush.bf16.msra.mxu2 %v5408_v45  ;;  %1770 = vmatpush.bf16.msra.mxu0 %v5028_v61  ;;  %v6007_v45 = vld [vmem:[#allocation2 + $0x3f8] sm:$0xf0] }
  0x5b   : > { %1757 = vmatpush.bf16.msra.mxu3 %v5504_v29  ;;  %v5433_v29 = vld [vmem:[#allocation2 + $0x39c] sm:$0xf0] }
  0x5d   : > { %1734 = vmatpush.bf16.msrb.mxu1 %v5276_v37  ;;  %v5492_v37 = vor.u32 %v6010_v48, %v5491_v36  ;;  %v5217_v36 = vld [vmem:[#allocation2 + $0x1ec] sm:$0xf0]  ;;  %v5436_v48 = vor.u32 %v5994_v28, %v5433_v29  ;;  %v5928_v29 = vld [vmem:[#allocation2 + $0x184] sm:$0xf] }
  0x5e   : > { %1745 = vmatpush.bf16.msra.mxu2 %v5396_v53  ;;  %1771 = vmatpush.bf16.msra.mxu0 %v5016_v9  ;;  %v6001_v53 = vld [vmem:[#allocation2 + $0x3c8] sm:$0xf0]  ;;  %v5946_v9 = vld [vmem:[#allocation2 + $0x214] sm:$0xf] }
  0x5f   : > { %1758 = vmatpush.bf16.msra.mxu3 %v5492_v37 }
  0x61   : > { %1735 = vmatpush.bf16.msrb.mxu1 %v5264_v46  ;;  %v5480_v46 = vor.u32 %v6007_v45, %v5479_v44  ;;  %v5973_v44 = vld [vmem:[#allocation2 + $0x2ec] sm:$0xf]  ;;  %v5349_v45 = vld [vmem:[#allocation2 + $0x2f4] sm:$0xf0] }
  0x62   : > { %1746 = vmatpush.bf16.msra.mxu2 %v5384_v3  ;;  %1772 = vmatpush.bf16.msra.mxu0 %v5004_v21 }
  0x63   : > { %1759 = vmatpush.bf16.msra.mxu3 %v5480_v46  ;;  %v5424_v46 = vor.u32 %v5991_v38, %v5421_v39  ;;  %v5469_v38 = vld [vmem:[#allocation2 + $0x3e4] sm:$0xf0] }
  0x65   : > { %1780 = vmatpush.bf16.msra.mxu1 %v5160_v50  ;;  %v5468_v50 = vor.u32 %v6004_v49, %v5467_v47  ;;  %v5937_v47 = vld [vmem:[#allocation2 + $0x1cc] sm:$0xf]  ;;  %v5205_v49 = vld [vmem:[#allocation2 + $0x1d4] sm:$0xf0] }
  0x66   : > { %1747 = vmatpush.bf16.msra.mxu2 %v5372_v15  ;;  %1773 = vmatpush.bf16.msra.mxu0 %v4992_v33  ;;  %v5244_v15 = vor.u32 %v5946_v9, %v5241_v10  ;;  %v6018_v33 = vld [vmem:[#allocation2 + $0x454] sm:$0xf]  ;;  %v6009_v9 = vld [vmem:[#allocation2 + $0x40c] sm:$0xf]  ;;  %v5493_v10 = vld [vmem:[#allocation2 + $0x414] sm:$0xf0] }
  0x67   : > { %1760 = vmatpush.bf16.msra.mxu3 %v5468_v50  ;;  %v5532_v37 = vor.u32 %v6018_v33, %v5529_v34  ;;  %v5496_v18 = vor.u32 %v6009_v9, %v5493_v10  ;;  %v5903_v34 = vld [vmem:[#allocation2 + $0xb8] sm:$0xf0]  ;;  %v5247_v10 = vld [vmem:[#allocation2 + $0x218] sm:$0xf] }
  0x69   : > { %1781 = vmatpush.bf16.msra.mxu1 %v5148_v54  ;;  %v5456_v54 = vor.u32 %v6001_v53, %v5455_v52  ;;  %v5988_v53 = vld [vmem:[#allocation2 + $0x364] sm:$0xf] }
  0x6a   : > { %1748 = vmatpush.bf16.msra.mxu2 %v5360_v27  ;;  %1774 = vmatpush.bf16.msra.mxu0 %v4980_v41  ;;  %v5544_v27 = vor.u32 %v6021_v16, %v5541_v17  ;;  %v6015_v41 = vld [vmem:[#allocation2 + $0x43c] sm:$0xf]  ;;  %v5181_v16 = vld [vmem:[#allocation2 + $0x1a4] sm:$0xf0] }
  0x6b   : > { %1761 = vmatpush.bf16.msra.mxu3 %v5456_v54  ;;  %v5520_v52 = vor.u32 %v6015_v41, %v5517_v42  ;;  %v5409_v54 = vld [vmem:[#allocation2 + $0x36c] sm:$0xf0]  ;;  %v5301_v41 = vld [vmem:[#allocation2 + $0x294] sm:$0xf0] }
  0x6d   : > { %1782 = vmatpush.bf16.msra.mxu1 %v5136_v57 }
  0x71   : > { %1783 = vmatpush.bf16.msra.mxu1 %v5124_v63  ;;  %v5253_v63 = vld [vmem:[#allocation2 + $0x234] sm:$0xf0] }
  0x72   : > { %v5256_v6 = vor.u32 %v5949_v62, %v5253_v63  ;;  %v5970_v62 = vld [vmem:[#allocation2 + $0x2d4] sm:$0xf]  ;;  %v5337_v63 = vld [vmem:[#allocation2 + $0x2dc] sm:$0xf0] }
  0x75   : > { %1784 = vmatpush.bf16.msra.mxu1 %v5112_v11 }
  0x79   : > { %1785 = vmatpush.bf16.msra.mxu1 %v5100_v23 }
  0x7d   : > { %1786 = vmatpush.bf16.msra.mxu1 %v5088_v35  ;;  %v5940_v35 = vld [vmem:[#allocation2 + $0x1e4] sm:$0xf] }
  0x7e   : > { %v5220_v40 = vor.u32 %v5940_v35, %v5217_v36  ;;  %v5979_v35 = vld [vmem:[#allocation2 + $0x31c] sm:$0xf]  ;;  %v5373_v36 = vld [vmem:[#allocation2 + $0x324] sm:$0xf0] }
  0x81   : > { %1787 = vmatpush.bf16.msra.mxu1 %v5076_v43 }
  0xb1   : > { %v640_v56 = vpop.f32.mrf.mxu1 }
  0xb2   : > { %v641_v57 = vadd.f32 %v640_v56, %v616_v55  ;;  %v692_v58 = vpop.f32.mrf.mxu0 }
  0xb3   : > { %v693_v11 = vadd.f32 %v692_v58, %v620_v4  ;;  %v6012_v58 = vld [vmem:[#allocation2 + $0x424] sm:$0xf]  ;;  %v5985_v4 = vld [vmem:[#allocation2 + $0x34c] sm:$0xf] }
  0xb4   : > { %6269 = vtanh.f32 %v641_v57  ;;  %v5352_v57 = vor.u32 %v5973_v44, %v5349_v45  ;;  %v5055_v44 = vld [vmem:[#allocation2 + $0x98] sm:$0xf]  ;;  %v5900_v45 = vld [vmem:[#allocation2 + $0xa0] sm:$0xf0] }
  0xb7   : > { %v666_v61 = vpop.f32.mrf.mxu2 }
  0xb8   : > { %v667_v0 = vadd.f32 %v666_v61, %v618_v59  ;;  %v679_v1 = vpop.f32.mrf.mxu3  ;;  %v5505_v59 = vld [vmem:[#allocation2 + $0x42c] sm:$0xf0]  ;;  %v5208_v61 = vor.u32 %v5937_v47, %v5205_v49 }
  0xb9   : > { %v680_v2 = vadd.f32 %v679_v1, %v619_v60  ;;  %v642_v3 = vpop.f32.mrf.mxu1  ;;  %v5934_v1 = vld [vmem:[#allocation2 + $0x1b4] sm:$0xf] }
  0xba   : > { %v6270_v5 = vpop.eup %6269  ;;  %6271 = vtanh.f32 %v667_v0  ;;  %v694_v7 = vpop.f32.mrf.mxu0  ;;  %v5412_v0 = vor.u32 %v5988_v53, %v5409_v54  ;;  %v5508_v3 = vor.u32 %v6012_v58, %v5505_v59  ;;  %v5457_v53 = vld [vmem:[#allocation2 + $0x3cc] sm:$0xf0]  ;;  %v5951_v58 = vld [vmem:[#allocation2 + $0x238] sm:$0xf0] }
  0xbb   : > { %v6659_v8 = vpack.c.bf16 %v6270_v5, %v6270_v5  ;;  %6273 = vtanh.f32 %v680_v2  ;;  %v5193_v2 = vld [vmem:[#allocation2 + $0x1bc] sm:$0xf0]  ;;  %v5397_v5 = vld [vmem:[#allocation2 + $0x354] sm:$0xf0]  ;;  %v5340_v7 = vor.u32 %v5970_v62, %v5337_v63  ;;  %v5355_v59 = vld [vmem:[#allocation2 + $0x2f0] sm:$0xf] }
  0xbc   : > { %6275 = vtanh.f32 %v693_v11  ;;  %v5196_v11 = vor.u32 %v5934_v1, %v5193_v2  ;;  %v5975_v62 = vld [vmem:[#allocation2 + $0x2f8] sm:$0xf0]  ;;  %v5958_v63 = vld [vmem:[#allocation2 + $0x274] sm:$0xf]  ;;  %v5056_v1 = vor.u32 %v5900_v45, %v5055_v44  ;;  %v5007_v45 = vld [vmem:[#allocation2 + $0x38] sm:$0xf] }
  0xbd   : > { %1697 = vmatmul.bf16.vlgmr.msrb.gmra.mxu2 %v6659_v8 }
  0xbe   : > { %1793 = vmatpush.bf16.msrb.mxu2 %v5256_v6  ;;  %v621_v6 = vperm.slane %v6653_v51, 5  ;;  %v6006_v51 = vld [vmem:[#allocation2 + $0x3f4] sm:$0xf] }
  0xbf   : > { %v668_v20 = vpop.f32.mrf.mxu2 }
  0xc0   : > { %v6272_v21 = vpop.eup %6271  ;;  %v681_v23 = vpop.f32.mrf.mxu3  ;;  %v5385_v20 = vld [vmem:[#allocation2 + $0x33c] sm:$0xf0] }
  0xc1   : > { %v6274_v24 = vpop.eup %6273  ;;  %v6663_v25 = vpack.c.bf16 %v6272_v21, %v6272_v21  ;;  %v653_v26 = vpop.f32.mrf.mxu1  ;;  %v5481_v23 = vld [vmem:[#allocation2 + $0x3fc] sm:$0xf0]  ;;  %v5388_v28 = vor.u32 %v5982_v19, %v5385_v20  ;;  %v5894_v19 = vld [vmem:[#allocation2 + $0x70] sm:$0xf0] }
  0xc2   : > { %v6665_v30 = vpack.c.bf16 %v6274_v24, %v6274_v24  ;;  %v654_v31 = vadd.f32 %v653_v26, %v617_v14  ;;  %1794 = vmatpush.bf16.msrb.mxu2 %v5244_v15  ;;  %v6276_v43 = vpop.eup %6275  ;;  %v5400_v14 = vor.u32 %v5985_v4, %v5397_v5  ;;  %v5931_v15 = vld [vmem:[#allocation2 + $0x19c] sm:$0xf]  ;;  %v5964_v26 = vld [vmem:[#allocation2 + $0x2a4] sm:$0xf]  ;;  %v5484_v33 = vor.u32 %v6006_v51, %v5481_v23  ;;  %v5043_v5 = vld [vmem:[#allocation2 + $0x80] sm:$0xf] }
  0xc3   : > { %1723 = vmatmul.bf16.vlgmr.msrb.gmra.mxu0 %v6663_v25  ;;  %v6669_v56 = vpack.c.bf16 %v6276_v43, %v6276_v43  ;;  %v5184_v24 = vor.u32 %v5931_v15, %v5181_v16  ;;  %v5376_v43 = vor.u32 %v5979_v35, %v5373_v36  ;;  %v5277_v15 = vld [vmem:[#allocation2 + $0x264] sm:$0xf0]  ;;  %v5945_v51 = vld [vmem:[#allocation2 + $0x208] sm:$0xf0]  ;;  %v5331_v23 = vld [vmem:[#allocation2 + $0x2c0] sm:$0xf] }
  0xc4   : > { %6277 = vtanh.f32 %v654_v31  ;;  %1736 = vmatmul.bf16.vlgmr.msrb.gmra.mxu1 %v6665_v30  ;;  %1819 = vmatpush.bf16.msrb.mxu0 %v5448_v22  ;;  %v5328_v22 = vor.u32 %v5967_v12, %v5325_v13  ;;  %v5169_v31 = vld [vmem:[#allocation2 + $0x18c] sm:$0xf0]  ;;  %v5343_v12 = vld [vmem:[#allocation2 + $0x2d8] sm:$0xf]  ;;  %v5972_v13 = vld [vmem:[#allocation2 + $0x2e0] sm:$0xf0] }
  0xc5   : > { %1832 = vmatpush.bf16.msrb.mxu1 %v5544_v27  ;;  %v5313_v27 = vld [vmem:[#allocation2 + $0x2ac] sm:$0xf0]  ;;  %v5172_v39 = vor.u32 %v5928_v29, %v5169_v31  ;;  %v5344_v20 = vor.u32 %v5972_v13, %v5343_v12  ;;  %v5927_v31 = vld [vmem:[#allocation2 + $0x178] sm:$0xf0]  ;;  %v5882_v12 = vld [vmem:[#allocation2 + $0x10] sm:$0xf0] }
  0xc6   : > { %1795 = vmatpush.bf16.msrb.mxu2 %v5232_v32  ;;  %v5067_v32 = vld [vmem:[#allocation2 + $0xb0] sm:$0xf] }
  0xc7   : > { %v5068_v42 = vor.u32 %v5903_v34, %v5067_v32  ;;  %v5163_v29 = vld [vmem:[#allocation2 + $0x170] sm:$0xf]  ;;  %v5891_v34 = vld [vmem:[#allocation2 + $0x58] sm:$0xf0] }
  0xc8   : > { %1820 = vmatpush.bf16.msrb.mxu0 %v5436_v48  ;;  %v5316_v48 = vor.u32 %v5964_v26, %v5313_v27  ;;  %v5952_v26 = vld [vmem:[#allocation2 + $0x244] sm:$0xf]  ;;  %v5265_v27 = vld [vmem:[#allocation2 + $0x24c] sm:$0xf0] }
  0xc9   : > { %1833 = vmatpush.bf16.msrb.mxu1 %v5532_v37  ;;  %v655_v50 = vpop.f32.mrf.mxu1  ;;  %v6003_v37 = vld [vmem:[#allocation2 + $0x3dc] sm:$0xf]  ;;  %v5268_v36 = vor.u32 %v5952_v26, %v5265_v27  ;;  %v5451_v13 = vld [vmem:[#allocation2 + $0x3b0] sm:$0xf]  ;;  %v5439_v26 = vld [vmem:[#allocation2 + $0x398] sm:$0xf] }
  0xca   : > { %v6278_v55 = vpop.eup %6277  ;;  %1796 = vmatpush.bf16.msrb.mxu2 %v5220_v40  ;;  %v5961_v40 = vld [vmem:[#allocation2 + $0x28c] sm:$0xf]  ;;  %v5472_v47 = vor.u32 %v6003_v37, %v5469_v38  ;;  %v5361_v50 = vld [vmem:[#allocation2 + $0x30c] sm:$0xf0]  ;;  %v5942_v37 = vld [vmem:[#allocation2 + $0x1f0] sm:$0xf0]  ;;  %v5164_v38 = vor.u32 %v5927_v31, %v5163_v29 }
  0xcb   : > { %v6671_v60 = vpack.c.bf16 %v6278_v55, %v6278_v55  ;;  %v5304_v55 = vor.u32 %v5961_v40, %v5301_v41  ;;  %v5966_v40 = vld [vmem:[#allocation2 + $0x2b0] sm:$0xf0]  ;;  %v5175_v29 = vld [vmem:[#allocation2 + $0x188] sm:$0xf] }
  0xcc   : > { %1821 = vmatpush.bf16.msrb.mxu0 %v5424_v46  ;;  %v5976_v46 = vld [vmem:[#allocation2 + $0x304] sm:$0xf]  ;;  %v5930_v31 = vld [vmem:[#allocation2 + $0x190] sm:$0xf0] }
  0xcd   : > { %1834 = vmatpush.bf16.msrb.mxu1 %v5520_v52  ;;  %1710 = vmatmul.bf16.vlgmr.msrb.gmra.mxu3 %v6671_v60  ;;  %v6000_v52 = vld [vmem:[#allocation2 + $0x3c4] sm:$0xf]  ;;  %v5364_v2 = vor.u32 %v5976_v46, %v5361_v50  ;;  %v5939_v50 = vld [vmem:[#allocation2 + $0x1d8] sm:$0xf0] }
  0xce   : > { %1749 = vmatmul.bf16.vlgmr.msra.gmra.mxu2 %v6669_v56  ;;  %1806 = vmatpush.bf16.msrb.mxu3 %v5352_v57  ;;  %v5259_v57 = vld [vmem:[#allocation2 + $0x230] sm:$0xf]  ;;  %v5888_v46 = vld [vmem:[#allocation2 + $0x40] sm:$0xf0] }
  0xcf   : > { %1797 = vmatpush.bf16.msrb.mxu2 %v5208_v61  ;;  %v5260_v4 = vor.u32 %v5951_v58, %v5259_v57  ;;  %v5139_v57 = vld [vmem:[#allocation2 + $0x140] sm:$0xf]  ;;  %v5921_v58 = vld [vmem:[#allocation2 + $0x148] sm:$0xf0] }
  0xd0   : > { %1822 = vmatpush.bf16.msrb.mxu0 %v5412_v0  ;;  %v5289_v0 = vld [vmem:[#allocation2 + $0x27c] sm:$0xf0] }
  0xd1   : > { %1835 = vmatpush.bf16.msrb.mxu1 %v5508_v3  ;;  %v705_v17 = vpop.f32.mrf.mxu1  ;;  %v5460_v3 = vor.u32 %v6000_v52, %v5457_v53  ;;  %v5292_v9 = vor.u32 %v5958_v63, %v5289_v0  ;;  %v5307_v53 = vld [vmem:[#allocation2 + $0x290] sm:$0xf]  ;;  %v5885_v63 = vld [vmem:[#allocation2 + $0x28] sm:$0xf0] }
  0xd2   : > { %v706_v21 = vadd.f32 %v705_v17, %v621_v6  ;;  %1807 = vmatpush.bf16.msrb.mxu3 %v5340_v7  ;;  %v5897_v6 = vld [vmem:[#allocation2 + $0x88] sm:$0xf0]  ;;  %v5356_v7 = vor.u32 %v5975_v62, %v5355_v59  ;;  %v4995_v62 = vld [vmem:[#allocation2 + $0x20] sm:$0xf] }
  0xd3   : > { %1798 = vmatpush.bf16.msrb.mxu2 %v5196_v11  ;;  %1775 = vmatmul.bf16.vlgmr.msra.gmra.mxu0 %v6659_v8  ;;  %v5948_v11 = vld [vmem:[#allocation2 + $0x220] sm:$0xf0]  ;;  %v5044_v16 = vor.u32 %v5897_v6, %v5043_v5  ;;  %v4996_v6 = vor.u32 %v5885_v63, %v4995_v62  ;;  %v6029_v62 = vld [vmem:[%s9962_s7 + $0x28] sm:$0xff]  ;;  %v5403_v63 = vld [vmem:[#allocation2 + $0x350] sm:$0xf] }
  0xd4   : > { %6279 = vtanh.f32 %v706_v21  ;;  %1788 = vmatmul.bf16.vlgmr.msra.gmra.mxu1 %v6671_v60  ;;  %1823 = vmatpush.bf16.msrb.mxu0 %v5400_v14  ;;  %v5955_v14 = vld [vmem:[#allocation2 + $0x25c] sm:$0xf]  ;;  %v5248_v17 = vor.u32 %v5948_v11, %v5247_v10  ;;  %v5960_v5 = vld [vmem:[#allocation2 + $0x280] sm:$0xf0]  ;;  %v4983_v11 = vld [vmem:[#allocation2 + $0x8] sm:$0xf] }
  0xd5   : > { %1836 = vmatpush.bf16.msrb.mxu1 %v5496_v18  ;;  %v5031_v18 = vld [vmem:[#allocation2 + $0x68] sm:$0xf]  ;;  %v5280_v21 = vor.u32 %v5955_v14, %v5277_v15  ;;  %v5999_v15 = vld [vmem:[#allocation2 + $0x3b8] sm:$0xf0] }
  0xd6   : > { %1808 = vmatpush.bf16.msrb.mxu3 %v5328_v22  ;;  %v5235_v22 = vld [vmem:[#allocation2 + $0x200] sm:$0xf] }
  0xd7   : > { %1799 = vmatpush.bf16.msrb.mxu2 %v5184_v24  ;;  %v5969_v24 = vld [vmem:[#allocation2 + $0x2c8] sm:$0xf0]  ;;  %v5236_v32 = vor.u32 %v5945_v51, %v5235_v22  ;;  %v5115_v22 = vld [vmem:[#allocation2 + $0x110] sm:$0xf]  ;;  %v5915_v51 = vld [vmem:[#allocation2 + $0x118] sm:$0xf0] }
  0xd8   : > { %1824 = vmatpush.bf16.msrb.mxu0 %v5388_v28  ;;  %v5032_v28 = vor.u32 %v5894_v19, %v5031_v18  ;;  %v5332_v35 = vor.u32 %v5969_v24, %v5331_v23  ;;  %v5283_v19 = vld [vmem:[#allocation2 + $0x260] sm:$0xf]  ;;  %v5452_v23 = vor.u32 %v5999_v15, %v5451_v13  ;;  %v6017_v15 = vld [vmem:[#allocation2 + $0x448] sm:$0xf0] }
  0xd9   : > { %1837 = vmatpush.bf16.msrb.mxu1 %v5484_v33  ;;  %v707_v49 = vpop.f32.mrf.mxu1  ;;  %v5019_v33 = vld [vmem:[#allocation2 + $0x50] sm:$0xf] }
  0xda   : > { %v6280_v54 = vpop.eup %6279  ;;  %1809 = vmatpush.bf16.msrb.mxu3 %v5316_v48  ;;  %v5223_v48 = vld [vmem:[#allocation2 + $0x1e8] sm:$0xf]  ;;  %v5020_v41 = vor.u32 %v5891_v34, %v5019_v33  ;;  %v5211_v49 = vld [vmem:[#allocation2 + $0x1d0] sm:$0xf]  ;;  %v5954_v34 = vld [vmem:[#allocation2 + $0x250] sm:$0xf0] }
  0xdb   : > { %v6678_v61 = vpack.c.bf16 %v6280_v54, %v6280_v54  ;;  %1800 = vmatpush.bf16.msrb.mxu2 %v5172_v39  ;;  %v5319_v39 = vld [vmem:[#allocation2 + $0x2a8] sm:$0xf]  ;;  %v5224_v44 = vor.u32 %v5942_v37, %v5223_v48  ;;  %v5963_v54 = vld [vmem:[#allocation2 + $0x298] sm:$0xf0]  ;;  %v5212_v59 = vor.u32 %v5939_v50, %v5211_v49  ;;  %v5176_v37 = vor.u32 %v5930_v31, %v5175_v29  ;;  %v5990_v50 = vld [vmem:[#allocation2 + $0x370] sm:$0xf0] }
  0xdc   : > { %1825 = vmatpush.bf16.msrb.mxu0 %v5376_v43  ;;  %v5924_v43 = vld [vmem:[#allocation2 + $0x160] sm:$0xf0]  ;;  %v5308_v0 = vor.u32 %v5963_v54, %v5307_v53  ;;  %v5271_v33 = vld [vmem:[#allocation2 + $0x248] sm:$0xf]  ;;  %v5499_v31 = vld [vmem:[#allocation2 + $0x410] sm:$0xf] }
  0xdd   : > { %1838 = vmatpush.bf16.msrb.mxu1 %v5472_v47  ;;  %1762 = vmatmul.bf16.vlgmr.msra.gmra.mxu3 %v6678_v61  ;;  %v5320_v47 = vor.u32 %v5966_v40, %v5319_v39  ;;  %v6031_v39 = vld [vmem:[%s9962_s7 + $0x38] sm:$0xff]  ;;  %v5427_v40 = vld [vmem:[#allocation2 + $0x380] sm:$0xf]  ;;  %v5415_v49 = vld [vmem:[#allocation2 + $0x368] sm:$0xf] }
  0xde   : > { %1801 = vmatmul.bf16.vlgmr.msrb.gmra.mxu2 %v6663_v25  ;;  %1810 = vmatpush.bf16.msrb.mxu3 %v5304_v55  ;;  %v5008_v55 = vor.u32 %v5888_v46, %v5007_v45  ;;  %v5909_v45 = vld [vmem:[#allocation2 + $0xe8] sm:$0xf0]  ;;  %v5079_v54 = vld [vmem:[#allocation2 + $0xc8] sm:$0xf] }
  0xdf   : > { %1845 = vmatpush.bf16.msra.mxu2 %v5068_v42  ;;  %v5151_v42 = vld [vmem:[#allocation2 + $0x158] sm:$0xf] }
  0xe0   : > { %1826 = vmatpush.bf16.msrb.mxu0 %v5364_v2  ;;  %v5152_v52 = vor.u32 %v5924_v43, %v5151_v42  ;;  %v5936_v2 = vld [vmem:[#allocation2 + $0x1c0] sm:$0xf0]  ;;  %v6039_v42 = vld [vmem:[%s9962_s7 + $0x78] sm:$0xff] }
  0xe1   : > { %1839 = vmatpush.bf16.msrb.mxu1 %v5460_v3  ;;  %v5140_v3 = vor.u32 %v5921_v58, %v5139_v57  ;;  %v5416_v57 = vor.u32 %v5990_v50, %v5415_v49  ;;  %v5547_v58 = vld [vmem:[#allocation2 + $0x470] sm:$0xf] }
  0xe2   : > { %1811 = vmatpush.bf16.msrb.mxu3 %v5292_v9  ;;  %v5918_v9 = vld [vmem:[#allocation2 + $0x130] sm:$0xf0] }
  0xe3   : > { %1846 = vmatpush.bf16.msra.mxu2 %v5056_v1  ;;  %1827 = vmatmul.bf16.vlgmr.msrb.gmra.mxu0 %v6669_v56  ;;  %v5199_v1 = vld [vmem:[#allocation2 + $0x1b8] sm:$0xf]  ;;  %v6070_v49 = vld [vmem:[%s9962_s7 + $0x170] sm:$0xff] }
  0xe4   : > { %1871 = vmatpush.bf16.msra.mxu0 %v5260_v4  ;;  %1840 = vmatmul.bf16.vlgmr.msrb.gmra.mxu1 %v6678_v61  ;;  %v5295_v4 = vld [vmem:[#allocation2 + $0x278] sm:$0xf]  ;;  %v5200_v10 = vor.u32 %v5936_v2, %v5199_v1  ;;  %v6037_v1 = vld [vmem:[%s9962_s7 + $0x68] sm:$0xff] }
  0xe5   : > { %1884 = vmatpush.bf16.msra.mxu1 %v5356_v7  ;;  %v5127_v7 = vld [vmem:[#allocation2 + $0x128] sm:$0xf]  ;;  %v5296_v14 = vor.u32 %v5960_v5, %v5295_v4  ;;  %v5535_v5 = vld [vmem:[#allocation2 + $0x458] sm:$0xf] }
  0xe6   : > { %1812 = vmatpush.bf16.msrb.mxu3 %v5280_v21  ;;  %v5128_v18 = vor.u32 %v5918_v9, %v5127_v7  ;;  %v4984_v21 = vor.u32 %v5882_v12, %v4983_v11  ;;  %v6028_v7 = vld [vmem:[%s9962_s7 + $0x20] sm:$0xff]  ;;  %v5391_v9 = vld [vmem:[#allocation2 + $0x338] sm:$0xf] }
  0xe7   : > { %1847 = vmatpush.bf16.msra.mxu2 %v5044_v16  ;;  %v5187_v16 = vld [vmem:[#allocation2 + $0x1a0] sm:$0xf] }
  0xe8   : > { %1872 = vmatpush.bf16.msra.mxu0 %v5248_v17  ;;  %v5933_v17 = vld [vmem:[#allocation2 + $0x1a8] sm:$0xf0]  ;;  %v6036_v11 = vld [vmem:[%s9962_s7 + $0x60] sm:$0xff] }
  0xe9   : > { %1885 = vmatpush.bf16.msra.mxu1 %v5344_v20  ;;  %v5957_v20 = vld [vmem:[#allocation2 + $0x268] sm:$0xf0]  ;;  %v5188_v24 = vor.u32 %v5933_v17, %v5187_v16  ;;  %v6027_v16 = vld [vmem:[%s9962_s7 + $0x18] sm:$0xff]  ;;  %v5379_v17 = vld [vmem:[#allocation2 + $0x320] sm:$0xf] }
  0xea   : > { %1813 = vmatpush.bf16.msrb.mxu3 %v5268_v36  ;;  %v5284_v27 = vor.u32 %v5957_v20, %v5283_v19  ;;  %v5912_v36 = vld [vmem:[#allocation2 + $0x100] sm:$0xf0]  ;;  %v6035_v19 = vld [vmem:[%s9962_s7 + $0x58] sm:$0xff] }
  0xeb   : > { %1848 = vmatpush.bf16.msra.mxu2 %v5032_v28  ;;  %v5996_v28 = vld [vmem:[#allocation2 + $0x3a0] sm:$0xf0] }
  0xec   : > { %1873 = vmatpush.bf16.msra.mxu0 %v5236_v32  ;;  %v5116_v32 = vor.u32 %v5915_v51, %v5115_v22  ;;  %v5440_v48 = vor.u32 %v5996_v28, %v5439_v26  ;;  %v5511_v22 = vld [vmem:[#allocation2 + $0x428] sm:$0xf]  ;;  %v6014_v51 = vld [vmem:[#allocation2 + $0x430] sm:$0xf0] }
  0xed   : > { %1886 = vmatpush.bf16.msra.mxu1 %v5332_v35  ;;  %1814 = vmatmul.bf16.vlgmr.msrb.gmra.mxu3 %v6665_v30  ;;  %v5103_v35 = vld [vmem:[#allocation2 + $0xf8] sm:$0xf]  ;;  %v5978_v26 = vld [vmem:[#allocation2 + $0x310] sm:$0xf0]  ;;  %v5512_v28 = vor.u32 %v6014_v51, %v5511_v22 }
  0xee   : > { %1858 = vmatpush.bf16.msra.mxu3 %v5164_v38  ;;  %v5272_v38 = vor.u32 %v5954_v34, %v5271_v33  ;;  %v5104_v43 = vor.u32 %v5912_v36, %v5103_v35  ;;  %v6047_v33 = vld [vmem:[%s9962_s7 + $0xb8] sm:$0xff]  ;;  %v6025_v34 = vld [vmem:[%s9962_s7 + $0x8] sm:$0xff] }
  0xef   : > { %1849 = vmatpush.bf16.msra.mxu2 %v5020_v41  ;;  %v5993_v41 = vld [vmem:[#allocation2 + $0x388] sm:$0xf0] }
  0xf0   : > { %1874 = vmatpush.bf16.msra.mxu0 %v5224_v44  ;;  %v5091_v44 = vld [vmem:[#allocation2 + $0xe0] sm:$0xf]  ;;  %v5428_v46 = vor.u32 %v5993_v41, %v5427_v40  ;;  %v6033_v35 = vld [vmem:[%s9962_s7 + $0x48] sm:$0xff]  ;;  %v6063_v41 = vld [vmem:[%s9962_s7 + $0x138] sm:$0xff] }
  0xf1   : > { %1887 = vmatpush.bf16.msra.mxu1 %v5320_v47  ;;  %v6030_v47 = vld [vmem:[%s9962_s7 + $0x30] sm:$0xff]  ;;  %v5092_v53 = vor.u32 %v5909_v45, %v5091_v44  ;;  %v6032_v40 = vld [vmem:[%s9962_s7 + $0x40] sm:$0xff]  ;;  %v6005_v45 = vld [vmem:[#allocation2 + $0x3e8] sm:$0xf0] }
  0xf2   : > { %1859 = vmatpush.bf16.msra.mxu3 %v5152_v52  ;;  %v6038_v52 = vld [vmem:[%s9962_s7 + $0x70] sm:$0xff]  ;;  %v5475_v44 = vld [vmem:[#allocation2 + $0x3e0] sm:$0xf] }
  0xf3   : > { %1850 = vmatpush.bf16.msra.mxu2 %v5008_v55  ;;  %v5906_v55 = vld [vmem:[#allocation2 + $0xd0] sm:$0xf0]  ;;  %v5476_v50 = vor.u32 %v6005_v45, %v5475_v44 }
  0xf4   : > { %1875 = vmatpush.bf16.msra.mxu0 %v5212_v59  ;;  %v6023_v59 = vld [vmem:[#allocation2 + $0x478] sm:$0xf0]  ;;  %v5080_v2 = vor.u32 %v5906_v55, %v5079_v54  ;;  %v6044_v54 = vld [vmem:[%s9962_s7 + $0xa0] sm:$0xff]  ;;  %v6061_v55 = vld [vmem:[%s9962_s7 + $0x128] sm:$0xff] }
  0xf5   : > { %1888 = vmatpush.bf16.msra.mxu1 %v5308_v0  ;;  %v5987_v0 = vld [vmem:[#allocation2 + $0x358] sm:$0xf0] }
  0xf6   : > { %1860 = vmatpush.bf16.msra.mxu3 %v5140_v3  ;;  %v5548_v3 = vor.u32 %v6023_v59, %v5547_v58  ;;  %v5404_v4 = vor.u32 %v5987_v0, %v5403_v63  ;;  %v6043_v58 = vld [vmem:[%s9962_s7 + $0x98] sm:$0xff]  ;;  %v6060_v59 = vld [vmem:[%s9962_s7 + $0x120] sm:$0xff]  ;;  %v6054_v63 = vld [vmem:[%s9962_s7 + $0xf0] sm:$0xff] }
  0xf7   : > { %1851 = vmatpush.bf16.msra.mxu2 %v4996_v6  ;;  %v6020_v6 = vld [vmem:[#allocation2 + $0x460] sm:$0xf0]  ;;  %v6042_v0 = vld [vmem:[%s9962_s7 + $0x90] sm:$0xff] }
  0xf8   : > { %1876 = vmatpush.bf16.msra.mxu0 %v5200_v10  ;;  %v5984_v10 = vld [vmem:[#allocation2 + $0x340] sm:$0xf0]  ;;  %v5536_v12 = vor.u32 %v6020_v6, %v5535_v5  ;;  %v6058_v5 = vld [vmem:[%s9962_s7 + $0x110] sm:$0xff] }
  0xf9   : > { %1889 = vmatpush.bf16.msra.mxu1 %v5296_v14  ;;  %v5392_v13 = vor.u32 %v5984_v10, %v5391_v9  ;;  %v5523_v14 = vld [vmem:[#allocation2 + $0x440] sm:$0xf]  ;;  %v6066_v6 = vld [vmem:[%s9962_s7 + $0x150] sm:$0xff]  ;;  %v6057_v10 = vld [vmem:[%s9962_s7 + $0x108] sm:$0xff] }
  0xfa   : > { %1861 = vmatpush.bf16.msra.mxu3 %v5128_v18  ;;  %v5981_v18 = vld [vmem:[#allocation2 + $0x328] sm:$0xf0]  ;;  %v5524_v20 = vor.u32 %v6017_v15, %v5523_v14  ;;  %v6040_v9 = vld [vmem:[%s9962_s7 + $0x80] sm:$0xff]  ;;  %v6050_v15 = vld [vmem:[%s9962_s7 + $0xd0] sm:$0xff] }
  0xfb   : > { %1852 = vmatpush.bf16.msra.mxu2 %v4984_v21  ;;  %v5380_v21 = vor.u32 %v5981_v18, %v5379_v17  ;;  %v6064_v14 = vld [vmem:[%s9962_s7 + $0x140] sm:$0xff] }
  0xfc   : > { %1877 = vmatpush.bf16.msra.mxu0 %v5188_v24  ;;  %v5367_v24 = vld [vmem:[#allocation2 + $0x308] sm:$0xf] }
  0xfd   : > { %1890 = vmatpush.bf16.msra.mxu1 %v5284_v27  ;;  %v6034_v27 = vld [vmem:[%s9962_s7 + $0x50] sm:$0xff]  ;;  %v5368_v29 = vor.u32 %v5978_v26, %v5367_v24 }
  0xfe   : > { %1853 = vmatmul.bf16.vlgmr.msra.gmra.mxu2 %v6659_v8  ;;  %1862 = vmatpush.bf16.msra.mxu3 %v5116_v32  ;;  %v6011_v32 = vld [vmem:[#allocation2 + $0x418] sm:$0xf0] }
  0xff   : > { %1897 = vmatpush.bf16.msrb.mxu2 %v5452_v23  ;;  %v6026_v23 = vld [vmem:[%s9962_s7 + $0x10] sm:$0xff]  ;;  %v5500_v36 = vor.u32 %v6011_v32, %v5499_v31 }
 0x100   : > { %1878 = vmatpush.bf16.msra.mxu0 %v5176_v37  ;;  %v6008_v37 = vld [vmem:[#allocation2 + $0x400] sm:$0xf0] }
 0x101   : > { %1891 = vmatpush.bf16.msra.mxu1 %v5272_v38  ;;  %v6046_v38 = vld [vmem:[%s9962_s7 + $0xb0] sm:$0xff] }
 0x102   : > { %1863 = vmatpush.bf16.msra.mxu3 %v5104_v43 }
 0x103   : > { %1898 = vmatpush.bf16.msrb.mxu2 %v5440_v48  ;;  %1879 = vmatmul.bf16.vlgmr.msra.gmra.mxu0 %v6663_v25  ;;  %v5487_v48 = vld [vmem:[#allocation2 + $0x3f8] sm:$0xf] }
 0x104   : > { %2440 = vmatpush.bf16.msrb.mxu0 %v6031_v39  ;;  %1892 = vmatmul.bf16.vlgmr.msra.gmra.mxu1 %v6665_v30  ;;  %v6024_v39 = vld [vmem:[%s9962_s7] sm:$0xff]  ;;  %v5488_v43 = vor.u32 %v6008_v37, %v5487_v48 }
 0x105   : > { %2453 = vmatpush.bf16.msrb.mxu1 %v6039_v42  ;;  %v6071_v42 = vld [vmem:[%s9962_s7 + $0x178] sm:$0xff] }
 0x106   : > { %1864 = vmatpush.bf16.msra.mxu3 %v5092_v53  ;;  %v6002_v53 = vld [vmem:[#allocation2 + $0x3d0] sm:$0xf0] }
 0x107   : > { %1899 = vmatpush.bf16.msrb.mxu2 %v5428_v46  ;;  %v6045_v46 = vld [vmem:[%s9962_s7 + $0xa8] sm:$0xff] }
 0x108   : > { %2441 = vmatpush.bf16.msrb.mxu0 %v6030_v47  ;;  %v6062_v47 = vld [vmem:[%s9962_s7 + $0x130] sm:$0xff] }
 0x109   : > { %2454 = vmatpush.bf16.msrb.mxu1 %v6038_v52  ;;  %v5463_v52 = vld [vmem:[#allocation2 + $0x3c8] sm:$0xf] }
 0x10a   : > { %1865 = vmatpush.bf16.msra.mxu3 %v5080_v2  ;;  %v6067_v2 = vld [vmem:[%s9962_s7 + $0x158] sm:$0xff] }
 0x10b   : > { %1900 = vmatpush.bf16.msrb.mxu2 %v5416_v57  ;;  %v5464_v57 = vor.u32 %v6002_v53, %v5463_v52 }
 0x10c   : > { %2442 = vmatpush.bf16.msrb.mxu0 %v6029_v62  ;;  %v6068_v62 = vld [vmem:[%s9962_s7 + $0x160] sm:$0xff] }
 0x10d   : > { %2455 = vmatpush.bf16.msrb.mxu1 %v6037_v1  ;;  %1866 = vmatmul.bf16.vlgmr.msra.gmra.mxu3 %v6671_v60  ;;  %v6059_v1 = vld [vmem:[%s9962_s7 + $0x118] sm:$0xff] }
 0x10e   : > { %1910 = vmatpush.bf16.msrb.mxu3 %v5548_v3  ;;  %v6053_v3 = vld [vmem:[%s9962_s7 + $0xe8] sm:$0xff] }
 0x10f   : > { %1901 = vmatpush.bf16.msrb.mxu2 %v5404_v4  ;;  %v6041_v4 = vld [vmem:[%s9962_s7 + $0x88] sm:$0xff] }
 0x110   : > { %2443 = vmatpush.bf16.msrb.mxu0 %v6028_v7  ;;  %v6052_v7 = vld [vmem:[%s9962_s7 + $0xe0] sm:$0xff] }
 0x111   : > { %2456 = vmatpush.bf16.msrb.mxu1 %v6036_v11  ;;  %v6065_v11 = vld [vmem:[%s9962_s7 + $0x148] sm:$0xff] }
 0x112   : > { %1911 = vmatpush.bf16.msrb.mxu3 %v5536_v12  ;;  %v6051_v12 = vld [vmem:[%s9962_s7 + $0xd8] sm:$0xff] }
 0x113   : > { %1902 = vmatpush.bf16.msrb.mxu2 %v5392_v13  ;;  %v6056_v13 = vld [vmem:[%s9962_s7 + $0x100] sm:$0xff] }
 0x114   : > { %2444 = vmatpush.bf16.msrb.mxu0 %v6027_v16  ;;  %v6049_v16 = vld [vmem:[%s9962_s7 + $0xc8] sm:$0xff] }
 0x115   : > { %2457 = vmatpush.bf16.msrb.mxu1 %v6035_v19 }
 0x116   : > { %1912 = vmatpush.bf16.msrb.mxu3 %v5524_v20  ;;  %v6844_v20 = vld [vmem:[%s9961_s6] sm:$0x7] }
 0x117   : > { %1903 = vmatpush.bf16.msrb.mxu2 %v5380_v21  ;;  %v1684_v51 = vperm.slane %v6844_v20, 1 }
 0x118   : > { %2445 = vmatpush.bf16.msrb.mxu0 %v6026_v23 }
 0x119   : > { %2458 = vmatpush.bf16.msrb.mxu1 %v6034_v27 }
 0x11a   : > { %1913 = vmatpush.bf16.msrb.mxu3 %v5512_v28 }
 0x11b   : > { %1904 = vmatpush.bf16.msrb.mxu2 %v5368_v29 }
 0x11c   : > { %2446 = vmatpush.bf16.msrb.mxu0 %v6025_v34 }
 0x11d   : > { %2459 = vmatpush.bf16.msrb.mxu1 %v6033_v35 }
 0x11e   : > { %1905 = vmatmul.bf16.vlgmr.msrb.gmra.mxu2 %v6669_v56  ;;  %1914 = vmatpush.bf16.msrb.mxu3 %v5500_v36 }
 0x11f   : > { %2466 = vmatpush.bf16.msra.mxu2 %v6047_v33 }
 0x120   : > { %2447 = vmatpush.bf16.msrb.mxu0 %v6024_v39 }
 0x121   : > { %2460 = vmatpush.bf16.msrb.mxu1 %v6032_v40 }
 0x122   : > { %1915 = vmatpush.bf16.msrb.mxu3 %v5488_v43 }
 0x123   : > { %2467 = vmatpush.bf16.msra.mxu2 %v6046_v38  ;;  %2448 = vmatmul.bf16.vlgmr.msrb.gmra.mxu0 %v6659_v8  ;;  %v6069_v8 = vld [vmem:[%s9962_s7 + $0x168] sm:$0xff] }
 0x124   : > { %2492 = vmatpush.bf16.msra.mxu0 %v6063_v41  ;;  %2461 = vmatmul.bf16.vlgmr.msrb.gmra.mxu1 %v6671_v60  ;;  %v6055_v60 = vld [vmem:[%s9962_s7 + $0xf8] sm:$0xff] }
 0x125   : > { %2505 = vmatpush.bf16.msra.mxu1 %v6071_v42 }
 0x126   : > { %1916 = vmatpush.bf16.msrb.mxu3 %v5476_v50 }
 0x127   : > { %2468 = vmatpush.bf16.msra.mxu2 %v6045_v46 }
 0x128   : > { %2493 = vmatpush.bf16.msra.mxu0 %v6062_v47 }
 0x129   : > { %2506 = vmatpush.bf16.msra.mxu1 %v6070_v49 }
 0x12a   : > { %1917 = vmatpush.bf16.msrb.mxu3 %v5464_v57 }
 0x12b   : > { %2469 = vmatpush.bf16.msra.mxu2 %v6044_v54 }
 0x12c   : > { %2494 = vmatpush.bf16.msra.mxu0 %v6061_v55 }
 0x12d   : > { %2507 = vmatpush.bf16.msra.mxu1 %v6069_v8  ;;  %1918 = vmatmul.bf16.vlgmr.msrb.gmra.mxu3 %v6678_v61 }
 0x12e   : > { %2479 = vmatpush.bf16.msra.mxu3 %v6055_v60 }
 0x12f   : > { %2470 = vmatpush.bf16.msra.mxu2 %v6043_v58 }
 0x130   : > { %2495 = vmatpush.bf16.msra.mxu0 %v6060_v59 }
 0x131   : > { %2508 = vmatpush.bf16.msra.mxu1 %v6068_v62 }
 0x132   : > { %2480 = vmatpush.bf16.msra.mxu3 %v6054_v63 }
 0x133   : > { %2471 = vmatpush.bf16.msra.mxu2 %v6042_v0 }
 0x134   : > { %2496 = vmatpush.bf16.msra.mxu0 %v6059_v1 }
 0x135   : > { %2509 = vmatpush.bf16.msra.mxu1 %v6067_v2 }
 0x136   : > { %2481 = vmatpush.bf16.msra.mxu3 %v6053_v3 }
 0x137   : > { %2472 = vmatpush.bf16.msra.mxu2 %v6041_v4 }
 0x138   : > { %2497 = vmatpush.bf16.msra.mxu0 %v6058_v5 }
 0x139   : > { %2510 = vmatpush.bf16.msra.mxu1 %v6066_v6 }
 0x13a   : > { %2482 = vmatpush.bf16.msra.mxu3 %v6052_v7 }
 0x13b   : > { %2473 = vmatpush.bf16.msra.mxu2 %v6040_v9 }
 0x13c   : > { %2498 = vmatpush.bf16.msra.mxu0 %v6057_v10 }
 0x13d   : > { %2511 = vmatpush.bf16.msra.mxu1 %v6065_v11 }
 0x13e   : > { %2474 = vmatmul.bf16.vlgmr.msra.gmra.mxu2 %v6663_v25  ;;  %2483 = vmatpush.bf16.msra.mxu3 %v6051_v12  ;;  %v6048_v25 = vld [vmem:[%s9962_s7 + $0xc0] sm:$0xff] }
 0x140   : > { %2499 = vmatpush.bf16.msra.mxu0 %v6056_v13  ;;  %v1698_v17 = vpop.f32.mrf.mxu2  ;;  %v1724_v18 = vpop.f32.mrf.mxu0 }
 0x141   : > { %2512 = vmatpush.bf16.msra.mxu1 %v6064_v14  ;;  %v1737_v19 = vpop.f32.mrf.mxu1 }
 0x142   : > { %2484 = vmatpush.bf16.msra.mxu3 %v6050_v15 }
 0x143   : > { %2500 = vmatmul.bf16.vlgmr.msra.gmra.mxu0 %v6669_v56 }
 0x144   : > { %2513 = vmatmul.bf16.vlgmr.msra.gmra.mxu1 %v6678_v61  ;;  %v1683_v61 = vperm.slane %v6844_v20, 0 }
 0x146   : > { %2485 = vmatpush.bf16.msra.mxu3 %v6049_v16  ;;  %v1699_v23 = vadd.f32 %v1698_v17, %v1683_v61 }
 0x148   : > { %v1700_v21 = vpop.f32.mrf.mxu2  ;;  %v1726_v56 = vpop.f32.mrf.mxu0 }
 0x149   : > { %v1739_v22 = vpop.f32.mrf.mxu1 }
 0x14a   : > { %2486 = vmatpush.bf16.msra.mxu3 %v6048_v25 }
 0x14d   : > { %2487 = vmatmul.bf16.vlgmr.msra.gmra.mxu3 %v6665_v30 }
 0x150   : > { %v1711_v24 = vpop.f32.mrf.mxu3  ;;  %v1776_v26 = vpop.f32.mrf.mxu0 }
 0x151   : > { %v1712_v27 = vadd.f32 %v1711_v24, %v1699_v23  ;;  %v1750_v28 = vpop.f32.mrf.mxu2  ;;  %v1777_v29 = vadd.f32 %v1776_v26, %v1684_v51  ;;  %v1789_v31 = vpop.f32.mrf.mxu1 }
 0x153   : > { %v1725_v30 = vadd.f32 %v1724_v18, %v1712_v27  ;;  %v1790_v32 = vadd.f32 %v1789_v31, %v1777_v29  ;;  %v1685_v31 = vperm.slane %v6844_v20, 2 }
 0x155   : > { %v1738_v33 = vadd.f32 %v1737_v19, %v1725_v30 }
 0x157   : > { %v1751_v34 = vadd.f32 %v1750_v28, %v1738_v33 }
 0x158   : > { %v1713_v35 = vpop.f32.mrf.mxu3  ;;  %v1778_v36 = vpop.f32.mrf.mxu0 }
 0x159   : > { %v1752_v48 = vpop.f32.mrf.mxu2  ;;  %v1791_v37 = vpop.f32.mrf.mxu1 }
 0x160   : > { %v1763_v38 = vpop.f32.mrf.mxu3  ;;  %v1828_v39 = vpop.f32.mrf.mxu0 }
 0x161   : > { %v6848_v40 = vadd.f32 %v1763_v38, %v1751_v34  ;;  %v1802_v41 = vpop.f32.mrf.mxu2  ;;  %v1841_v42 = vpop.f32.mrf.mxu1 }
 0x162   : > { %v1803_v43 = vadd.f32 %v1802_v41, %v1790_v32 }
 0x163   : > { %v6851_v44 = vmul.f32 0.70710677, %v6848_v40 }
 0x165   : > { %v1929_v45 = vmul.f32 %v6851_v44, %v6851_v44 }
 0x167   : > { %v6855_v46 = vmin.f32 %v1929_v45, 16.0 }
 0x168   : > { %v1765_v47 = vpop.f32.mrf.mxu3  ;;  %v1830_v49 = vpop.f32.mrf.mxu0 }
 0x169   : > { %v1942_v50 = vmul.f32 3.8918573e-05, %v6855_v46  ;;  %v1804_v52 = vpop.f32.mrf.mxu2  ;;  %v1843_v53 = vpop.f32.mrf.mxu1  ;;  %v1931_v63 = vmul.f32 2.1237322e-06, %v6855_v46 }
 0x16b   : > { %v1943_v54 = vadd.f32 0.001143296, %v1942_v50  ;;  %v1932_v3 = vadd.f32 0.00028619796, %v1931_v63 }
 0x16d   : > { %v1944_v55 = vmul.f32 %v1943_v54, %v6855_v46  ;;  %v1933_v9 = vmul.f32 %v1932_v3, %v6855_v46 }
 0x16f   : > { %v1945_v8 = vadd.f32 0.014752088, %v1944_v55  ;;  %v1934_v25 = vadd.f32 0.0036580483, %v1933_v9 }
 0x170   : > { %v1815_v57 = vpop.f32.mrf.mxu3 }
 0x171   : > { %v1946_v60 = vmul.f32 %v1945_v8, %v6855_v46  ;;  %v1816_v58 = vadd.f32 %v1815_v57, %v1803_v43  ;;  %v1935_v56 = vmul.f32 %v1934_v25, %v6855_v46 }
 0x173   : > { %v1947_v59 = vadd.f32 0.112945676, %v1946_v60  ;;  %v1829_v62 = vadd.f32 %v1828_v39, %v1816_v58  ;;  %v1936_v28 = vadd.f32 0.05243302, %v1935_v56 }
 0x175   : > { %v1948_v0 = vmul.f32 %v1947_v59, %v6855_v46  ;;  %v6862_v1 = vadd.f32 %v1841_v42, %v1829_v62  ;;  %v1937_v34 = vmul.f32 %v1936_v28, %v6855_v46 }
 0x177   : > { %v1949_v2 = vadd.f32 0.4994258, %v1948_v0  ;;  %v6865_v4 = vmul.f32 0.70710677, %v6862_v1  ;;  %v1938_v42 = vadd.f32 0.18741608, %v1937_v34 }
 0x178   : > { %v1817_v5 = vpop.f32.mrf.mxu3 }
 0x179   : > { %v1950_v6 = vmul.f32 %v1949_v2, %v6855_v46  ;;  %v1969_v7 = vmul.f32 %v6865_v4, %v6865_v4  ;;  %v1939_v20 = vmul.f32 %v1938_v42, %v6855_v46 }
 0x17b   : > { %v1951_v10 = vadd.f32 1.0, %v1950_v6  ;;  %v1970_v11 = vmin.f32 %v1969_v7, 16.0  ;;  %v1940_v60 = vadd.f32 1.1283791, %v1939_v20 }
 0x17d   : > { %v1971_v13 = vmul.f32 2.1237322e-06, %v1970_v11  ;;  %v1982_v14 = vmul.f32 3.8918573e-05, %v1970_v11  ;;  %6281 = vrcp.f32 %v1951_v10  ;;  %v1963_v55 = vand.u32 2147483648, %v1951_v10 }
 0x17e   : > { %vm1957_vm3 = vweird.f32 %v1951_v10  ;;  %v1961_v8 = vand.u32 2147483647, %v1951_v10  ;;  %v1941_v46 = vmul.f32 %v1940_v60, %v6851_v44  ;;  %v6404_v60 = vmov 0  }
 0x17f   : > { %v1972_v17 = vadd.f32 0.00028619796, %v1971_v13  ;;  %v1983_v18 = vadd.f32 0.001143296, %v1982_v14  ;;  %v1964_v63 = vor.u32 1.1754944e-38, %v1963_v55  ;;  %6208 = vset.pattern.permute.xlu1 %v6404_v60  ;;  %6210 = vset.pattern.permute.xlu2 %v6404_v60 }
 0x180   : > { %v1880_v12 = vpop.f32.mrf.mxu0  ;;  %vm1962_vm5 = vcmp.eq.f32.partialorder %v1961_v8, 8.507059e+37  ;;  %v6900_v8 = vld [vmem:[%s6894_s26] sm:$0xff]  ;;  %6209 = vset.pattern.permute.xlu0 %v6404_v60 }
 0x181   : > { %v1854_v15 = vpop.f32.mrf.mxu2  ;;  %v1893_v16 = vpop.f32.mrf.mxu1  ;;  %v1973_v19 = vmul.f32 %v1972_v17, %v1970_v11  ;;  %v1984_v21 = vmul.f32 %v1983_v18, %v1970_v11  ;;  %2778 = vperm.xlu1 %6208, %v6900_v8  }
 0x182   : > { %v1855_v36 = vadd.f32 %v1854_v15, %v1685_v31 }
 0x183   : > { %v1985_v22 = vadd.f32 0.014752088, %v1984_v21  ;;  %v1974_v61 = vadd.f32 0.0036580483, %v1973_v19  ;;  %v6282_v23 = vpop.eup %6281 }
 0x184   : > { %v1953_v30 = vmul.f32 %v6282_v23, %v1951_v10  ;;  %vm1958_vm2 = vweird.f32 %v6282_v23 }
 0x185   : > { %v1986_v24 = vmul.f32 %v1985_v22, %v1970_v11  ;;  %v1975_v32 = vmul.f32 %v1974_v61, %v1970_v11  ;;  %vm1959_vm4 = vmor %vm1957_vm3, %vm1958_vm2 }
 0x186   : > { %v1954_v48 = vsub.f32 1.0, %v1953_v30 }
 0x187   : > { %v1987_v29 = vadd.f32 0.112945676, %v1986_v24  ;;  %v1976_v37 = vadd.f32 0.05243302, %v1975_v32  ;;  %v1923_v24 = vmul.f32 0.5, %v6848_v40 }
 0x188   : > { %v1882_v51 = vpop.f32.mrf.mxu0  ;;  %v1955_v47 = vmul.f32 %v6282_v23, %v1954_v48 }
 0x189   : > { %v1856_v26 = vpop.f32.mrf.mxu2  ;;  %v1895_v27 = vpop.f32.mrf.mxu1  ;;  %v1988_v33 = vmul.f32 %v1987_v29, %v1970_v11  ;;  %v1977_v49 = vmul.f32 %v1976_v37, %v1970_v11  ;;  %v1924_v51 = vmul.f32 0.5, %v6862_v1 }
 0x18a   : > { %v1956_v52 = vadd.f32 %v6282_v23, %v1955_v47  ;;  %v2151_v47 = vld [vmem:[%s9963_s8] sm:$0x1] }
 0x18b   : > { %v1989_v35 = vadd.f32 0.4994258, %v1988_v33  ;;  %v1978_v53 = vadd.f32 0.18741608, %v1977_v49 }
 0x18c   : > { %v1960_v58 = vsel %vm1959_vm4, %v6282_v23, %v1956_v52 }
 0x18d   : > { %v1990_v39 = vmul.f32 %v1989_v35, %v1970_v11  ;;  %v1979_v59 = vmul.f32 %v1978_v53, %v1970_v11  ;;  %v1965_v6 = vsel %vm1962_vm5, %v1964_v63, %v1960_v58 }
 0x18e   : > { %v1966_v14 = vmul.f32 %v1965_v6, %v1941_v46  ;;  %v6908_v46 = vld [vmem:[%s6894_s26 + $0x18] sm:$0xff] }
 0x18f   : > { %v1991_v43 = vadd.f32 1.0, %v1990_v39  ;;  %2793 = vperm.xlu1 %6208, %v6908_v46  }
 0x190   : > { %v1867_v38 = vpop.f32.mrf.mxu3  ;;  %v5549_v19 = vclamps-f32 %v1966_v14, 1.0 }
 0x191   : > { %v1868_v41 = vadd.f32 %v1867_v38, %v1855_v36  ;;  %6283 = vrcp.f32 %v1991_v43  ;;  %v2003_v7 = vand.u32 2147483648, %v1991_v43  ;;  %v2001_v13 = vand.u32 2147483647, %v1991_v43 }
 0x192   : > { %vm1997_vm7 = vweird.f32 %v1991_v43  ;;  %v2049_v61 = vadd.f32 1.0, %v5549_v19 }
 0x193   : > { %v1881_v45 = vadd.f32 %v1880_v12, %v1868_v41  ;;  %v1980_v12 = vadd.f32 1.1283791, %v1979_v59  ;;  %v2004_v11 = vor.u32 1.1754944e-38, %v2003_v7  ;;  %vm2002_vm9 = vcmp.eq.f32.partialorder %v2001_v13, 8.507059e+37 }
 0x194   : > { %v2052_v28 = vmul.f32 %v2049_v61, %v1923_v24  ;;  %v6922_v24 = vld [vmem:[%s6894_s26 + $0x40] sm:$0xff] }
 0x195   : > { %v1894_v50 = vadd.f32 %v1893_v16, %v1881_v45  ;;  %v1981_v16 = vmul.f32 %v1980_v12, %v6865_v4  ;;  %v2518_v12 = vld [vmem:[%s514_s21] sm:$0x1] }
 0x197   : > { %v6284_v57 = vpop.eup %6283 }
 0x198   : > { %v1869_v54 = vpop.f32.mrf.mxu3  ;;  %v1993_v62 = vmul.f32 %v6284_v57, %v1991_v43  ;;  %vm1998_vm6 = vweird.f32 %v6284_v57 }
 0x199   : > { %vm1999_vm8 = vmor %vm1997_vm7, %vm1998_vm6 }
 0x19a   : > { %v1994_v2 = vsub.f32 1.0, %v1993_v62 }
 0x19c   : > { %v1995_v10 = vmul.f32 %v6284_v57, %v1994_v2 }
 0x19e   : > { %v1996_v15 = vadd.f32 %v6284_v57, %v1995_v10 }
 0x1a0   : > { %v2449_v0 = vpop.f32.mrf.mxu0  ;;  %v2000_v25 = vsel %vm1999_vm8, %v6284_v57, %v1996_v15  ;;  %vm4740_vm8 = vcmask 130048  }
 0x1a1   : > { %v1906_v3 = vpop.f32.mrf.mxu2  ;;  %v6875_v5 = vpop.f32.mrf.mxu1  ;;  %v2005_v17 = vsel %vm2002_vm9, %v2004_v11, %v2000_v25  ;;  %v2450_v53 = vadd.f32 %v2449_v0, %v2151_v47  ;;  %v6970_v47 = vld [vmem:[%s6894_s26 + $0x38] sm:$0xff] }
 0x1a2   : > { %v1907_v9 = vadd.f32 %v1906_v3, %v1894_v50  ;;  %v2006_v44 = vmul.f32 %v2005_v17, %v1981_v16  ;;  %v6916_v16 = vld [vmem:[%s6894_s26 + $0x28] sm:$0xff] }
 0x1a3   : > { %v2463_v62 = vadd.f32 %v6875_v5, %v2450_v53  ;;  %2803 = vperm.xlu1 %6208, %v6916_v16  }
 0x1a4   : > { %v5550_v22 = vclamps-f32 %v2006_v44, 1.0 }
 0x1a6   : > { %v2050_v23 = vadd.f32 1.0, %v5550_v22 }
 0x1a8   : > { %v2451_v18 = vpop.f32.mrf.mxu0  ;;  %v2053_v26 = vmul.f32 %v2050_v23, %v1924_v51 }
 0x1a9   : > { %v1908_v21 = vpop.f32.mrf.mxu2  ;;  %v2464_v56 = vpop.f32.mrf.mxu1 }
 0x1aa   : > { %v2768_v4 = vrot.slane %v2053_v26, 7 }
 0x1ab   : > { %2818 = vperm.xlu1 %6208, %v6922_v24  }
 0x1ac   : > { %v6886_v30 = vsel %vm2770_vm10, %v2052_v28, %v2768_v4 }
 0x1b0   : > { %v1919_v27 = vpop.f32.mrf.mxu3 }
 0x1b1   : > { %v6881_v29 = vadd.f32 %v1919_v27, %v1907_v9 }
 0x1b3   : > { %v6884_v31 = vmul.f32 0.70710677, %v6881_v29  ;;  %v1925_v28 = vmul.f32 0.5, %v6881_v29  ;;  %v6942_v29 = vld [vmem:[%s6894_s26 + $0xa0] sm:$0xff] }
 0x1b5   : > { %v2009_v32 = vmul.f32 %v6884_v31, %v6884_v31 }
 0x1b7   : > { %v2010_v1 = vmin.f32 %v2009_v32, 16.0 }
 0x1b8   : > { %v1921_v33 = vpop.f32.mrf.mxu3 }
 0x1b9   : > { %v2011_v34 = vmul.f32 2.1237322e-06, %v2010_v1  ;;  %v2022_v40 = vmul.f32 3.8918573e-05, %v2010_v1 }
 0x1bb   : > { %v2012_v35 = vadd.f32 0.00028619796, %v2011_v34  ;;  %v2023_v36 = vadd.f32 0.001143296, %v2022_v40  ;;  %v6934_v34 = vld [vmem:[%s6894_s26 + $0x70] sm:$0xff]  ;;  %v6938_v40 = vld [vmem:[%s6894_s26 + $0x88] sm:$0xff] }
 0x1bd   : > { %v2013_v48 = vmul.f32 %v2012_v35, %v2010_v1  ;;  %v2024_v37 = vmul.f32 %v2023_v36, %v2010_v1  ;;  %v6946_v35 = vld [vmem:[%s6894_s26 + $0xb8] sm:$0xff]  ;;  %v6950_v36 = vld [vmem:[%s6894_s26 + $0xd0] sm:$0xff] }
 0x1bf   : > { %v2025_v42 = vadd.f32 0.014752088, %v2024_v37  ;;  %v2014_v43 = vadd.f32 0.0036580483, %v2013_v48  ;;  %v9975_v48 = vmov 1  }
 0x1c0   : > { %v2501_v38 = vpop.f32.mrf.mxu0 }
 0x1c1   : > { %v2475_v39 = vpop.f32.mrf.mxu2  ;;  %v2514_v41 = vpop.f32.mrf.mxu1  ;;  %v2026_v45 = vmul.f32 %v2025_v42, %v2010_v1  ;;  %v2015_v50 = vmul.f32 %v2014_v43, %v2010_v1  ;;  %v6962_v43 = vld [vmem:[%s6894_s26 + $0x10] sm:$0xff] }
 0x1c2   : > { %v2476_v2 = vadd.f32 %v2475_v39, %v2463_v62  ;;  %2788 = vperm.xlu2 %6210, %v6962_v43  }
 0x1c3   : > { %v2027_v49 = vadd.f32 0.112945676, %v2026_v45  ;;  %v2016_v58 = vadd.f32 0.05243302, %v2015_v50  ;;  %v6966_v45 = vld [vmem:[%s6894_s26 + $0x20] sm:$0xff]  ;;  %v6974_v50 = vld [vmem:[%s6894_s26 + $0x50] sm:$0xff] }
 0x1c5   : > { %v2028_v20 = vmul.f32 %v2027_v49, %v2010_v1  ;;  %v2017_v0 = vmul.f32 %v2016_v58, %v2010_v1 }
 0x1c7   : > { %v2029_v57 = vadd.f32 0.4994258, %v2028_v20  ;;  %v2018_v7 = vadd.f32 0.18741608, %v2017_v0 }
 0x1c8   : > { %v2503_v52 = vpop.f32.mrf.mxu0 }
 0x1c9   : > { %v2477_v54 = vpop.f32.mrf.mxu2  ;;  %v2516_v55 = vpop.f32.mrf.mxu1  ;;  %v2030_v59 = vmul.f32 %v2029_v57, %v2010_v1  ;;  %v2019_v13 = vmul.f32 %v2018_v7, %v2010_v1 }
 0x1ca   : > { %2798 = vperm.xlu2 %6210, %v6966_v45   ;;  %v6980_v55 = vld [vmem:[%s6894_s26 + $0x68] sm:$0xff] }
 0x1cb   : > { %v2031_v63 = vadd.f32 1.0, %v2030_v59  ;;  %v2020_v19 = vadd.f32 1.1283791, %v2019_v13 }
 0x1cd   : > { %6285 = vrcp.f32 %v2031_v63  ;;  %v2043_v18 = vand.u32 2147483648, %v2031_v63  ;;  %v2041_v21 = vand.u32 2147483647, %v2031_v63  ;;  %vm2037_vm13 = vweird.f32 %v2031_v63 }
 0x1ce   : > { %v2021_v61 = vmul.f32 %v2020_v19, %v6884_v31  ;;  %v6927_v31 = vld [vmem:[%s6894_s26 + $0x58] sm:$0xff] }
 0x1cf   : > { %v2044_v22 = vor.u32 1.1754944e-38, %v2043_v18  ;;  %vm2042_vm15 = vcmp.eq.f32.partialorder %v2041_v21, 8.507059e+37  ;;  %2833 = vperm.xlu1 %6208, %v6927_v31  }
 0x1d0   : > { %v2488_v3 = vpop.f32.mrf.mxu3 }
 0x1d1   : > { %v2489_v6 = vadd.f32 %v2488_v3, %v2476_v2 }
 0x1d2   : > { %2813 = vperm.xlu2 %6210, %v6970_v47  }
 0x1d3   : > { %v2502_v9 = vadd.f32 %v2501_v38, %v2489_v6  ;;  %v6286_v5 = vpop.eup %6285  ;;  %v6988_v6 = vld [vmem:[%s6894_s26 + $0x80] sm:$0xff] }
 0x1d4   : > { %v2033_v14 = vmul.f32 %v6286_v5, %v2031_v63  ;;  %vm2038_vm12 = vweird.f32 %v6286_v5 }
 0x1d5   : > { %v2515_v10 = vadd.f32 %v2514_v41, %v2502_v9  ;;  %vm2039_vm14 = vmor %vm2037_vm13, %vm2038_vm12 }
 0x1d6   : > { %v2034_v25 = vsub.f32 1.0, %v2033_v14  ;;  %v7008_v14 = vld [vmem:[%s6894_s26 + $0xc8] sm:$0xff] }
 0x1d7   : > { %v2519_v15 = vadd.f32 %v2518_v12, %v2515_v10  ;;  %2848 = vperm.xlu1 %6208, %v6934_v34   ;;  %v6996_v12 = vld [vmem:[%s6894_s26 + $0x98] sm:$0xff] }
 0x1d8   : > { %v2490_v11 = vpop.f32.mrf.mxu3  ;;  %v2035_v44 = vmul.f32 %v6286_v5, %v2034_v25  ;;  %v7019_v25 = vld [vmem:[%s6894_s26 + $0xf8] sm:$0xff] }
 0x1d9   : > { %v2521_v17 = vsel %vm2520_vm11, %v2519_v15, -inf  ;;  %v7015_v11 = vld [vmem:[%s6894_s26 + $0xe0] sm:$0xff] }
 0x1da   : > { %2522 = vmax.xlane.f32.xlu0 %v2521_v17  ;;  %v2036_v56 = vadd.f32 %v6286_v5, %v2035_v44  ;;  %2828 = vperm.xlu2 %6210, %v6974_v50  }
 0x1dc   : > { %v2040_v51 = vsel %vm2039_vm14, %v6286_v5, %v2036_v56  ;;  %v7002_v5 = vld [vmem:[%s6894_s26 + $0xb0] sm:$0xff] }
 0x1dd   : > { %v2045_v23 = vsel %vm2042_vm15, %v2044_v22, %v2040_v51  ;;  %v2546_v51 = vlaneseq }
 0x1de   : > { %v2046_v26 = vmul.f32 %v2045_v23, %v2021_v61 }
 0x1df   : > { %2863 = vperm.xlu1 %6208, %v6938_v40   ;;  %v7046_v23 = vand.u32 127, %v2546_v51 }
 0x1e0   : > { %v5551_v27 = vclamps-f32 %v2046_v26, 1.0 }
 0x1e2   : > { %v2051_v4 = vadd.f32 1.0, %v5551_v27  ;;  %2843 = vperm.xlu2 %6210, %v6980_v55  }
 0x1e4   : > { %v2054_v32 = vmul.f32 %v2051_v4, %v1925_v28 }
 0x1e6   : > { %v2769_v1 = vrot.slane %v2054_v32, 6 }
 0x1e7   : > { %2878 = vperm.xlu1 %6208, %v6942_v29  }
 0x1e8   : > { %v6931_v33 = vsel %vm2772_vm0, %v6886_v30, %v2769_v1  ;;  %v6954_v30 = vld [vmem:[%s6894_s26 + $0xe8] sm:$0xff] }
 0x1e9   : > { %v7051_v1 = vld [vmem:[%s6894_s26 + $0x8] sm:$0xff] }
 0x1ea   : > { %2858 = vperm.xlu2 %6210, %v6988_v6  }
 0x1ef   : > { %2893 = vperm.xlu1 %6208, %v6946_v35  }
 0x1f2   : > { %2873 = vperm.xlu2 %6210, %v6996_v12  }
 0x1f3   : > { %v6977_v53 = vpop.permute.xlu1 %2778 }
 0x1f7   : > { %2908 = vperm.xlu1 %6208, %v6950_v36  }
 0x1fa   : > { %2888 = vperm.xlu2 %6210, %v7002_v5  }
 0x1ff   : > { %2923 = vperm.xlu1 %6208, %v6954_v30  }
 0x201   : > { %v6990_v7 = vpop.permute.xlu1 %2793 }
 0x202   : > { %2903 = vperm.xlu2 %6210, %v7008_v14  }
 0x207   : > { %6211 = vset.pattern.permute.xlu1 %v9975_v48 }
 0x208   : > { %3147 = vperm.xlu1 %6211, %v6900_v8  }
 0x20a   : > { %2918 = vperm.xlu2 %6210, %v7015_v11  }
 0x210   : > { %3159 = vperm.xlu1 %6211, %v6908_v46  }
 0x212   : > { %2933 = vperm.xlu2 %6210, %v7019_v25  }
 0x215   : > { %v6999_v10 = vpop.permute.xlu1 %2803 }
 0x21a   : > { %6213 = vset.pattern.permute.xlu2 %v9975_v48 }
 0x21b   : > { %3155 = vperm.xlu2 %6213, %v6962_v43  }
 0x21d   : > { %v7005_v13 = vpop.permute.xlu1 %2818 }
 0x223   : > { %3163 = vperm.xlu2 %6213, %v6966_v45  }
 0x22b   : > { %3175 = vperm.xlu2 %6213, %v6970_v47  }
 0x233   : > { %3187 = vperm.xlu2 %6213, %v6974_v50  }
 0x23b   : > { %3199 = vperm.xlu2 %6213, %v6980_v55  }
 0x243   : > { %3211 = vperm.xlu2 %6213, %v6988_v6  }
 0x24b   : > { %6214 = vset.pattern.permute.xlu2 %v6404_v60  ;;  %v7055_v60 = vld [vmem:[%s6894_s26 + $0x30] sm:$0xff] }
 0x24d   : > { %v2523_v37 = vpop.xlane.xlu0 %2522 }
 0x24e   : > { %v2524_v38 = vsub.f32 %v2519_v15, %v2523_v37  ;;  %v7012_v15 = vpop.permute.xlu1 %2833  ;;  %v7060_v37 = vld [vmem:[%s6894_s26 + $0x48] sm:$0xff] }
 0x250   : > { %v2525_v39 = vmul.f32 1.442695, %v2524_v38  ;;  %v7065_v38 = vld [vmem:[%s6894_s26 + $0x60] sm:$0xff] }
 0x252   : > { %6287 = vpow2.f32 %v2525_v39  ;;  %v7070_v39 = vld [vmem:[%s6894_s26 + $0x78] sm:$0xff] }
 0x256   : > { %v7021_v17 = vpop.permute.xlu1 %2848 }
 0x258   : > { %v6288_v41 = vpop.eup %6287 }
 0x259   : > { %v2527_v42 = vsel %vm2520_vm11, %v6288_v41, 0.0 }
 0x25a   : > { %2528 = vadd.xlane.f32.xlu0 %v2527_v42  ;;  %v7078_v42 = vpop.permute.xlu2 %2788 }
 0x25e   : > { %v7025_v18 = vpop.permute.xlu1 %2863 }
 0x266   : > { %v7029_v19 = vpop.permute.xlu1 %2878 }
 0x267   : > { %10055 = vst [vmem:[#allocation13_spill] sm:$0xff] %v7029_v19 }
 0x26e   : > { %v7032_v44 = vpop.permute.xlu1 %2893  ;;  %2783 = vperm.xlu0 %6209, %v7051_v1  }
 0x26f   : > { %10056 = vst [vmem:[#allocation14_spill] sm:$0xff] %v7032_v44 }
 0x276   : > { %v7035_v21 = vpop.permute.xlu1 %2908  ;;  %2808 = vperm.xlu0 %6209, %v7055_v60  }
 0x277   : > { %10057 = vst [vmem:[#allocation15_spill] sm:$0xff] %v7035_v21 }
 0x27e   : > { %v7038_v56 = vpop.permute.xlu1 %2923  ;;  %2823 = vperm.xlu0 %6209, %v7060_v37  }
 0x27f   : > { %10058 = vst [vmem:[#allocation16_spill] sm:$0xff] %v7038_v56 }
 0x286   : > { %v7041_v22 = vpop.permute.xlu1 %3147  ;;  %2838 = vperm.xlu0 %6209, %v7065_v38  }
 0x287   : > { %10059 = vst [vmem:[#allocation17_spill] sm:$0xff] %v7041_v22  ;;  %v9992_v22 = vmov 3  }
 0x28e   : > { %v7044_v61 = vpop.permute.xlu1 %3159  ;;  %2853 = vperm.xlu0 %6209, %v7070_v39  }
 0x28f   : > { %10060 = vst [vmem:[#allocation18_spill] sm:$0xff] %v7044_v61 }
 0x2cd   : > { %v2529_v49 = vpop.xlane.xlu0 %2528 }
 0x2ce   : > { %6289 = vrcp.f32 %v2529_v49  ;;  %v2541_v57 = vand.u32 2147483648, %v2529_v49  ;;  %v2539_v59 = vand.u32 2147483647, %v2529_v49  ;;  %vm2535_vm2 = vweird.f32 %v2529_v49 }
 0x2d0   : > { %v2542_v63 = vor.u32 1.1754944e-38, %v2541_v57  ;;  %vm2540_vm4 = vcmp.eq.f32.partialorder %v2539_v59, 8.507059e+37 }
 0x2d4   : > { %v6290_v20 = vpop.eup %6289 }
 0x2d5   : > { %v2531_v52 = vmul.f32 %v6290_v20, %v2529_v49  ;;  %vm2536_vm1 = vweird.f32 %v6290_v20  ;;  %v7080_v49 = vpop.permute.xlu2 %2798 }
 0x2d6   : > { %vm2537_vm3 = vmor %vm2535_vm2, %vm2536_vm1 }
 0x2d7   : > { %v2532_v54 = vsub.f32 1.0, %v2531_v52 }
 0x2d9   : > { %v2533_v58 = vmul.f32 %v6290_v20, %v2532_v54  ;;  %v7089_v54 = vld [vmem:[%s6894_s26 + $0xc0] sm:$0xff] }
 0x2da   : > { %10061 = vst [vmem:[#allocation19_spill] sm:$0xff] %v7089_v54 }
 0x2db   : > { %v2534_v62 = vadd.f32 %v6290_v20, %v2533_v58  ;;  %v7095_v58 = vld [vmem:[%s6894_s26 + $0xd8] sm:$0xff] }
 0x2dd   : > { %v2538_v0 = vsel %vm2537_vm3, %v6290_v20, %v2534_v62  ;;  %v7083_v20 = vld [vmem:[%s6894_s26 + $0xa8] sm:$0xff]  ;;  %v7086_v52 = vpop.permute.xlu2 %2813 }
 0x2de   : > { %v2543_v2 = vsel %vm2540_vm4, %v2542_v63, %v2538_v0  ;;  %v7103_v63 = vld [vmem:[%s6894_s26 + $0xf0] sm:$0xff] }
 0x2df   : > { %v2544_v3 = vmul.f32 %v6288_v41, %v2543_v2  ;;  %v7075_v41 = vld [vmem:[%s6894_s26 + $0x90] sm:$0xff] }
 0x2e0   : > { %2868 = vperm.xlu0 %6209, %v7075_v41  }
 0x2e1   : > { %v2548_v9 = vsel %vm2520_vm11, %v2544_v3, -inf  ;;  %2545 = vst.msk [vmem:[%s522_s19] sm:$0x1] %vm2520_vm11, %v2544_v3 }
 0x2e2   : > { %2549 = vmax.xlane.f32.xlu1 %v2548_v9 }
 0x2e5   : > { %v7092_v57 = vpop.permute.xlu2 %2828 }
 0x2e8   : > { %2883 = vperm.xlu0 %6209, %v7083_v20  }
 0x2ed   : > { %v7098_v59 = vpop.permute.xlu2 %2843 }
 0x2f0   : > { %2898 = vperm.xlu0 %6209, %v7089_v54  }
 0x2f5   : > { %v7106_v9 = vpop.permute.xlu2 %2858 }
 0x2f8   : > { %2913 = vperm.xlu0 %6209, %v7095_v58  }
 0x2fb   : > { %3167 = vperm.xlu1 %6211, %v6916_v16  }
 0x300   : > { %2928 = vperm.xlu0 %6209, %v7103_v63  }
 0x308   : > { %6212 = vset.pattern.permute.xlu0 %v9975_v48  ;;  %v7131_v48 = vpop.permute.xlu0 %2783 }
 0x309   : > { %3151 = vperm.xlu0 %6212, %v7051_v1  }
 0x310   : > { %v7135_v61 = vpop.permute.xlu0 %2808 }
 0x311   : > { %3171 = vperm.xlu0 %6212, %v7055_v60  }
 0x319   : > { %3183 = vperm.xlu0 %6212, %v7060_v37  }
 0x321   : > { %3195 = vperm.xlu0 %6212, %v7065_v38  }
 0x329   : > { %3207 = vperm.xlu0 %6212, %v7070_v39  }
 0x331   : > { %3219 = vperm.xlu0 %6212, %v7075_v41  }
 0x355   : > { %v2550_v26 = vpop.xlane.xlu1 %2549 }
 0x356   : > { %vm2551_vm5 = vcmp.ge.f32.partialorder %v2544_v3, %v2550_v26  ;;  %v7110_v26 = vpop.permute.xlu2 %2873 }
 0x357   : > { %v2552_v27 = vsel %vm2551_vm5, %v7046_v23, 8 }
 0x358   : > { %v2553_v28 = vsel %vm2520_vm11, %v2552_v27, 2147483647 }
 0x359   : > { %v2555_v4 = vshra.s32 %v2553_v28, 16  ;;  %v2554_v0 = vand.u32 65535, %v2553_v28 }
 0x35b   : > { %v2557_v32 = vcvt.s32.f32 %v2555_v4  ;;  %v2556_v3 = vcvt.s32.f32 %v2554_v0 }
 0x35d   : > { %2558 = vmin.xlane.f32.xlu1 %v2557_v32 }
 0x35e   : > { %v7114_v27 = vpop.permute.xlu2 %2888 }
 0x35f   : > { %10063 = vst [vmem:[#allocation21_spill] sm:$0xff] %v7114_v27 }
 0x366   : > { %v7117_v28 = vpop.permute.xlu2 %2903 }
 0x367   : > { %10064 = vst [vmem:[#allocation22_spill] sm:$0xff] %v7117_v28 }
 0x36d   : > { %v7100_v62 = vpop.permute.xlu1 %3167 }
 0x36e   : > { %10062 = vst [vmem:[#allocation20_spill] sm:$0xff] %v7100_v62  ;;  %v7120_v4 = vpop.permute.xlu2 %2918 }
 0x36f   : > { %10065 = vst [vmem:[#allocation23_spill] sm:$0xff] %v7120_v4  ;;  %v7140_v4 = vpop.permute.xlu0 %2823 }
 0x376   : > { %3179 = vperm.xlu1 %6211, %v6922_v24  }
 0x37e   : > { %3191 = vperm.xlu1 %6211, %v6927_v31  }
 0x386   : > { %3203 = vperm.xlu1 %6211, %v6934_v34  }
 0x38e   : > { %3215 = vperm.xlu1 %6211, %v6938_v40  }
 0x396   : > { %6216 = vset.pattern.permute.xlu1 %v9992_v22 }
 0x3d0   : > { %v2559_v2 = vpop.xlane.xlu1 %2558 }
 0x3d1   : > { %vm2560_vm6 = vcmp.eq.f32.partialorder %v2557_v32, %v2559_v2  ;;  %v7123_v32 = vpop.permute.xlu2 %2933 }
 0x3d2   : > { %v2561_v51 = vsel %vm2560_vm6, %v2556_v3, inf  ;;  %10066 = vst [vmem:[#allocation24_spill] sm:$0xff] %v7123_v32 }
 0x3d3   : > { %2562 = vmin.xlane.f32.xlu2 %v2561_v51 }
 0x3d9   : > { %v7125_v0 = vpop.permute.xlu2 %3155 }
 0x3da   : > { %10067 = vst [vmem:[#allocation25_spill] sm:$0xff] %v7125_v0  ;;  %v7144_v0 = vpop.permute.xlu0 %2838 }
 0x3e1   : > { %v7127_v3 = vpop.permute.xlu2 %3163 }
 0x3e2   : > { %10068 = vst [vmem:[#allocation26_spill] sm:$0xff] %v7127_v3  ;;  %v2565_v3 = vcvt.f32.s32 %v2559_v2  ;;  %v7146_v27 = vpop.permute.xlu0 %2853  ;;  %v9996_v2 = vmov 2  }
 0x3e9   : > { %v7129_v51 = vpop.permute.xlu2 %3175 }
 0x3ea   : > { %10069 = vst [vmem:[#allocation27_spill] sm:$0xff] %v7129_v51  ;;  %v2566_v51 = vshll.u32 %v2565_v3, 16  ;;  %v7149_v22 = vpop.permute.xlu0 %2868  ;;  %v6417_v3 = vmov 7  }
 0x3f1   : > { %v7133_v62 = vpop.permute.xlu2 %3187 }
 0x3f2   : > { %10070 = vst [vmem:[#allocation28_spill] sm:$0xff] %v7133_v62  ;;  %v6407_v62 = vmov 0.0  }
 0x3f9   : > { %v7138_v56 = vpop.permute.xlu2 %3199 }
 0x3fa   : > { %10071 = vst [vmem:[#allocation29_spill] sm:$0xff] %v7138_v56 }
 0x401   : > { %v7142_v32 = vpop.permute.xlu2 %3211 }
 0x402   : > { %10072 = vst [vmem:[#allocation30_spill] sm:$0xff] %v7142_v32 }
 0x446   : > { %v2563_v21 = vpop.xlane.xlu2 %2562 }
 0x447   : > { %v2564_v28 = vcvt.f32.s32 %v2563_v21  ;;  %v6411_v21 = vmov 6  }
 0x449   : > { %v2567_v44 = vadd.s32 %v2566_v51, %v2564_v28  ;;  %v6412_v28 = vmov 4  }
 0x44b   : > { %vm2568_vm7 = vcmp.eq.s32.totalorder %v7046_v23, %v2567_v44  ;;  %v7152_v44 = vpop.permute.xlu0 %2883  ;;  %v6414_v23 = vmov 5  }
 0x44c   : > { %v5744_v19 = vsel %vm2568_vm7, 1.0, %v6407_v62  ;;  %v10073_v62 = vmov 1  }
 0x44d   : > { %2592 = vrot.lane.b32.xlu1 %v5744_v19, %s6408_s25  ;;  %2587 = vperm.xlu0 %6212, %v5744_v19   ;;  %6121 = vpush %v5744_v19 }
 0x44e   : > { %2573 = vperm.xlu2 %6214, %v5744_v19  }
 0x453   : > { %v7156_v51 = vpop.permute.xlu0 %2898 }
 0x455   : > { %2629 = vperm.xlu1 %6216, %v5744_v19   ;;  %2655 = vrot.lane.b32.xlu0 %v5744_v19, %s6409_s24 }
 0x456   : > { %6215 = vset.pattern.permute.xlu2 %v9996_v2  ;;  %6219 = vset.pattern.permute.xlu0 %v6411_v21 }
 0x457   : > { %2608 = vperm.xlu2 %6215, %v5744_v19  }
 0x45b   : > { %v7159_v21 = vpop.permute.xlu0 %2913 }
 0x45c   : > { %10074 = vst [vmem:[#allocation31_spill] sm:$0xff] %v7159_v21  ;;  %v5753_v21 = vld [vmem:[%s9965_s10 + $0x9] sm:$0x7] }
 0x45d   : > { %6217 = vset.pattern.permute.xlu1 %v6412_v28  ;;  %2692 = vperm.xlu0 %6219, %v5744_v19  }
 0x45e   : > { %2650 = vperm.xlu1 %6217, %v5744_v19  }
 0x45f   : > { %2613 = vrot.lane.b32.xlu2 %v5744_v19, %s6413_s5 }
 0x460   : > { %6218 = vset.pattern.permute.xlu2 %v6414_v23 }
 0x463   : > { %v7165_v28 = vpop.permute.xlu0 %2928 }
 0x464   : > { %10075 = vst [vmem:[#allocation32_spill] sm:$0xff] %v7165_v28 }
 0x465   : > { %6223 = vset.pattern.permute.xlu0 %v10073_v62 }
 0x466   : > { %2676 = vrot.lane.b32.xlu1 %v5744_v19, %s6415_s28  ;;  %3231 = vperm.xlu0 %6223, %v7083_v20  }
 0x467   : > { %2634 = vrot.lane.b32.xlu2 %v5744_v19, %s6416_s29  ;;  %6220 = vset.pattern.permute.xlu1 %v6417_v3 }
 0x46b   : > { %v7169_v23 = vpop.permute.xlu0 %3151 }
 0x46c   : > { %10076 = vst [vmem:[#allocation33_spill] sm:$0xff] %v7169_v23  ;;  %v5750_v23 = vld [vmem:[%s9965_s10 + $0x6] sm:$0x7] }
 0x46e   : > { %2713 = vperm.xlu1 %6220, %v5744_v19   ;;  %3243 = vperm.xlu0 %6223, %v7089_v54  }
 0x46f   : > { %2671 = vperm.xlu2 %6218, %v5744_v19  }
 0x476   : > { %6222 = vset.pattern.permute.xlu1 %v10073_v62  ;;  %3255 = vperm.xlu0 %6223, %v7095_v58   ;;  %v7175_v58 = vpop.permute.xlu0 %3171 }
 0x477   : > { %2697 = vrot.lane.b32.xlu2 %v5744_v19, %s6418_s27  ;;  %3227 = vperm.xlu1 %6222, %v6942_v29   ;;  %10077 = vst [vmem:[#allocation34_spill] sm:$0xff] %v7175_v58 }
 0x478   : > { %6221 = vset.pattern.permute.xlu2 %v10073_v62  ;;  %v10078_v62 = vmov 3  }
 0x47e   : > { %3267 = vperm.xlu0 %6223, %v7103_v63   ;;  %v7186_v3 = vpop.permute.xlu0 %3183  ;;  %s6122_s28 = spop %6121 }
 0x47f   : > { %2718 = vrot.lane.b32.xlu2 %v5744_v19, %s6419_s18  ;;  %3239 = vperm.xlu1 %6222, %v6946_v35   ;;  %v7184_v19 = vpop.permute.xlu1 %3179  ;;  %10080 = vst [vmem:[#allocation36_spill] sm:$0xff] %v7186_v3  ;;  %s500_s18 = sand.u32 1, %s6390_s30  }
 0x480   : > { %10079 = vst [vmem:[#allocation35_spill] sm:$0xff] %v7184_v19  ;;  %v10083_v19 = vmov 2  }
 0x486   : > { %6225 = vset.pattern.permute.xlu0 %v9996_v2  ;;  %v7195_v56 = vpop.permute.xlu0 %3195 }
 0x487   : > { %3223 = vperm.xlu2 %6221, %v6996_v12   ;;  %3251 = vperm.xlu1 %6222, %v6950_v36   ;;  %v7193_v32 = vpop.permute.xlu1 %3191  ;;  %10082 = vst [vmem:[#allocation38_spill] sm:$0xff] %v7195_v56 }
 0x488   : > { %3504 = vperm.xlu0 %6225, %v6970_v47   ;;  %10081 = vst [vmem:[#allocation37_spill] sm:$0xff] %v7193_v32 }
 0x48e   : > { %v7204_v3 = vpop.permute.xlu0 %3207 }
 0x48f   : > { %3235 = vperm.xlu2 %6221, %v7002_v5   ;;  %3263 = vperm.xlu1 %6222, %v6954_v30   ;;  %10085 = vst [vmem:[#allocation40_spill] sm:$0xff] %v7204_v3 }
 0x490   : > { %6230 = vset.pattern.permute.xlu0 %v10078_v62 }
 0x491   : > { %3837 = vperm.xlu0 %6230, %v6922_v24  }
 0x496   : > { %v7213_v56 = vpop.permute.xlu0 %3219 }
 0x497   : > { %3247 = vperm.xlu2 %6221, %v7008_v14   ;;  %6224 = vset.pattern.permute.xlu1 %v9996_v2  ;;  %10087 = vst [vmem:[#allocation42_spill] sm:$0xff] %v7213_v56  ;;  %v5747_v56 = vld [vmem:[%s9965_s10 + $0x3] sm:$0x7] }
 0x498   : > { %3500 = vperm.xlu1 %6224, %v7055_v60  }
 0x499   : > { %3809 = vperm.xlu0 %6230, %v7051_v1  }
 0x49f   : > { %3259 = vperm.xlu2 %6221, %v7015_v11   ;;  %v7202_v11 = vpop.permute.xlu1 %3203 }
 0x4a0   : > { %6227 = vset.pattern.permute.xlu1 %v10078_v62  ;;  %10084 = vst [vmem:[#allocation39_spill] sm:$0xff] %v7202_v11  ;;  %v2582_v11 = vld [vmem:[%s9965_s10] sm:$0x7] }
 0x4a1   : > { %3845 = vperm.xlu0 %6230, %v6974_v50   ;;  %3833 = vperm.xlu1 %6227, %v6970_v47  }
 0x4a7   : > { %3271 = vperm.xlu2 %6221, %v7019_v25   ;;  %v7211_v25 = vpop.permute.xlu1 %3215 }
 0x4a8   : > { %v2574_v2 = vpop.permute.xlu2 %2573  ;;  %10086 = vst [vmem:[#allocation41_spill] sm:$0xff] %v7211_v25 }
 0x4a9   : > { %6236 = vset.pattern.permute.xlu0 %v10083_v19  ;;  %6229 = vset.pattern.permute.xlu1 %v10083_v19 }
 0x4aa   : > { %3488 = vperm.xlu0 %6236, %v6908_v46   ;;  %3512 = vperm.xlu1 %6229, %v7060_v37  }
 0x4af   : > { %6226 = vset.pattern.permute.xlu2 %v10078_v62 }
 0x4b0   : > { %3829 = vperm.xlu2 %6226, %v7055_v60   ;;  %v2583_v60 = vperm.slane %v2574_v2, 0 }
 0x4b1   : > { %v2609_v47 = vpop.permute.xlu2 %2608 }
 0x4b2   : > { %6240 = vset.pattern.permute.xlu0 %v10078_v62  ;;  %3476 = vperm.xlu1 %6229, %v6900_v8   ;;  %v2624_v58 = vperm.slane %v2609_v47, 0  ;;  %v2585_v2 = vmul.f32 %v2583_v60, %v2582_v11 }
 0x4b3   : > { %3853 = vperm.xlu0 %6240, %v7065_v38  }
 0x4b4   : > { %v2626_v47 = vmul.f32 %v5750_v23, %v2624_v58  ;;  %v5756_v23 = vld [vmem:[%s9965_s10 + $0xc] sm:$0x7] }
 0x4b8   : > { %6228 = vset.pattern.permute.xlu2 %v10083_v19 }
 0x4b9   : > { %3508 = vperm.xlu2 %6228, %v6922_v24   ;;  %v2614_v3 = vpop.permute.xlu2 %2613 }
 0x4ba   : > { %6233 = vset.pattern.permute.xlu1 %v10078_v62 }
 0x4bb   : > { %3825 = vperm.xlu0 %6240, %v6916_v16   ;;  %3805 = vperm.xlu1 %6233, %v6900_v8  }
 0x4bf   : > { %v2593_v32 = vpop.permute.xlu1 %2592  ;;  %v2588_v25 = vpop.permute.xlu0 %2587 }
 0x4c0   : > { %v2603_v24 = vperm.slane %v2588_v25, 0  ;;  %6123 = vpush %v2593_v32 }
 0x4c1   : > { %6231 = vset.pattern.permute.xlu2 %v10078_v62  ;;  %v2635_v8 = vpop.permute.xlu2 %2634  ;;  %6125 = vpush %v2614_v3 }
 0x4c2   : > { %v2605_v28 = vmul.f32 %v5747_v56, %v2603_v24  ;;  %3841 = vperm.xlu2 %6231, %v7060_v37   ;;  %6127 = vpush %v2635_v8 }
 0x4c3   : > { %3861 = vperm.xlu0 %6240, %v6934_v34   ;;  %6234 = vset.pattern.permute.xlu1 %v10083_v19 }
 0x4c4   : > { %v2606_v25 = vadd.f32 %v2605_v28, %v2585_v2  ;;  %3520 = vperm.xlu1 %6234, %v6927_v31  }
 0x4c6   : > { %v2627_v32 = vadd.f32 %v2626_v47, %v2606_v25 }
 0x4c7   : > { %v2630_v54 = vpop.permute.xlu1 %2629  ;;  %v2656_v3 = vpop.permute.xlu0 %2655 }
 0x4c8   : > { %v2645_v11 = vperm.slane %v2630_v54, 0  ;;  %6129 = vpush %v2656_v3 }
 0x4c9   : > { %v2672_v56 = vpop.permute.xlu2 %2671 }
 0x4ca   : > { %v2647_v37 = vmul.f32 %v5753_v21, %v2645_v11  ;;  %6232 = vset.pattern.permute.xlu2 %v10083_v19  ;;  %v2687_v54 = vperm.slane %v2672_v56, 0  ;;  %v5759_v21 = vld [vmem:[%s9965_s10 + $0xf] sm:$0x7]  ;;  %v5765_v11 = vld [vmem:[%s9965_s10 + $0x15] sm:$0x7] }
 0x4cb   : > { %6246 = vset.pattern.permute.xlu0 %v10083_v19  ;;  %3480 = vperm.xlu2 %6232, %v7051_v1  }
 0x4cc   : > { %v2648_v28 = vadd.f32 %v2647_v37, %v2627_v32  ;;  %3544 = vperm.xlu0 %6246, %v6938_v40   ;;  %3484 = vperm.xlu1 %6234, %v6962_v43   ;;  %v2689_v1 = vmul.f32 %v5759_v21, %v2687_v54 }
 0x4cf   : > { %v2693_v3 = vpop.permute.xlu0 %2692 }
 0x4d0   : > { %v2651_v58 = vpop.permute.xlu1 %2650 }
 0x4d1   : > { %v2698_v60 = vpop.permute.xlu2 %2697  ;;  %v2666_v24 = vperm.slane %v2651_v58, 0 }
 0x4d3   : > { %v2668_v8 = vmul.f32 %v5756_v23, %v2666_v24  ;;  %3516 = vperm.xlu2 %6232, %v6974_v50   ;;  %v2708_v50 = vperm.slane %v2693_v3, 0  ;;  %v6087_v24 = vld [vmem:[%s9966_s11 + $0x78] sm:$0xff] }
 0x4d4   : > { %6250 = vset.pattern.permute.xlu0 %v10078_v62  ;;  %6237 = vset.pattern.permute.xlu1 %v10078_v62 }
 0x4d5   : > { %v2669_v2 = vadd.f32 %v2668_v8, %v2648_v28  ;;  %3877 = vperm.xlu0 %6250, %v7075_v41   ;;  %3817 = vperm.xlu1 %6237, %v6908_v46   ;;  %v5762_v46 = vld [vmem:[%s9965_s10 + $0x12] sm:$0x7] }
 0x4d6   : > { %v2710_v37 = vmul.f32 %v5762_v46, %v2708_v50  ;;  %6105 = vmatpush.bf16.msrb.mxu3 %v6087_v24  ;;  %v5754_v46 = vld [vmem:[%s9964_s9 + $0x30] sm:$0xff] }
 0x4d7   : > { %v2690_v47 = vadd.f32 %v2689_v1, %v2669_v2  ;;  %v5748_v1 = vld [vmem:[%s9964_s9 + $0x18] sm:$0xff] }
 0x4d8   : > { %v2677_v25 = vpop.permute.xlu1 %2676 }
 0x4d9   : > { %v2719_v32 = vpop.permute.xlu2 %2718  ;;  %6131 = vpush %v2677_v25  ;;  %v2711_v23 = vadd.f32 %v2710_v37, %v2690_v47  ;;  %v5749_v25 = vld [vmem:[%s9964_s9 + $0x20] sm:$0xf]  ;;  %v5752_v37 = vld [vmem:[%s9964_s9 + $0x2c] sm:$0xf] }
 0x4da   : > { %6133 = vpush %v2698_v60  ;;  %v6079_v60 = vld [vmem:[%s9966_s11 + $0x38] sm:$0xff] }
 0x4db   : > { %6135 = vpush %v2719_v32  ;;  %6235 = vset.pattern.permute.xlu2 %v10078_v62  ;;  %6097 = vmatpush.bf16.msrb.mxu2 %v6079_v60 }
 0x4dc   : > { %3849 = vperm.xlu2 %6235, %v6927_v31   ;;  %4473 = vmatpush.bf16.msrb.mxu1 %v6079_v60 }
 0x4dd   : > { %3889 = vperm.xlu0 %6250, %v7083_v20   ;;  %6239 = vset.pattern.permute.xlu1 %v10083_v19 }
 0x4de   : > { %3528 = vperm.xlu1 %6239, %v6980_v55  }
 0x4e0   : > { %v2714_v56 = vpop.permute.xlu1 %2713 }
 0x4e1   : > { %v2729_v28 = vperm.slane %v2714_v56, 0 }
 0x4e3   : > { %v2731_v31 = vmul.f32 %v5765_v11, %v2729_v28  ;;  %v5755_v28 = vld [vmem:[%s9964_s9 + $0x38] sm:$0xf] }
 0x4e4   : > { %3813 = vperm.xlu2 %6235, %v6962_v43  }
 0x4e5   : > { %v2732_v58 = vadd.f32 %v2731_v31, %v2711_v23  ;;  %3893 = vperm.xlu0 %6250, %v7002_v5   ;;  %v2578_v5 = vstv %s6122_s28 }
 0x4e6   : > { %3492 = vperm.xlu1 %6239, %v6966_v45  }
 0x4e7   : > { %v7268_v54 = vadd.f32 %v6931_v33, %v2732_v58  ;;  %v5745_v33 = vld [vmem:[%s9964_s9 + $0xc] sm:$0xff] }
 0x4ec   : > { %6238 = vset.pattern.permute.xlu2 %v10083_v19 }
 0x4ed   : > { %6256 = vset.pattern.permute.xlu0 %v10083_v19  ;;  %3524 = vperm.xlu2 %6238, %v7065_v38  }
 0x4ee   : > { %3576 = vperm.xlu0 %6256, %v7008_v14   ;;  %6243 = vset.pattern.permute.xlu1 %v10078_v62 }
 0x4ef   : > { %3821 = vperm.xlu1 %6243, %v6966_v45   ;;  %v5746_v45 = vld [vmem:[%s9964_s9 + $0x14] sm:$0xf] }
 0x4f1   : > { %s6124_s29 = spop %6123 }
 0x4f2   : > { %v2595_v43 = vstv %s6124_s29  ;;  %s6126_s24 = spop %6125 }
 0x4f3   : > { %v2597_v14 = vmul.f32 %v5745_v33, %v2595_v43  ;;  %v2598_v38 = vmul.f32 %v5746_v45, %v2595_v43  ;;  %v2616_v2 = vstv %s6126_s24  ;;  %s6128_s28 = spop %6127  ;;  %v5757_v33 = vld [vmem:[%s9964_s9 + $0x3c] sm:$0xff]  ;;  %v5758_v43 = vld [vmem:[%s9964_s9 + $0x44] sm:$0xf] }
 0x4f4   : > { %v2619_v3 = vmul.f32 %v5749_v25, %v2616_v2  ;;  %v2637_v50 = vstv %s6128_s28  ;;  %v5763_v25 = vld [vmem:[%s9964_s9 + $0x54] sm:$0xff] }
 0x4f5   : > { %6241 = vset.pattern.permute.xlu2 %v10078_v62  ;;  %v2640_v60 = vmul.f32 %v5752_v37, %v2637_v50 }
 0x4f6   : > { %6260 = vset.pattern.permute.xlu0 %v10078_v62  ;;  %3857 = vperm.xlu2 %6241, %v6980_v55   ;;  %v2575_v55 = vld [vmem:[%s9964_s9] sm:$0xff] }
 0x4f7   : > { %3909 = vperm.xlu0 %6260, %v6950_v36   ;;  %6244 = vset.pattern.permute.xlu1 %v10083_v19  ;;  %v2576_v36 = vld [vmem:[%s9964_s9 + $0x8] sm:$0xf]  ;;  %v2580_v21 = vmul.f32 %v2578_v5, %v2575_v55 }
 0x4f8   : > { %3536 = vperm.xlu1 %6244, %v7070_v39   ;;  %v2581_v8 = vmul.f32 %v2578_v5, %v2576_v36 }
 0x4f9   : > { %v2599_v47 = vadd.f32 %v2597_v14, %v2580_v21  ;;  %s6130_s20 = spop %6129 }
 0x4fa   : > { %v2600_v32 = vadd.f32 %v2598_v38, %v2581_v8  ;;  %v2658_v11 = vstv %s6130_s20  ;;  %v5761_v8 = vld [vmem:[%s9964_s9 + $0x50] sm:$0xf]  ;;  %s4915_s20 = sshll.u32 %s500_s18, 8 }
 0x4fb   : > { %v2660_v58 = vmul.f32 %v5754_v46, %v2658_v11  ;;  %v2661_v24 = vmul.f32 %v5755_v28, %v2658_v11 }
 0x4fc   : > { %v2621_v23 = vadd.f32 %v2619_v3, %v2600_v32  ;;  %v5764_v3 = vld [vmem:[%s9964_s9 + $0x5c] sm:$0xf] }
 0x4fe   : > { %6242 = vset.pattern.permute.xlu2 %v10083_v19 }
 0x4ff   : > { %3921 = vperm.xlu0 %6260, %v6954_v30   ;;  %3496 = vperm.xlu2 %6242, %v6916_v16   ;;  %v2618_v30 = vmul.f32 %v5748_v1, %v2616_v2  ;;  %v5751_v16 = vld [vmem:[%s9964_s9 + $0x24] sm:$0xff] }
 0x500   : > { %3540 = vperm.xlu1 %6244, %v6988_v6   ;;  %v2639_v31 = vmul.f32 %v5751_v16, %v2637_v50 }
 0x501   : > { %v2620_v56 = vadd.f32 %v2618_v30, %v2599_v47 }
 0x503   : > { %v2641_v45 = vadd.f32 %v2639_v31, %v2620_v56 }
 0x505   : > { %v2662_v55 = vadd.f32 %v2660_v58, %v2641_v45 }
 0x507   : > { %3925 = vperm.xlu0 %6260, %v7103_v63   ;;  %3532 = vperm.xlu2 %6242, %v6934_v34   ;;  %v2642_v63 = vadd.f32 %v2640_v60, %v2621_v23  ;;  %v6078_v60 = vld [vmem:[%s9966_s11 + $0x30] sm:$0xff] }
 0x508   : > { %6247 = vset.pattern.permute.xlu1 %v10078_v62  ;;  %6098 = vmatpush.bf16.msrb.mxu2 %v6078_v60 }
 0x509   : > { %3873 = vperm.xlu1 %6247, %v6938_v40   ;;  %v2663_v14 = vadd.f32 %v2661_v24, %v2642_v63  ;;  %v5760_v40 = vld [vmem:[%s9964_s9 + $0x48] sm:$0xff]  ;;  %4474 = vmatpush.bf16.msrb.mxu1 %v6078_v60  ;;  %v7464_v60 = vpop.permute.xlu1 %3227 }
 0x50a   : > { %s6132_s21 = spop %6131 }
 0x50b   : > { %v2679_v34 = vstv %s6132_s21  ;;  %s6134_s15 = spop %6133  ;;  %s9782_s21 = scalar_lea.vmem [#allocation5], %s4915_s20 }
 0x50c   : > { %v2681_v5 = vmul.f32 %v5757_v33, %v2679_v34  ;;  %v2682_v36 = vmul.f32 %v5758_v43, %v2679_v34  ;;  %v2700_v38 = vstv %s6134_s15  ;;  %s6136_s5 = spop %6135  ;;  %s6096_s15 = sshll.u32 %s6518_s17, 8 }
 0x50d   : > { %v2702_v2 = vmul.f32 %v5760_v40, %v2700_v38  ;;  %v2703_v47 = vmul.f32 %v5761_v8, %v2700_v38  ;;  %v2721_v32 = vstv %s6136_s5  ;;  %v7368_v38 = vperm.slane %v7268_v54, 2  ;;  %s4788_s25 = scalar_lea.hbm %s9968_s13, %s6096_s15  ;;  %s4789_s24 = sshll.u32 %s9782_s21, 4  ;;  %s4790_s24 = int_to_ptr.vmem [resolvable:$true] %s4789_s24 }
 0x50e   : > { %v2683_v21 = vadd.f32 %v2681_v5, %v2662_v55  ;;  %v2684_v1 = vadd.f32 %v2682_v36, %v2663_v14  ;;  %v2723_v50 = vmul.f32 %v5763_v25, %v2721_v32  ;;  %v2724_v46 = vmul.f32 %v5764_v3, %v2721_v32  ;;  %v7359_v5 = vpop.permute.xlu2 %3223  ;;  %s4791_s5 = sshll.u32 %s4788_s25, 4  ;;  %s4774_s17 = scalar_lea.sflag [#allocation4], %s500_s18  ;;  %s4792_s5 = int_to_ptr.hbm [resolvable:$true] %s4791_s5 }
 0x50f   : > { %6245 = vset.pattern.permute.xlu2 %v10078_v62  ;;  %v7362_v36 = vperm.slane %v7268_v54, 0  ;;  %v7365_v14 = vperm.slane %v7268_v54, 1  ;;  %s6346_s29 = sshra.s32 %s4792_s5, 4  ;;  %s6352_s20 = scalar_lea.hbm %s9968_s13, 512  ;;  %s6347_s29 = int_to_ptr.hbm [resolvable:$true] %s6346_s29 }
 0x510   : > { %3865 = vperm.xlu2 %6245, %v7070_v39   ;;  %v2704_v30 = vadd.f32 %v2702_v2, %v2683_v21  ;;  %v2705_v16 = vadd.f32 %v2703_v47, %v2684_v1  ;;  %s6348_s28 = scalar_lea.hbm %s6347_s29, 256  ;;  %p6353_p3 = scmp.lt.s32.totalorder %s6347_s29, %s9968_s13 }
 0x511   : > { %6249 = vset.pattern.permute.xlu1 %v10083_v19  ;;  %p6349_p0 = scmp.ne.s32.totalorder %s6347_s29, %s6348_s28  ;;  %p6354_p4 = scmp.lt.s32.totalorder %s6352_s20, %s6348_s28 }
 0x512   : > { %3552 = vperm.xlu1 %6249, %v6996_v12   ;;  %v2725_v11 = vadd.f32 %v2723_v50, %v2704_v30  ;;  %v2726_v39 = vadd.f32 %v2724_v46, %v2705_v16 }
 0x513   : > { %p6350_p1 = pnand %p6349_p0, %p6535_p5  ;;  %p6355_p7 = por %p6354_p4, %p6353_p3 }
 0x514   : > { %v2938_v56 = vperm.slane %v2725_v11, 0  ;;  %v2939_v37 = vperm.slane %v2725_v11, 4  ;;  %v2940_v28 = vperm.slane %v2726_v39, 0  ;;  %v3274_v23 = vperm.slane %v2725_v11, 1 }
 0x515   : > { %v3275_v31 = vperm.slane %v2725_v11, 5  ;;  %v3276_v58 = vperm.slane %v2726_v39, 1  ;;  %v3603_v33 = vperm.slane %v2725_v11, 2  ;;  %v3604_v43 = vperm.slane %v2725_v11, 6  ;;  %p6351_p2 = pneg %p6350_p1 }
 0x516   : > { %v7353_v24 = vperm.slane %v2938_v56, 0  ;;  %v3605_v45 = vperm.slane %v2726_v39, 2  ;;  %v7355_v63 = vperm.slane %v2939_v37, 0  ;;  %v3932_v34 = vperm.slane %v2725_v11, 3 }
 0x517   : > { %v3933_v55 = vperm.slane %v2725_v11, 7  ;;  %v3934_v40 = vperm.slane %v2726_v39, 3  ;;  %v7370_v21 = vperm.slane %v3274_v23, 1  ;;  %v7372_v8 = vperm.slane %v3275_v31, 1  ;;  %p6356_p8 = pnand %p6355_p7, %p6351_p2 }
 0x518   : > { %3869 = vperm.xlu2 %6245, %v6988_v6   ;;  %v7357_v6 = vperm.slane %v2940_v28, 0  ;;  %v7374_v1 = vperm.slane %v3276_v58, 1  ;;  %v7377_v2 = vperm.slane %v3603_v33, 2  ;;  %v7379_v47 = vperm.slane %v3604_v43, 2 }
 0x519   : > { %v7381_v25 = vperm.slane %v3605_v45, 2  ;;  %v7385_v32 = vmul.f32 %v7353_v24, %v6977_v53  ;;  %v7388_v54 = vperm.slane %v3932_v34, 3  ;;  %v7390_v30 = vperm.slane %v3933_v55, 3 }
 0x51a   : > { %3556 = vperm.xlu1 %6249, %v6942_v29   ;;  %10088 = vst [vmem:[#allocation43_spill] sm:$0xff] %v7377_v2  ;;  %v7394_v3 = vmul.f32 %v7355_v63, %v6977_v53  ;;  %v7398_v16 = vmul.f32 %v7357_v6, %v6977_v53  ;;  %v7401_v50 = vperm.slane %v3934_v40, 3  ;;  %v7405_v46 = vmul.f32 %v7353_v24, %v7131_v48  ;;  %v7498_v40 = vpop.permute.xlu2 %3235 }
 0x51b   : > { %10089 = vst [vmem:[#allocation44_spill] sm:$0xff] %v7379_v47  ;;  %v7413_v11 = vmul.f32 %v7357_v6, %v7131_v48  ;;  %v7418_v53 = vmul.f32 %v7353_v24, %v7078_v42  ;;  %v7422_v39 = vmul.f32 %v7355_v63, %v7078_v42  ;;  %v7426_v56 = vmul.f32 %v7357_v6, %v7078_v42 }
 0x51c   : > { %10090 = vst [vmem:[#allocation45_spill] sm:$0xff] %v7381_v25  ;;  %v7430_v37 = vmul.f32 %v7353_v24, %v6990_v7  ;;  %v7442_v28 = vmul.f32 %v7353_v24, %v7080_v49  ;;  %v7446_v42 = vmul.f32 %v7355_v63, %v7080_v49  ;;  %v7450_v23 = vmul.f32 %v7357_v6, %v7080_v49 }
 0x51d   : > { %10091 = vst [vmem:[#allocation46_spill] sm:$0xff] %v7385_v32  ;;  %v7454_v31 = vmul.f32 %v7353_v24, %v6999_v10  ;;  %v7462_v58 = vmul.f32 %v7357_v6, %v6999_v10  ;;  %v7468_v33 = vmul.f32 %v7353_v24, %v7135_v61  ;;  %v7472_v49 = vmul.f32 %v7355_v63, %v7135_v61 }
 0x51e   : > { %10092 = vst [vmem:[#allocation47_spill] sm:$0xff] %v7388_v54  ;;  %v7476_v43 = vmul.f32 %v7357_v6, %v7135_v61  ;;  %v7480_v45 = vmul.f32 %v7353_v24, %v7086_v52  ;;  %v7488_v34 = vmul.f32 %v7357_v6, %v7086_v52  ;;  %v7492_v55 = vmul.f32 %v7353_v24, %v7005_v13 }
 0x51f   : > { %10093 = vst [vmem:[#allocation48_spill] sm:$0xff] %v7390_v30  ;;  %v7496_v61 = vmul.f32 %v7355_v63, %v7005_v13 }
 0x520   : > { %6248 = vset.pattern.permute.xlu2 %v10083_v19  ;;  %10094 = vst [vmem:[#allocation49_spill] sm:$0xff] %v7394_v3 }
 0x521   : > { %3548 = vperm.xlu2 %6248, %v7075_v41   ;;  %10095 = vst [vmem:[#allocation50_spill] sm:$0xff] %v7398_v16  ;;  %v7409_v41 = vmul.f32 %v7355_v63, %v7131_v48  ;;  %v7434_v48 = vmul.f32 %v7355_v63, %v6990_v7  ;;  %v10128_v16 = vld [vmem:[#allocation21_spill] sm:$0xff] }
 0x522   : > { %6253 = vset.pattern.permute.xlu1 %v10078_v62  ;;  %10096 = vst [vmem:[#allocation51_spill] sm:$0xff] %v7401_v50  ;;  %v7678_v3 = vmul.f32 %v7353_v24, %v10128_v16  ;;  %v7682_v32 = vmul.f32 %v7355_v63, %v10128_v16  ;;  %v10132_v50 = vld [vmem:[#allocation14_spill] sm:$0xff] }
 0x523   : > { %10097 = vst [vmem:[#allocation52_spill] sm:$0xff] %v7405_v46  ;;  %3885 = vperm.xlu1 %6253, %v6942_v29   ;;  %v7438_v29 = vmul.f32 %v7357_v6, %v6990_v7  ;;  %v7458_v7 = vmul.f32 %v7355_v63, %v6999_v10  ;;  %v7484_v10 = vmul.f32 %v7355_v63, %v7086_v52  ;;  %v7671_v46 = vld [vmem:[%s9966_s11 + $0x70] sm:$0xff] }
 0x524   : > { %10098 = vst [vmem:[#allocation53_spill] sm:$0xff] %v7409_v41  ;;  %v7510_v52 = vmul.f32 %v7355_v63, %v7140_v4  ;;  %v7666_v41 = vmul.f32 %v7357_v6, %v7152_v44  ;;  %v7690_v30 = vmul.f32 %v7353_v24, %v10132_v50  ;;  %v7695_v54 = vmul.f32 %v7355_v63, %v10132_v50 }
 0x525   : > { %10099 = vst [vmem:[#allocation54_spill] sm:$0xff] %v7413_v11  ;;  %v7658_v11 = vmul.f32 %v7353_v24, %v7152_v44  ;;  %6106 = vmatpush.bf16.msrb.mxu3 %v7671_v46 }
 0x526   : > { %10100 = vst [vmem:[#allocation55_spill] sm:$0xff] %v7418_v53 }
 0x527   : > { %10101 = vst [vmem:[#allocation56_spill] sm:$0xff] %v7426_v56 }
 0x528   : > { %10102 = vst [vmem:[#allocation57_spill] sm:$0xff] %v7430_v37  ;;  %v10126_v37 = vld [vmem:[#allocation13_spill] sm:$0xff] }
 0x529   : > { %10103 = vst [vmem:[#allocation58_spill] sm:$0xff] %v7438_v29  ;;  %6251 = vset.pattern.permute.xlu2 %v10078_v62  ;;  %v7642_v29 = vmul.f32 %v7357_v6, %v7110_v26  ;;  %v7646_v56 = vmul.f32 %v7353_v24, %v10126_v37  ;;  %v7654_v53 = vmul.f32 %v7357_v6, %v10126_v37 }
 0x52a   : > { %10104 = vst [vmem:[#allocation59_spill] sm:$0xff] %v7442_v28  ;;  %3881 = vperm.xlu2 %6251, %v6996_v12   ;;  %v7555_v12 = vmul.f32 %v7357_v6, %v7144_v0  ;;  %v7634_v28 = vpop.permute.xlu1 %3239 }
 0x52b   : > { %10105 = vst [vmem:[#allocation60_spill] sm:$0xff] %v7450_v23  ;;  %6254 = vset.pattern.permute.xlu1 %v10083_v19  ;;  %v7632_v23 = vmul.f32 %v7353_v24, %v7110_v26 }
 0x52c   : > { %10106 = vst [vmem:[#allocation61_spill] sm:$0xff] %v7454_v31  ;;  %3568 = vperm.xlu1 %6254, %v6946_v35   ;;  %v7592_v35 = vmul.f32 %v7357_v6, %v7146_v27  ;;  %v7628_v31 = vmul.f32 %v7357_v6, %v7149_v22 }
 0x52d   : > { %10107 = vst [vmem:[#allocation62_spill] sm:$0xff] %v7462_v58  ;;  %v7620_v58 = vmul.f32 %v7353_v24, %v7149_v22 }
 0x52e   : > { %10108 = vst [vmem:[#allocation63_spill] sm:$0xff] %v7468_v33  ;;  %v7604_v33 = vmul.f32 %v7357_v6, %v7106_v9 }
 0x52f   : > { %10109 = vst [vmem:[#allocation64_spill] sm:$0xff] %v7472_v49  ;;  %v7596_v49 = vmul.f32 %v7353_v24, %v7106_v9 }
 0x530   : > { %10110 = vst [vmem:[#allocation65_spill] sm:$0xff] %v7476_v43  ;;  %v7616_v43 = vmul.f32 %v7357_v6, %v7025_v18 }
 0x531   : > { %10111 = vst [vmem:[#allocation66_spill] sm:$0xff] %v7480_v45  ;;  %v7502_v45 = vmul.f32 %v7357_v6, %v7005_v13  ;;  %v7523_v13 = vmul.f32 %v7355_v63, %v7092_v57 }
 0x532   : > { %10112 = vst [vmem:[#allocation67_spill] sm:$0xff] %v7484_v10  ;;  %v7506_v10 = vmul.f32 %v7353_v24, %v7140_v4  ;;  %6252 = vset.pattern.permute.xlu2 %v10083_v19 }
 0x533   : > { %10113 = vst [vmem:[#allocation68_spill] sm:$0xff] %v7488_v34  ;;  %v7608_v34 = vmul.f32 %v7353_v24, %v7025_v18  ;;  %3560 = vperm.xlu2 %6252, %v7083_v20   ;;  %v7712_v20 = vmul.f32 %v7357_v6, %v7156_v51 }
 0x534   : > { %10114 = vst [vmem:[#allocation69_spill] sm:$0xff] %v7492_v55  ;;  %v7514_v55 = vmul.f32 %v7357_v6, %v7140_v4  ;;  %v7536_v4 = vmul.f32 %v7355_v63, %v7012_v15 }
 0x535   : > { %10115 = vst [vmem:[#allocation70_spill] sm:$0xff] %v7496_v61  ;;  %v7519_v61 = vmul.f32 %v7353_v24, %v7092_v57 }
 0x536   : > { %10116 = vst [vmem:[#allocation71_spill] sm:$0xff] %v7506_v10  ;;  %v7527_v10 = vmul.f32 %v7357_v6, %v7092_v57  ;;  %v7548_v57 = vmul.f32 %v7355_v63, %v7144_v0 }
 0x537   : > { %10117 = vst [vmem:[#allocation72_spill] sm:$0xff] %v7510_v52  ;;  %v7531_v52 = vmul.f32 %v7353_v24, %v7012_v15 }
 0x538   : > { %10118 = vst [vmem:[#allocation73_spill] sm:$0xff] %v7519_v61  ;;  %v7540_v61 = vmul.f32 %v7357_v6, %v7012_v15  ;;  %v7559_v15 = vmul.f32 %v7353_v24, %v7098_v59 }
 0x539   : > { %10119 = vst [vmem:[#allocation74_spill] sm:$0xff] %v7523_v13  ;;  %v7544_v13 = vmul.f32 %v7353_v24, %v7144_v0  ;;  %v7576_v0 = vmul.f32 %v7355_v63, %v7021_v17 }
 0x53a   : > { %10120 = vst [vmem:[#allocation75_spill] sm:$0xff] %v7531_v52  ;;  %v7551_v52 = vpop.permute.xlu0 %3231 }
 0x53b   : > { %10121 = vst [vmem:[#allocation76_spill] sm:$0xff] %v7536_v4  ;;  %v7563_v4 = vmul.f32 %v7355_v63, %v7098_v59 }
 0x53c   : > { %10122 = vst [vmem:[#allocation77_spill] sm:$0xff] %v7544_v13  ;;  %v7567_v13 = vmul.f32 %v7357_v6, %v7098_v59  ;;  %v7588_v59 = vmul.f32 %v7355_v63, %v7146_v27 }
 0x53d   : > { %10123 = vst [vmem:[#allocation78_spill] sm:$0xff] %v7548_v57  ;;  %v7572_v57 = vmul.f32 %v7353_v24, %v7021_v17 }
 0x53e   : > { %10124 = vst [vmem:[#allocation79_spill] sm:$0xff] %v7559_v15  ;;  %v7580_v15 = vmul.f32 %v7357_v6, %v7021_v17  ;;  %v7600_v17 = vmul.f32 %v7355_v63, %v7106_v9  ;;  %v7624_v9 = vmul.f32 %v7355_v63, %v7149_v22  ;;  %v7650_v22 = vmul.f32 %v7355_v63, %v10126_v37  ;;  %v7674_v37 = vpop.permute.xlu2 %3247 }
 0x53f   : > { %10125 = vst [vmem:[#allocation80_spill] sm:$0xff] %v7563_v4  ;;  %v7584_v4 = vmul.f32 %v7353_v24, %v7146_v27  ;;  %v7612_v27 = vmul.f32 %v7355_v63, %v7025_v18  ;;  %v7638_v18 = vmul.f32 %v7355_v63, %v7110_v26  ;;  %v7662_v26 = vmul.f32 %v7355_v63, %v7152_v44 }
 0x540   : > { %10127 = vst [vmem:[#allocation13_spill] sm:$0xff] %v7671_v46  ;;  %v7686_v44 = vmul.f32 %v7357_v6, %v10128_v16  ;;  %v7707_v16 = vmul.f32 %v7355_v63, %v7156_v51  ;;  %v10144_v46 = vld [vmem:[#allocation15_spill] sm:$0xff] }
 0x541   : > { %10129 = vst [vmem:[#allocation21_spill] sm:$0xff] %v7678_v3  ;;  %v7699_v3 = vmul.f32 %v7357_v6, %v10132_v50 }
 0x542   : > { %10130 = vst [vmem:[#allocation81_spill] sm:$0xff] %v7682_v32  ;;  %v7703_v32 = vmul.f32 %v7353_v24, %v7156_v51  ;;  %v7731_v51 = vmul.f32 %v7353_v24, %v10144_v46 }
 0x543   : > { %10131 = vst [vmem:[#allocation82_spill] sm:$0xff] %v7686_v44 }
 0x544   : > { %10133 = vst [vmem:[#allocation14_spill] sm:$0xff] %v7690_v30  ;;  %v10139_v30 = vld [vmem:[#allocation22_spill] sm:$0xff] }
 0x545   : > { %10134 = vst [vmem:[#allocation83_spill] sm:$0xff] %v7695_v54  ;;  %v7716_v54 = vmul.f32 %v7353_v24, %v10139_v30  ;;  %v7720_v50 = vmul.f32 %v7355_v63, %v10139_v30 }
 0x546   : > { %10135 = vst [vmem:[#allocation84_spill] sm:$0xff] %v7699_v3  ;;  %v10143_v3 = vld [vmem:[#allocation19_spill] sm:$0xff] }
 0x547   : > { %10136 = vst [vmem:[#allocation85_spill] sm:$0xff] %v7703_v32  ;;  %v7724_v32 = vmul.f32 %v7357_v6, %v10139_v30  ;;  %3572 = vperm.xlu1 %6254, %v10143_v3  }
 0x548   : > { %10137 = vst [vmem:[#allocation86_spill] sm:$0xff] %v7707_v16  ;;  %v7727_v16 = vpop.permute.xlu0 %3243 }
 0x549   : > { %10138 = vst [vmem:[#allocation87_spill] sm:$0xff] %v7712_v20  ;;  %v7735_v20 = vmul.f32 %v7355_v63, %v10144_v46 }
 0x54a   : > { %10140 = vst [vmem:[#allocation22_spill] sm:$0xff] %v7716_v54  ;;  %v7739_v54 = vmul.f32 %v7357_v6, %v10144_v46 }
 0x54b   : > { %10141 = vst [vmem:[#allocation88_spill] sm:$0xff] %v7720_v50  ;;  %v10148_v50 = vld [vmem:[#allocation31_spill] sm:$0xff] }
 0x54c   : > { %10142 = vst [vmem:[#allocation89_spill] sm:$0xff] %v7724_v32  ;;  %v7743_v30 = vmul.f32 %v7353_v24, %v10148_v50  ;;  %v7747_v3 = vmul.f32 %v7355_v63, %v10148_v50  ;;  %v7751_v32 = vmul.f32 %v7357_v6, %v10148_v50 }
 0x54d   : > { %10145 = vst [vmem:[#allocation19_spill] sm:$0xff] %v7731_v51  ;;  %v10152_v51 = vld [vmem:[#allocation23_spill] sm:$0xff] }
 0x54e   : > { %10146 = vst [vmem:[#allocation15_spill] sm:$0xff] %v7735_v20  ;;  %v7755_v44 = vmul.f32 %v7353_v24, %v10152_v51  ;;  %v7759_v46 = vmul.f32 %v7355_v63, %v10152_v51 }
 0x54f   : > { %10147 = vst [vmem:[#allocation90_spill] sm:$0xff] %v7739_v54  ;;  %v7763_v54 = vmul.f32 %v7357_v6, %v10152_v51  ;;  %6257 = vset.pattern.permute.xlu1 %v10078_v62 }
 0x550   : > { %10149 = vst [vmem:[#allocation31_spill] sm:$0xff] %v7743_v30  ;;  %v10156_v30 = vld [vmem:[#allocation16_spill] sm:$0xff] }
 0x551   : > { %10150 = vst [vmem:[#allocation91_spill] sm:$0xff] %v7747_v3  ;;  %v7767_v20 = vmul.f32 %v7353_v24, %v10156_v30  ;;  %v7771_v50 = vmul.f32 %v7355_v63, %v10156_v30 }
 0x552   : > { %10151 = vst [vmem:[#allocation92_spill] sm:$0xff] %v7751_v32  ;;  %v10160_v32 = vld [vmem:[#allocation32_spill] sm:$0xff] }
 0x553   : > { %10153 = vst [vmem:[#allocation23_spill] sm:$0xff] %v7755_v44  ;;  %v7775_v44 = vmul.f32 %v7357_v6, %v10156_v30  ;;  %v7783_v51 = vmul.f32 %v7355_v63, %v10160_v32 }
 0x554   : > { %10154 = vst [vmem:[#allocation93_spill] sm:$0xff] %v7759_v46  ;;  %v7779_v46 = vmul.f32 %v7353_v24, %v10160_v32 }
 0x555   : > { %10155 = vst [vmem:[#allocation94_spill] sm:$0xff] %v7763_v54  ;;  %v10164_v54 = vld [vmem:[#allocation24_spill] sm:$0xff] }
 0x556   : > { %10157 = vst [vmem:[#allocation16_spill] sm:$0xff] %v7767_v20  ;;  %v7787_v20 = vmul.f32 %v7357_v6, %v10160_v32  ;;  %v7791_v3 = vmul.f32 %v7353_v24, %v10164_v54  ;;  %v7795_v30 = vmul.f32 %v7355_v63, %v10164_v54  ;;  %v10172_v63 = vld [vmem:[#allocation33_spill] sm:$0xff] }
 0x557   : > { %10158 = vst [vmem:[#allocation95_spill] sm:$0xff] %v7771_v50 }
 0x558   : > { %10159 = vst [vmem:[#allocation96_spill] sm:$0xff] %v7775_v44  ;;  %v7799_v44 = vmul.f32 %v7357_v6, %v10164_v54  ;;  %v7821_v6 = vmul.f32 %v7372_v8, %v10172_v63  ;;  %v7825_v54 = vmul.f32 %v7374_v1, %v10172_v63 }
 0x559   : > { %10161 = vst [vmem:[#allocation32_spill] sm:$0xff] %v7779_v46  ;;  %v10168_v46 = vld [vmem:[#allocation17_spill] sm:$0xff] }
 0x55a   : > { %10162 = vst [vmem:[#allocation97_spill] sm:$0xff] %v7783_v51  ;;  %v7803_v50 = vmul.f32 %v7370_v21, %v10168_v46  ;;  %v7807_v32 = vmul.f32 %v7372_v8, %v10168_v46  ;;  %v7813_v24 = vmul.f32 %v7374_v1, %v10168_v46 }
 0x55b   : > { %10163 = vst [vmem:[#allocation98_spill] sm:$0xff] %v7787_v20  ;;  %v7809_v20 = vpop.permute.xlu1 %3251 }
 0x55c   : > { %10165 = vst [vmem:[#allocation24_spill] sm:$0xff] %v7791_v3 }
 0x55d   : > { %10166 = vst [vmem:[#allocation99_spill] sm:$0xff] %v7795_v30  ;;  %v7817_v30 = vmul.f32 %v7370_v21, %v10172_v63  ;;  %v7844_v63 = vpop.permute.xlu2 %3259 }
 0x55e   : > { %10167 = vst [vmem:[#allocation100_spill] sm:$0xff] %v7799_v44 }
 0x55f   : > { %10169 = vst [vmem:[#allocation17_spill] sm:$0xff] %v7803_v50  ;;  %v6291_v50 = vld [vmem:[%s6894_s26 + $0xb0] sm:$0xff] }
 0x560   : > { %10170 = vst [vmem:[#allocation101_spill] sm:$0xff] %v7807_v32  ;;  %3564 = vperm.xlu2 %6252, %v6291_v50   ;;  %v10176_v32 = vld [vmem:[#allocation25_spill] sm:$0xff] }
 0x561   : > { %10171 = vst [vmem:[#allocation102_spill] sm:$0xff] %v7813_v24  ;;  %v7830_v44 = vmul.f32 %v7370_v21, %v10176_v32  ;;  %v7834_v46 = vmul.f32 %v7372_v8, %v10176_v32 }
 0x562   : > { %10173 = vst [vmem:[#allocation33_spill] sm:$0xff] %v7817_v30  ;;  %v7838_v30 = vmul.f32 %v7374_v1, %v10176_v32 }
 0x563   : > { %10174 = vst [vmem:[#allocation103_spill] sm:$0xff] %v7821_v6  ;;  %v10180_v6 = vld [vmem:[#allocation18_spill] sm:$0xff] }
 0x564   : > { %10175 = vst [vmem:[#allocation104_spill] sm:$0xff] %v7825_v54  ;;  %v7842_v24 = vmul.f32 %v7370_v21, %v10180_v6  ;;  %v7848_v50 = vmul.f32 %v7372_v8, %v10180_v6  ;;  %v10184_v54 = vld [vmem:[#allocation26_spill] sm:$0xff] }
 0x565   : > { %10177 = vst [vmem:[#allocation25_spill] sm:$0xff] %v7830_v44  ;;  %v7852_v44 = vmul.f32 %v7374_v1, %v10180_v6  ;;  %v7860_v32 = vmul.f32 %v7372_v8, %v10184_v54 }
 0x566   : > { %10178 = vst [vmem:[#allocation105_spill] sm:$0xff] %v7834_v46  ;;  %v7856_v46 = vmul.f32 %v7370_v21, %v10184_v54 }
 0x567   : > { %10179 = vst [vmem:[#allocation106_spill] sm:$0xff] %v7838_v30  ;;  %v10188_v30 = vld [vmem:[#allocation20_spill] sm:$0xff] }
 0x568   : > { %10181 = vst [vmem:[#allocation18_spill] sm:$0xff] %v7842_v24  ;;  %v7865_v24 = vmul.f32 %v7374_v1, %v10184_v54  ;;  %v7873_v6 = vmul.f32 %v7372_v8, %v10188_v30  ;;  %6255 = vset.pattern.permute.xlu2 %v10078_v62 }
 0x569   : > { %10182 = vst [vmem:[#allocation107_spill] sm:$0xff] %v7848_v50  ;;  %v7869_v50 = vmul.f32 %v7370_v21, %v10188_v30 }
 0x56a   : > { %10183 = vst [vmem:[#allocation108_spill] sm:$0xff] %v7852_v44  ;;  %v6292_v44 = vld [vmem:[%s6894_s26 + $0xc8] sm:$0xff] }
 0x56b   : > { %10185 = vst [vmem:[#allocation26_spill] sm:$0xff] %v7856_v46  ;;  %v7877_v46 = vmul.f32 %v7374_v1, %v10188_v30  ;;  %3905 = vperm.xlu1 %6257, %v6292_v44   ;;  %v7896_v30 = vpop.permute.xlu0 %3255 }
 0x56c   : > { %10186 = vst [vmem:[#allocation109_spill] sm:$0xff] %v7860_v32  ;;  %v10192_v32 = vld [vmem:[#allocation34_spill] sm:$0xff] }
 0x56d   : > { %10187 = vst [vmem:[#allocation110_spill] sm:$0xff] %v7865_v24  ;;  %v7882_v3 = vmul.f32 %v7370_v21, %v10192_v32  ;;  %v7886_v54 = vmul.f32 %v7372_v8, %v10192_v32  ;;  %v10196_v24 = vld [vmem:[#allocation27_spill] sm:$0xff] }
 0x56e   : > { %10189 = vst [vmem:[#allocation20_spill] sm:$0xff] %v7869_v50  ;;  %v7890_v50 = vmul.f32 %v7374_v1, %v10192_v32  ;;  %v7900_v44 = vmul.f32 %v7372_v8, %v10196_v24 }
 0x56f   : > { %10190 = vst [vmem:[#allocation111_spill] sm:$0xff] %v7873_v6  ;;  %v7894_v6 = vmul.f32 %v7370_v21, %v10196_v24 }
 0x570   : > { %10191 = vst [vmem:[#allocation112_spill] sm:$0xff] %v7877_v46  ;;  %v7904_v46 = vmul.f32 %v7374_v1, %v10196_v24 }
 0x571   : > { %10193 = vst [vmem:[#allocation34_spill] sm:$0xff] %v7882_v3  ;;  %v10200_v3 = vld [vmem:[#allocation35_spill] sm:$0xff] }
 0x572   : > { %10194 = vst [vmem:[#allocation113_spill] sm:$0xff] %v7886_v54  ;;  %v7908_v54 = vmul.f32 %v7370_v21, %v10200_v3  ;;  %v7912_v32 = vmul.f32 %v7372_v8, %v10200_v3 }
 0x573   : > { %10195 = vst [vmem:[#allocation114_spill] sm:$0xff] %v7890_v50  ;;  %v10204_v50 = vld [vmem:[#allocation36_spill] sm:$0xff]  ;;  %6259 = vset.pattern.permute.xlu1 %v10083_v19 }
 0x574   : > { %10197 = vst [vmem:[#allocation27_spill] sm:$0xff] %v7894_v6  ;;  %v7916_v6 = vmul.f32 %v7374_v1, %v10200_v3  ;;  %v7920_v51 = vmul.f32 %v7370_v21, %v10204_v50  ;;  %v7924_v24 = vmul.f32 %v7372_v8, %v10204_v50 }
 0x575   : > { %10198 = vst [vmem:[#allocation115_spill] sm:$0xff] %v7900_v44  ;;  %v10208_v44 = vld [vmem:[#allocation28_spill] sm:$0xff] }
 0x576   : > { %10199 = vst [vmem:[#allocation116_spill] sm:$0xff] %v7904_v46  ;;  %v7936_v3 = vmul.f32 %v7372_v8, %v10208_v44  ;;  %v10212_v46 = vld [vmem:[#allocation37_spill] sm:$0xff] }
 0x577   : > { %10201 = vst [vmem:[#allocation35_spill] sm:$0xff] %v7908_v54  ;;  %v7928_v54 = vmul.f32 %v7374_v1, %v10204_v50  ;;  %v7948_v50 = vmul.f32 %v7372_v8, %v10212_v46 }
 0x578   : > { %10202 = vst [vmem:[#allocation117_spill] sm:$0xff] %v7912_v32  ;;  %v7932_v32 = vmul.f32 %v7370_v21, %v10208_v44 }
 0x579   : > { %10203 = vst [vmem:[#allocation118_spill] sm:$0xff] %v7916_v6  ;;  %v7944_v6 = vmul.f32 %v7370_v21, %v10212_v46 }
 0x57a   : > { %10205 = vst [vmem:[#allocation36_spill] sm:$0xff] %v7920_v51  ;;  %v7940_v51 = vmul.f32 %v7374_v1, %v10208_v44 }
 0x57b   : > { %10206 = vst [vmem:[#allocation119_spill] sm:$0xff] %v7924_v24  ;;  %v7952_v24 = vmul.f32 %v7374_v1, %v10212_v46 }
 0x57c   : > { %10207 = vst [vmem:[#allocation120_spill] sm:$0xff] %v7928_v54 }
 0x57d   : > { %10209 = vst [vmem:[#allocation28_spill] sm:$0xff] %v7932_v32  ;;  %v10216_v32 = vld [vmem:[#allocation38_spill] sm:$0xff] }
 0x57e   : > { %10210 = vst [vmem:[#allocation121_spill] sm:$0xff] %v7936_v3  ;;  %v7956_v54 = vmul.f32 %v7370_v21, %v10216_v32  ;;  %v7960_v44 = vmul.f32 %v7372_v8, %v10216_v32  ;;  %v10220_v3 = vld [vmem:[#allocation29_spill] sm:$0xff] }
 0x57f   : > { %10211 = vst [vmem:[#allocation122_spill] sm:$0xff] %v7940_v51  ;;  %v7973_v46 = vmul.f32 %v7372_v8, %v10220_v3  ;;  %v10224_v51 = vld [vmem:[#allocation39_spill] sm:$0xff] }
 0x580   : > { %10213 = vst [vmem:[#allocation37_spill] sm:$0xff] %v7944_v6  ;;  %v7965_v6 = vmul.f32 %v7374_v1, %v10216_v32  ;;  %v7982_v32 = vmul.f32 %v7370_v21, %v10224_v51 }
 0x581   : > { %10214 = vst [vmem:[#allocation123_spill] sm:$0xff] %v7948_v50  ;;  %v7969_v50 = vmul.f32 %v7370_v21, %v10220_v3 }
 0x582   : > { %10215 = vst [vmem:[#allocation124_spill] sm:$0xff] %v7952_v24  ;;  %v6293_v24 = vld [vmem:[%s6894_s26 + $0xb8] sm:$0xff] }
 0x583   : > { %10217 = vst [vmem:[#allocation38_spill] sm:$0xff] %v7956_v54  ;;  %v7977_v54 = vmul.f32 %v7374_v1, %v10220_v3  ;;  %3897 = vperm.xlu2 %6255, %v6293_v24  }
 0x584   : > { %10218 = vst [vmem:[#allocation125_spill] sm:$0xff] %v7960_v44  ;;  %v3264_v44 = vpop.permute.xlu1 %3263 }
 0x585   : > { %10219 = vst [vmem:[#allocation126_spill] sm:$0xff] %v7965_v6  ;;  %v7986_v6 = vmul.f32 %v7372_v8, %v10224_v51 }
 0x586   : > { %10221 = vst [vmem:[#allocation29_spill] sm:$0xff] %v7969_v50  ;;  %v7990_v50 = vmul.f32 %v7374_v1, %v10224_v51  ;;  %v3272_v51 = vpop.permute.xlu2 %3271 }
 0x587   : > { %10222 = vst [vmem:[#allocation127_spill] sm:$0xff] %v7973_v46  ;;  %v10228_v46 = vld [vmem:[#allocation40_spill] sm:$0xff] }
 0x588   : > { %10223 = vst [vmem:[#allocation128_spill] sm:$0xff] %v7977_v54  ;;  %v7994_v3 = vmul.f32 %v7370_v21, %v10228_v46  ;;  %v7998_v24 = vmul.f32 %v7372_v8, %v10228_v46  ;;  %v8002_v54 = vmul.f32 %v7374_v1, %v10228_v46  ;;  %v8021_v46 = vmul.f32 %v7372_v8, %v3264_v44 }
 0x589   : > { %10225 = vst [vmem:[#allocation39_spill] sm:$0xff] %v7982_v32  ;;  %v10232_v32 = vld [vmem:[#allocation30_spill] sm:$0xff] }
 0x58a   : > { %10226 = vst [vmem:[#allocation129_spill] sm:$0xff] %v7986_v6  ;;  %v8006_v62 = vmul.f32 %v7370_v21, %v10232_v32  ;;  %v8009_v6 = vmul.f32 %v7370_v21, %v3264_v44 }
 0x58b   : > { %10227 = vst [vmem:[#allocation130_spill] sm:$0xff] %v7990_v50 }
 0x58c   : > { %10229 = vst [vmem:[#allocation40_spill] sm:$0xff] %v7994_v3  ;;  %v8014_v3 = vmul.f32 %v7372_v8, %v10232_v32 }
 0x58d   : > { %10230 = vst [vmem:[#allocation131_spill] sm:$0xff] %v7998_v24  ;;  %v8018_v24 = vmul.f32 %v7374_v1, %v10232_v32  ;;  %v8038_v32 = vmul.f32 %v7372_v8, %v3272_v51 }
 0x58e   : > { %10231 = vst [vmem:[#allocation132_spill] sm:$0xff] %v8002_v54  ;;  %v8024_v54 = vmul.f32 %v7374_v1, %v3264_v44 }
 0x58f   : > { %10233 = vst [vmem:[#allocation30_spill] sm:$0xff] %v8006_v62  ;;  %v8027_v62 = vld [vmem:[%s6894_s26 + $0xd8] sm:$0xff] }
 0x590   : > { %10234 = vst [vmem:[#allocation133_spill] sm:$0xff] %v8009_v6  ;;  %3584 = vperm.xlu1 %6259, %v8027_v62   ;;  %v10240_v6 = vld [vmem:[#allocation41_spill] sm:$0xff] }
 0x591   : > { %10235 = vst [vmem:[#allocation134_spill] sm:$0xff] %v8014_v3  ;;  %v8032_v50 = vmul.f32 %v7370_v21, %v10240_v6  ;;  %v8035_v3 = vmul.f32 %v7370_v21, %v3272_v51  ;;  %v8045_v44 = vmul.f32 %v7372_v8, %v10240_v6 }
 0x592   : > { %10236 = vst [vmem:[#allocation135_spill] sm:$0xff] %v8018_v24  ;;  %v8041_v24 = vmul.f32 %v7374_v1, %v3272_v51 }
 0x593   : > { %10237 = vst [vmem:[#allocation136_spill] sm:$0xff] %v8021_v46  ;;  %v10244_v46 = vld [vmem:[#allocation42_spill] sm:$0xff] }
 0x594   : > { %10238 = vst [vmem:[#allocation137_spill] sm:$0xff] %v8024_v54  ;;  %v8049_v54 = vmul.f32 %v7374_v1, %v10240_v6  ;;  %v8061_v51 = vmul.f32 %v7374_v1, %v10244_v46  ;;  %v8069_v6 = vmul.f32 %v7372_v8, %v7359_v5 }
 0x595   : > { %10239 = vst [vmem:[#allocation138_spill] sm:$0xff] %v8027_v62  ;;  %v8053_v62 = vmul.f32 %v7370_v21, %v10244_v46 }
 0x596   : > { %10241 = vst [vmem:[#allocation41_spill] sm:$0xff] %v8035_v3  ;;  %v8057_v3 = vmul.f32 %v7372_v8, %v10244_v46  ;;  %v8081_v46 = vmul.f32 %v7372_v8, %v7464_v60 }
 0x597   : > { %10242 = vst [vmem:[#allocation139_spill] sm:$0xff] %v8038_v32  ;;  %v3268_v32 = vpop.permute.xlu0 %3267 }
 0x598   : > { %10243 = vst [vmem:[#allocation140_spill] sm:$0xff] %v8041_v24  ;;  %v8065_v24 = vmul.f32 %v7370_v21, %v7359_v5 }
 0x599   : > { %10245 = vst [vmem:[#allocation42_spill] sm:$0xff] %v8053_v62  ;;  %v8073_v62 = vmul.f32 %v7374_v1, %v7359_v5  ;;  %v8093_v5 = vmul.f32 %v7372_v8, %v7551_v52 }
 0x59a   : > { %10246 = vst [vmem:[#allocation141_spill] sm:$0xff] %v8057_v3  ;;  %v8077_v3 = vmul.f32 %v7370_v21, %v7464_v60 }
 0x59b   : > { %10247 = vst [vmem:[#allocation142_spill] sm:$0xff] %v8061_v51  ;;  %v8085_v51 = vmul.f32 %v7374_v1, %v7464_v60  ;;  %v8105_v60 = vmul.f32 %v7372_v8, %v7498_v40 }
 0x59c   : > { %10248 = vst [vmem:[#allocation143_spill] sm:$0xff] %v8065_v24  ;;  %v8089_v24 = vmul.f32 %v7370_v21, %v7551_v52 }
 0x59d   : > { %10249 = vst [vmem:[#allocation144_spill] sm:$0xff] %v8073_v62  ;;  %v8097_v62 = vmul.f32 %v7374_v1, %v7551_v52  ;;  %v8118_v52 = vadd.f32 %v7365_v14, %v7422_v39  ;;  %v8138_v39 = vadd.f32 %v7365_v14, %v7446_v42  ;;  %v8162_v42 = vmul.f32 %v7372_v8, %v7674_v37 }
 0x59e   : > { %10250 = vst [vmem:[#allocation145_spill] sm:$0xff] %v8077_v3  ;;  %v8101_v3 = vmul.f32 %v7370_v21, %v7498_v40 }
 0x59f   : > { %10251 = vst [vmem:[#allocation146_spill] sm:$0xff] %v8085_v51  ;;  %v6295_v51 = vld [vmem:[%s6894_s26 + $0xc0] sm:$0xff] }
 0x5a0   : > { %10252 = vst [vmem:[#allocation147_spill] sm:$0xff] %v8089_v24  ;;  %3901 = vperm.xlu2 %6255, %v6295_v51   ;;  %v8110_v24 = vmul.f32 %v7374_v1, %v7498_v40  ;;  %v8130_v40 = vmul.f32 %v7374_v1, %v7634_v28  ;;  %v8134_v51 = vmul.f32 %v7370_v21, %v7727_v16 }
 0x5a1   : > { %10253 = vst [vmem:[#allocation148_spill] sm:$0xff] %v8093_v5  ;;  %v8114_v5 = vmul.f32 %v7370_v21, %v7634_v28 }
 0x5a2   : > { %10254 = vst [vmem:[#allocation149_spill] sm:$0xff] %v8101_v3  ;;  %v8122_v3 = vadd.f32 %v7365_v14, %v7434_v48  ;;  %v8142_v48 = vmul.f32 %v7372_v8, %v7727_v16 }
 0x5a3   : > { %10255 = vst [vmem:[#allocation150_spill] sm:$0xff] %v8105_v60  ;;  %v8126_v60 = vmul.f32 %v7372_v8, %v7634_v28  ;;  %v8150_v28 = vmul.f32 %v7370_v21, %v7674_v37 }
 0x5a4   : > { %10256 = vst [vmem:[#allocation151_spill] sm:$0xff] %v8110_v24  ;;  %v10329_v24 = vld [vmem:[#allocation16_spill] sm:$0xff] }
 0x5a5   : > { %10257 = vst [vmem:[#allocation152_spill] sm:$0xff] %v8114_v5  ;;  %v8146_v5 = vmul.f32 %v7374_v1, %v7727_v16  ;;  %v8166_v16 = vmul.f32 %v7374_v1, %v7674_v37  ;;  %v8188_v37 = vmul.f32 %v7372_v8, %v7896_v30 }
 0x5a6   : > { %10258 = vst [vmem:[#allocation153_spill] sm:$0xff] %v8126_v60  ;;  %v10301_v60 = vld [vmem:[#allocation87_spill] sm:$0xff] }
 0x5a7   : > { %10259 = vst [vmem:[#allocation154_spill] sm:$0xff] %v8130_v40  ;;  %v8154_v40 = vadd.f32 %v7365_v14, %v7458_v7  ;;  %v8174_v7 = vmul.f32 %v7372_v8, %v7809_v20 }
 0x5a8   : > { %10260 = vst [vmem:[#allocation155_spill] sm:$0xff] %v8134_v51  ;;  %v8157_v51 = vld [vmem:[%s6894_s26 + $0xe0] sm:$0xff]  ;;  %6258 = vset.pattern.permute.xlu2 %v10083_v19  ;;  %v10299_v19 = vld [vmem:[#allocation86_spill] sm:$0xff] }
 0x5a9   : > { %10261 = vst [vmem:[#allocation156_spill] sm:$0xff] %v8142_v48  ;;  %3588 = vperm.xlu1 %6259, %v8157_v51   ;;  %v8180_v48 = vmul.f32 %v7374_v1, %v7809_v20 }
 0x5aa   : > { %10262 = vst [vmem:[#allocation157_spill] sm:$0xff] %v8146_v5  ;;  %v8170_v5 = vmul.f32 %v7370_v21, %v7809_v20  ;;  %v8200_v20 = vmul.f32 %v7370_v21, %v7844_v63 }
 0x5ab   : > { %10263 = vst [vmem:[#allocation158_spill] sm:$0xff] %v8150_v28  ;;  %v8176_v28 = vpop.permute.xlu2 %3829 }
 0x5ac   : > { %10264 = vst [vmem:[#allocation159_spill] sm:$0xff] %v8162_v42  ;;  %v8184_v42 = vmul.f32 %v7370_v21, %v7896_v30 }
 0x5ad   : > { %10265 = vst [vmem:[#allocation160_spill] sm:$0xff] %v8166_v16  ;;  %v3501_v16 = vpop.permute.xlu1 %3500 }
 0x5ae   : > { %10266 = vst [vmem:[#allocation161_spill] sm:$0xff] %v8170_v5  ;;  %v8192_v5 = vadd.f32 %v7368_v38, %v7502_v45  ;;  %v8212_v45 = vmul.f32 %v7374_v1, %v7844_v63 }
 0x5af   : > { %10267 = vst [vmem:[#allocation162_spill] sm:$0xff] %v8174_v7  ;;  %v10297_v7 = vld [vmem:[#allocation85_spill] sm:$0xff] }
 0x5b0   : > { %10268 = vst [vmem:[#allocation163_spill] sm:$0xff] %v8176_v28  ;;  %v8196_v28 = vmul.f32 %v7374_v1, %v7896_v30  ;;  %v8218_v30 = vmul.f32 %v7372_v8, %v3268_v32 }
 0x5b1   : > { %10269 = vst [vmem:[#allocation164_spill] sm:$0xff] %v8180_v48  ;;  %v8215_v48 = vmul.f32 %v7370_v21, %v3268_v32  ;;  %v8235_v21 = vmul.f32 %v7374_v1, %v3268_v32  ;;  %v8257_v1 = vadd.f32 %v7368_v38, %v7567_v13  ;;  %v8269_v32 = vadd.f32 %v7368_v38, %v7580_v15 }
 0x5b2   : > { %10270 = vst [vmem:[#allocation165_spill] sm:$0xff] %v8184_v42  ;;  %v8204_v42 = vmul.f32 %v7372_v8, %v7844_v63  ;;  %v8232_v63 = vpop.permute.xlu0 %3504  ;;  %v8238_v8 = vmul.f32 %v7377_v2, %v3501_v16  ;;  %v8277_v13 = vadd.f32 %v7365_v14, %v7588_v59  ;;  %v8290_v15 = vadd.f32 %v7365_v14, %v7600_v17  ;;  %v6076_v59 = vld [vmem:[%s9966_s11 + $0x20] sm:$0xff] }
 0x5b3   : > { %10271 = vst [vmem:[#allocation166_spill] sm:$0xff] %v8188_v37  ;;  %v8208_v37 = vadd.f32 %v7368_v38, %v7514_v55  ;;  %v8230_v55 = vld [vmem:[%s9966_s11 + $0x68] sm:$0xff]  ;;  %v8310_v17 = vadd.f32 %v7365_v14, %v7612_v27  ;;  %v8331_v27 = vadd.f32 %v7362_v36, %v7632_v23  ;;  %v8351_v23 = vadd.f32 %v7368_v38, %v7654_v53 }
 0x5b4   : > { %10272 = vst [vmem:[#allocation167_spill] sm:$0xff] %v8196_v28  ;;  %6107 = vmatpush.bf16.msrb.mxu3 %v8230_v55 }
 0x5b5   : > { %10273 = vst [vmem:[#allocation168_spill] sm:$0xff] %v8200_v20  ;;  %v8222_v20 = vadd.f32 %v7368_v38, %v7527_v10  ;;  %v8242_v10 = vadd.f32 %v7368_v38, %v7540_v61  ;;  %v8261_v61 = vadd.f32 %v7362_v36, %v7572_v57  ;;  %v8282_v57 = vadd.f32 %v7368_v38, %v7592_v35  ;;  %v8302_v35 = vld [vmem:[%s9966_s11 + $0x60] sm:$0xff]  ;;  %v8388_v28 = vpop.permute.xlu1 %3833 }
 0x5b6   : > { %10274 = vst [vmem:[#allocation169_spill] sm:$0xff] %v8204_v42  ;;  %v6077_v42 = vld [vmem:[%s9966_s11 + $0x28] sm:$0xff] }
 0x5b7   : > { %10275 = vst [vmem:[#allocation170_spill] sm:$0xff] %v8212_v45  ;;  %v8253_v45 = vmul.f32 %v7381_v25, %v3501_v16  ;;  %6099 = vmatpush.bf16.msrb.mxu2 %v6077_v42  ;;  %4475 = vmatpush.bf16.msrb.mxu1 %v6077_v42  ;;  %v8323_v42 = vadd.f32 %v7365_v14, %v7624_v9 }
 0x5b8   : > { %10276 = vst [vmem:[#allocation171_spill] sm:$0xff] %v8215_v48  ;;  %v8250_v48 = vmul.f32 %v7379_v47, %v3501_v16  ;;  %v8273_v16 = vadd.f32 %v7362_v36, %v7584_v4  ;;  %v8294_v4 = vadd.f32 %v7368_v38, %v7604_v33  ;;  %v8314_v33 = vadd.f32 %v7368_v38, %v7616_v43 }
 0x5b9   : > { %10277 = vst [vmem:[#allocation172_spill] sm:$0xff] %v8218_v30  ;;  %v8246_v30 = vadd.f32 %v7368_v38, %v7555_v12  ;;  %v8265_v12 = vadd.f32 %v7365_v14, %v7576_v0  ;;  %v8286_v0 = vadd.f32 %v7362_v36, %v7596_v49  ;;  %v8306_v49 = vadd.f32 %v7362_v36, %v7608_v34 }
 0x5ba   : > { %10278 = vst [vmem:[#allocation173_spill] sm:$0xff] %v8230_v55  ;;  %v8327_v34 = vadd.f32 %v7368_v38, %v7628_v31  ;;  %v8335_v43 = vadd.f32 %v7365_v14, %v7638_v18  ;;  %v8343_v9 = vadd.f32 %v7362_v36, %v7646_v56  ;;  %v8347_v31 = vadd.f32 %v7365_v14, %v7650_v22  ;;  %v8354_v18 = vpop.permute.xlu2 %3508  ;;  %v10291_v55 = vld [vmem:[#allocation83_spill] sm:$0xff] }
 0x5bb   : > { %10279 = vst [vmem:[#allocation174_spill] sm:$0xff] %v8235_v21  ;;  %6100 = vmatpush.bf16.msrb.mxu2 %v6076_v59  ;;  %6108 = vmatpush.bf16.msrb.mxu3 %v8302_v35  ;;  %v8362_v56 = vadd.f32 %v7365_v14, %v7662_v26  ;;  %v8366_v22 = vadd.f32 %v7368_v38, %v7666_v41  ;;  %v10289_v21 = vld [vmem:[#allocation14_spill] sm:$0xff] }
 0x5bc   : > { %10280 = vst [vmem:[#allocation175_spill] sm:$0xff] %v8238_v8  ;;  %v6297_v8 = vld [vmem:[%s6894_s26 + $0xd0] sm:$0xff]  ;;  %4476 = vmatpush.bf16.msrb.mxu1 %v6076_v59  ;;  %v8382_v26 = vadd.f32 %v7362_v36, %v10289_v21  ;;  %v8386_v41 = vadd.f32 %v7365_v14, %v10291_v55  ;;  %v10295_v59 = vld [vmem:[#allocation84_spill] sm:$0xff]  ;;  %v8401_v21 = vadd.f32 %v7365_v14, %v10299_v19 }
 0x5bd   : > { %10281 = vst [vmem:[#allocation176_spill] sm:$0xff] %v8250_v48  ;;  %v8318_v48 = vadd.f32 %v7362_v36, %v7620_v58  ;;  %3580 = vperm.xlu2 %6258, %v6297_v8   ;;  %v8339_v58 = vadd.f32 %v7368_v38, %v7642_v29  ;;  %v8358_v29 = vadd.f32 %v7362_v36, %v7658_v11  ;;  %v10285_v8 = vld [vmem:[#allocation21_spill] sm:$0xff]  ;;  %v10309_v19 = vld [vmem:[#allocation19_spill] sm:$0xff] }
 0x5be   : > { %10282 = vst [vmem:[#allocation177_spill] sm:$0xff] %v8253_v45  ;;  %v8370_v53 = vadd.f32 %v7362_v36, %v10285_v8  ;;  %v10287_v45 = vld [vmem:[#allocation82_spill] sm:$0xff]  ;;  %v10294_v8 = vmov 3   ;;  %v8405_v55 = vadd.f32 %v7368_v38, %v10301_v60  ;;  %v10311_v60 = vld [vmem:[#allocation15_spill] sm:$0xff] }
 0x5bf   : > { %10283 = vst [vmem:[#allocation178_spill] sm:$0xff] %v8302_v35  ;;  %v10286_v35 = vld [vmem:[#allocation81_spill] sm:$0xff]  ;;  %v8378_v11 = vadd.f32 %v7368_v38, %v10287_v45  ;;  %6263 = vset.pattern.permute.xlu1 %v10294_v8  ;;  %v8397_v45 = vadd.f32 %v7362_v36, %v10297_v7 }
 0x5c0   : > { %10284 = vst [vmem:[#allocation179_spill] sm:$0xff] %v8354_v18  ;;  %v8374_v18 = vadd.f32 %v7365_v14, %v10286_v35  ;;  %v8393_v35 = vadd.f32 %v7368_v38, %v10295_v59  ;;  %3917 = vperm.xlu1 %6263, %v8157_v51   ;;  %v10305_v59 = vld [vmem:[#allocation88_spill] sm:$0xff]  ;;  %v10307_v7 = vld [vmem:[#allocation89_spill] sm:$0xff]  ;;  %v8426_v51 = vadd.f32 %v7365_v14, %v10311_v60 }
 0x5c1   : > { %10288 = vst [vmem:[#allocation21_spill] sm:$0xff] %v8378_v11  ;;  %v8446_v60 = vld [vmem:[%s9966_s11 + $0x58] sm:$0xff]  ;;  %v8472_v11 = vadd.f32 %v7362_v36, %v10329_v24 }
 0x5c2   : > { %10290 = vst [vmem:[#allocation81_spill] sm:$0xff] %v8382_v26  ;;  %6109 = vmatpush.bf16.msrb.mxu3 %v8446_v60 }
 0x5c3   : > { %10292 = vst [vmem:[#allocation82_spill] sm:$0xff] %v8386_v41  ;;  %v10303_v41 = vld [vmem:[#allocation22_spill] sm:$0xff] }
 0x5c4   : > { %10293 = vst [vmem:[#allocation14_spill] sm:$0xff] %v8388_v28  ;;  %v3838_v28 = vpop.permute.xlu0 %3837  ;;  %v8410_v26 = vadd.f32 %v7362_v36, %v10303_v41 }
 0x5c5   : > { %10296 = vst [vmem:[#allocation83_spill] sm:$0xff] %v8393_v35  ;;  %v8414_v35 = vadd.f32 %v7365_v14, %v10305_v59  ;;  %6261 = vset.pattern.permute.xlu2 %v10294_v8 }
 0x5c6   : > { %10298 = vst [vmem:[#allocation84_spill] sm:$0xff] %v8397_v45  ;;  %v8418_v45 = vadd.f32 %v7368_v38, %v10307_v7 }
 0x5c7   : > { %10300 = vst [vmem:[#allocation85_spill] sm:$0xff] %v8401_v21  ;;  %v8422_v21 = vadd.f32 %v7362_v36, %v10309_v19  ;;  %v6075_v19 = vld [vmem:[%s9966_s11 + $0x18] sm:$0xff] }
 0x5c8   : > { %10302 = vst [vmem:[#allocation86_spill] sm:$0xff] %v8405_v55  ;;  %v10313_v55 = vld [vmem:[#allocation90_spill] sm:$0xff]  ;;  %6101 = vmatpush.bf16.msrb.mxu2 %v6075_v19  ;;  %4477 = vmatpush.bf16.msrb.mxu1 %v6075_v19 }
 0x5c9   : > { %10304 = vst [vmem:[#allocation87_spill] sm:$0xff] %v8410_v26  ;;  %v8430_v41 = vadd.f32 %v7368_v38, %v10313_v55  ;;  %v10315_v26 = vld [vmem:[#allocation31_spill] sm:$0xff]  ;;  %v8451_v55 = vld [vmem:[%s9966_s11 + $0xb8] sm:$0xff] }
 0x5ca   : > { %10306 = vst [vmem:[#allocation22_spill] sm:$0xff] %v8414_v35  ;;  %v8434_v59 = vadd.f32 %v7362_v36, %v10315_v26  ;;  %v10317_v35 = vld [vmem:[#allocation91_spill] sm:$0xff]  ;;  %v10321_v26 = vld [vmem:[#allocation92_spill] sm:$0xff]  ;;  %4651 = vmatpush.bf16.msrb.mxu0 %v8451_v55 }
 0x5cb   : > { %10308 = vst [vmem:[#allocation88_spill] sm:$0xff] %v8418_v45  ;;  %v8438_v7 = vadd.f32 %v7365_v14, %v10317_v35  ;;  %v10323_v35 = vld [vmem:[#allocation23_spill] sm:$0xff] }
 0x5cc   : > { %10310 = vst [vmem:[#allocation89_spill] sm:$0xff] %v8422_v21  ;;  %v10327_v21 = vld [vmem:[#allocation94_spill] sm:$0xff] }
 0x5cd   : > { %10312 = vst [vmem:[#allocation19_spill] sm:$0xff] %v8426_v51  ;;  %v8467_v45 = vadd.f32 %v7368_v38, %v10327_v21  ;;  %v10335_v21 = vld [vmem:[#allocation97_spill] sm:$0xff] }
 0x5ce   : > { %10314 = vst [vmem:[#allocation15_spill] sm:$0xff] %v8430_v41  ;;  %v10325_v41 = vld [vmem:[#allocation93_spill] sm:$0xff]  ;;  %v8488_v8 = vadd.f32 %v7365_v14, %v10335_v21  ;;  %v8509_v21 = vmul.f32 %v7379_v47, %v8232_v63  ;;  %v10350_v47 = vld [vmem:[#allocation47_spill] sm:$0xff] }
 0x5cf   : > { %10316 = vst [vmem:[#allocation90_spill] sm:$0xff] %v8434_v59  ;;  %v8455_v59 = vadd.f32 %v7368_v38, %v10321_v26  ;;  %v8463_v51 = vadd.f32 %v7365_v14, %v10325_v41  ;;  %v10331_v26 = vld [vmem:[#allocation95_spill] sm:$0xff]  ;;  %v10334_v41 = vld [vmem:[#allocation32_spill] sm:$0xff] }
 0x5d0   : > { %10318 = vst [vmem:[#allocation31_spill] sm:$0xff] %v8438_v7  ;;  %v8459_v7 = vadd.f32 %v7362_v36, %v10323_v35  ;;  %v10333_v35 = vld [vmem:[#allocation96_spill] sm:$0xff] }
 0x5d1   : > { %10319 = vst [vmem:[#allocation91_spill] sm:$0xff] %v8446_v60  ;;  %v8534_v60 = vmul.f32 %v10350_v47, %v3838_v28 }
 0x5d2   : > { %10320 = vst [vmem:[#allocation180_spill] sm:$0xff] %v8451_v55  ;;  %v10354_v55 = vld [vmem:[#allocation51_spill] sm:$0xff] }
 0x5d3   : > { %10322 = vst [vmem:[#allocation92_spill] sm:$0xff] %v8455_v59  ;;  %v8476_v59 = vadd.f32 %v7365_v14, %v10331_v26 }
 0x5d4   : > { %10324 = vst [vmem:[#allocation23_spill] sm:$0xff] %v8459_v7  ;;  %v8480_v7 = vadd.f32 %v7368_v38, %v10333_v35 }
 0x5d5   : > { %10326 = vst [vmem:[#allocation93_spill] sm:$0xff] %v8463_v51  ;;  %v8484_v51 = vadd.f32 %v7362_v36, %v10334_v41  ;;  %v8505_v41 = vmul.f32 %v7377_v2, %v8232_v63  ;;  %v8526_v2 = vld [vmem:[%s9966_s11 + $0x50] sm:$0xff] }
 0x5d6   : > { %10328 = vst [vmem:[#allocation94_spill] sm:$0xff] %v8467_v45  ;;  %v10337_v45 = vld [vmem:[#allocation98_spill] sm:$0xff]  ;;  %6110 = vmatpush.bf16.msrb.mxu3 %v8526_v2 }
 0x5d7   : > { %10330 = vst [vmem:[#allocation16_spill] sm:$0xff] %v8472_v11  ;;  %v8492_v24 = vadd.f32 %v7368_v38, %v10337_v45  ;;  %v10339_v11 = vld [vmem:[#allocation24_spill] sm:$0xff]  ;;  %v8513_v45 = vmul.f32 %v7381_v25, %v8232_v63  ;;  %v8531_v63 = vld [vmem:[%s9966_s11 + $0xb0] sm:$0xff]  ;;  %v8540_v25 = vmul.f32 %v10354_v55, %v3838_v28  ;;  %v10367_v55 = vld [vmem:[#allocation54_spill] sm:$0xff] }
 0x5d8   : > { %10332 = vst [vmem:[#allocation95_spill] sm:$0xff] %v8476_v59  ;;  %v8496_v26 = vadd.f32 %v7362_v36, %v10339_v11  ;;  %v10341_v59 = vld [vmem:[#allocation99_spill] sm:$0xff]  ;;  %v10346_v11 = vld [vmem:[#allocation100_spill] sm:$0xff]  ;;  %4652 = vmatpush.bf16.msrb.mxu0 %v8531_v63 }
 0x5d9   : > { %10336 = vst [vmem:[#allocation96_spill] sm:$0xff] %v8488_v8  ;;  %v8500_v35 = vadd.f32 %v7365_v14, %v10341_v59  ;;  %v6074_v59 = vld [vmem:[%s9966_s11 + $0x10] sm:$0xff]  ;;  %v10359_v8 = vld [vmem:[#allocation50_spill] sm:$0xff] }
 0x5da   : > { %10338 = vst [vmem:[#allocation32_spill] sm:$0xff] %v8492_v24  ;;  %6102 = vmatpush.bf16.msrb.mxu2 %v6074_v59  ;;  %4478 = vmatpush.bf16.msrb.mxu1 %v6074_v59  ;;  %v10397_v59 = vld [vmem:[#allocation63_spill] sm:$0xff] }
 0x5db   : > { %10340 = vst [vmem:[#allocation97_spill] sm:$0xff] %v8496_v26  ;;  %v8517_v26 = vadd.f32 %v7368_v38, %v10346_v11  ;;  %v10352_v11 = vld [vmem:[#allocation48_spill] sm:$0xff] }
 0x5dc   : > { %10342 = vst [vmem:[#allocation98_spill] sm:$0xff] %v8500_v35  ;;  %v10358_v35 = vld [vmem:[#allocation49_spill] sm:$0xff] }
 0x5dd   : > { %10343 = vst [vmem:[#allocation24_spill] sm:$0xff] %v8505_v41  ;;  %v10356_v41 = vld [vmem:[#allocation46_spill] sm:$0xff]  ;;  %v8550_v24 = vadd.f32 %v7365_v14, %v10358_v35 }
 0x5de   : > { %10344 = vst [vmem:[#allocation99_spill] sm:$0xff] %v8509_v21  ;;  %v8537_v21 = vmul.f32 %v10352_v11, %v3838_v28  ;;  %v10362_v28 = vld [vmem:[#allocation107_spill] sm:$0xff] }
 0x5df   : > { %10345 = vst [vmem:[#allocation181_spill] sm:$0xff] %v8513_v45  ;;  %v8544_v45 = vadd.f32 %v7362_v36, %v10356_v41  ;;  %v10364_v41 = vld [vmem:[#allocation52_spill] sm:$0xff] }
 0x5e0   : > { %10347 = vst [vmem:[#allocation100_spill] sm:$0xff] %v8517_v26  ;;  %v8546_v26 = vpop.permute.xlu2 %3841  ;;  %v8566_v19 = vadd.f32 %v7362_v36, %v10364_v41 }
 0x5e1   : > { %10348 = vst [vmem:[#allocation182_spill] sm:$0xff] %v8526_v2  ;;  %v10388_v2 = vld [vmem:[#allocation61_spill] sm:$0xff] }
 0x5e2   : > { %10349 = vst [vmem:[#allocation183_spill] sm:$0xff] %v8531_v63 }
 0x5e3   : > { %10351 = vst [vmem:[#allocation184_spill] sm:$0xff] %v8534_v60  ;;  %v8554_v60 = vadd.f32 %v7368_v38, %v10359_v8  ;;  %v8574_v8 = vadd.f32 %v7368_v38, %v10367_v55 }
 0x5e4   : > { %10353 = vst [vmem:[#allocation185_spill] sm:$0xff] %v8537_v21  ;;  %v10360_v21 = vld [vmem:[#allocation105_spill] sm:$0xff] }
 0x5e5   : > { %10355 = vst [vmem:[#allocation186_spill] sm:$0xff] %v8540_v25  ;;  %v8558_v11 = vadd.f32 %v10360_v21, %v8118_v52  ;;  %v8562_v25 = vadd.f32 %v10362_v28, %v8122_v3  ;;  %v10369_v52 = vld [vmem:[#allocation109_spill] sm:$0xff]  ;;  %v8581_v3 = vpop.permute.xlu1 %3512  ;;  %v10372_v28 = vld [vmem:[#allocation55_spill] sm:$0xff] }
 0x5e6   : > { %10357 = vst [vmem:[#allocation46_spill] sm:$0xff] %v8546_v26  ;;  %v10365_v26 = vld [vmem:[#allocation53_spill] sm:$0xff]  ;;  %v8578_v21 = vadd.f32 %v10369_v52, %v8138_v39  ;;  %v8585_v41 = vadd.f32 %v7362_v36, %v10372_v28  ;;  %v6073_v52 = vld [vmem:[%s9966_s11 + $0x8] sm:$0xff] }
 0x5e7   : > { %10361 = vst [vmem:[#allocation49_spill] sm:$0xff] %v8558_v11  ;;  %v8570_v35 = vadd.f32 %v7365_v14, %v10365_v26  ;;  %v10376_v11 = vld [vmem:[#allocation57_spill] sm:$0xff]  ;;  %v8606_v28 = vld [vmem:[%s9966_s11 + $0x48] sm:$0xff]  ;;  %6103 = vmatpush.bf16.msrb.mxu2 %v6073_v52  ;;  %4479 = vmatpush.bf16.msrb.mxu1 %v6073_v52 }
 0x5e8   : > { %10363 = vst [vmem:[#allocation50_spill] sm:$0xff] %v8562_v25  ;;  %v10374_v25 = vld [vmem:[#allocation56_spill] sm:$0xff]  ;;  %v8593_v55 = vadd.f32 %v7362_v36, %v10376_v11  ;;  %v10382_v11 = vld [vmem:[#allocation58_spill] sm:$0xff]  ;;  %6111 = vmatpush.bf16.msrb.mxu3 %v8606_v28 }
 0x5e9   : > { %10366 = vst [vmem:[#allocation105_spill] sm:$0xff] %v8570_v35  ;;  %v8589_v26 = vadd.f32 %v7368_v38, %v10374_v25  ;;  %v8611_v25 = vld [vmem:[%s9966_s11 + $0xa8] sm:$0xff] }
 0x5ea   : > { %10368 = vst [vmem:[#allocation107_spill] sm:$0xff] %v8574_v8  ;;  %v10378_v8 = vld [vmem:[#allocation111_spill] sm:$0xff]  ;;  %4653 = vmatpush.bf16.msrb.mxu0 %v8611_v25  ;;  %v10424_v52 = vld [vmem:[#allocation130_spill] sm:$0xff] }
 0x5eb   : > { %10370 = vst [vmem:[#allocation52_spill] sm:$0xff] %v8578_v21  ;;  %v8597_v39 = vadd.f32 %v10378_v8, %v8154_v40  ;;  %v8615_v40 = vadd.f32 %v7368_v38, %v10382_v11  ;;  %v10384_v8 = vld [vmem:[#allocation59_spill] sm:$0xff]  ;;  %v10386_v21 = vld [vmem:[#allocation60_spill] sm:$0xff]  ;;  %v10393_v11 = vld [vmem:[#allocation65_spill] sm:$0xff] }
 0x5ec   : > { %10371 = vst [vmem:[#allocation53_spill] sm:$0xff] %v8581_v3  ;;  %v8623_v63 = vadd.f32 %v7368_v38, %v10386_v21  ;;  %v8627_v3 = vadd.f32 %v7362_v36, %v10388_v2  ;;  %v10395_v21 = vld [vmem:[#allocation118_spill] sm:$0xff]  ;;  %v6072_v2 = vld [vmem:[%s9966_s11] sm:$0xff] }
 0x5ed   : > { %10373 = vst [vmem:[#allocation54_spill] sm:$0xff] %v8585_v41  ;;  %6104 = vmatpush.bf16.msrb.mxu2 %v6072_v2  ;;  %4480 = vmatpush.bf16.msrb.mxu1 %v6072_v2 }
 0x5ee   : > { %10375 = vst [vmem:[#allocation109_spill] sm:$0xff] %v8589_v26  ;;  %v10391_v26 = vld [vmem:[#allocation62_spill] sm:$0xff] }
 0x5ef   : > { %10377 = vst [vmem:[#allocation55_spill] sm:$0xff] %v8593_v55  ;;  %v8629_v55 = vpop.permute.xlu0 %3809  ;;  %v8633_v41 = vadd.f32 %v7368_v38, %v10391_v26  ;;  %v10398_v26 = vld [vmem:[#allocation64_spill] sm:$0xff] }
 0x5f0   : > { %10379 = vst [vmem:[#allocation56_spill] sm:$0xff] %v8597_v39  ;;  %v8619_v39 = vadd.f32 %v7362_v36, %v10384_v8  ;;  %v10394_v8 = vld [vmem:[#allocation68_spill] sm:$0xff] }
 0x5f1   : > { %10380 = vst [vmem:[#allocation57_spill] sm:$0xff] %v8606_v28  ;;  %v8688_v28 = vld [vmem:[%s9966_s11 + $0xa0] sm:$0xff] }
 0x5f2   : > { %10381 = vst [vmem:[#allocation111_spill] sm:$0xff] %v8611_v25  ;;  %v8706_v25 = vpop.permute.xlu2 %3480  ;;  %4654 = vmatpush.bf16.msrb.mxu0 %v8688_v28 }
 0x5f3   : > { %10383 = vst [vmem:[#allocation58_spill] sm:$0xff] %v8615_v40  ;;  %v3070_v40 = vadd.f32 %v7368_v38, %v10393_v11  ;;  %v10399_v11 = vld [vmem:[#allocation66_spill] sm:$0xff] }
 0x5f4   : > { %10385 = vst [vmem:[#allocation59_spill] sm:$0xff] %v8619_v39  ;;  %v3073_v39 = vadd.f32 %v7368_v38, %v10394_v8  ;;  %v8656_v38 = vadd.f32 %v7362_v36, %v10399_v11  ;;  %v10405_v11 = vld [vmem:[#allocation70_spill] sm:$0xff] }
 0x5f5   : > { %10387 = vst [vmem:[#allocation60_spill] sm:$0xff] %v8623_v63  ;;  %v8641_v63 = vadd.f32 %v10395_v21, %v8192_v5  ;;  %v10400_v5 = vld [vmem:[#allocation120_spill] sm:$0xff]  ;;  %v8666_v21 = vld [vmem:[%s9966_s11 + $0x40] sm:$0xff] }
 0x5f6   : > { %10389 = vst [vmem:[#allocation61_spill] sm:$0xff] %v8627_v3  ;;  %v8660_v8 = vadd.f32 %v10400_v5, %v8208_v37  ;;  %v10407_v37 = vld [vmem:[#allocation122_spill] sm:$0xff]  ;;  %6112 = vmatpush.bf16.msrb.mxu3 %v8666_v21 }
 0x5f7   : > { %10390 = vst [vmem:[#allocation187_spill] sm:$0xff] %v8629_v55  ;;  %v8648_v55 = vadd.f32 %v7362_v36, %v10397_v59  ;;  %v10402_v59 = vld [vmem:[#allocation67_spill] sm:$0xff]  ;;  %v8682_v5 = vadd.f32 %v10407_v37, %v8222_v20  ;;  %v10415_v20 = vld [vmem:[#allocation126_spill] sm:$0xff] }
 0x5f8   : > { %10392 = vst [vmem:[#allocation62_spill] sm:$0xff] %v8633_v41  ;;  %v8652_v41 = vadd.f32 %v7365_v14, %v10398_v26  ;;  %v8670_v3 = vadd.f32 %v7365_v14, %v10402_v59  ;;  %v10403_v26 = vld [vmem:[#allocation69_spill] sm:$0xff]  ;;  %v10410_v59 = vld [vmem:[#allocation71_spill] sm:$0xff]  ;;  %v8704_v37 = vadd.f32 %v10415_v20, %v8246_v30 }
 0x5f9   : > { %10396 = vst [vmem:[#allocation65_spill] sm:$0xff] %v8641_v63  ;;  %v8674_v35 = vadd.f32 %v7362_v36, %v10403_v26  ;;  %v8678_v63 = vadd.f32 %v7365_v14, %v10405_v11  ;;  %v10412_v26 = vld [vmem:[#allocation72_spill] sm:$0xff]  ;;  %v10422_v30 = vld [vmem:[#allocation129_spill] sm:$0xff] }
 0x5fa   : > { %10401 = vst [vmem:[#allocation68_spill] sm:$0xff] %v8660_v8  ;;  %v8692_v8 = vadd.f32 %v7362_v36, %v10410_v59  ;;  %v10414_v11 = vld [vmem:[#allocation124_spill] sm:$0xff]  ;;  %v8724_v20 = vadd.f32 %v10422_v30, %v8265_v12  ;;  %v10434_v30 = vld [vmem:[#allocation134_spill] sm:$0xff] }
 0x5fb   : > { %10404 = vst [vmem:[#allocation118_spill] sm:$0xff] %v8674_v35  ;;  %v8696_v35 = vadd.f32 %v7365_v14, %v10412_v26  ;;  %v10417_v59 = vld [vmem:[#allocation116_spill] sm:$0xff] }
 0x5fc   : > { %10406 = vst [vmem:[#allocation63_spill] sm:$0xff] %v8678_v63  ;;  %v8700_v63 = vadd.f32 %v10414_v11, %v8242_v10  ;;  %v10418_v26 = vld [vmem:[#allocation128_spill] sm:$0xff]  ;;  %v10420_v10 = vld [vmem:[#allocation39_spill] sm:$0xff] }
 0x5fd   : > { %10408 = vst [vmem:[#allocation64_spill] sm:$0xff] %v8682_v5  ;;  %v10416_v5 = vld [vmem:[#allocation114_spill] sm:$0xff]  ;;  %v8720_v11 = vadd.f32 %v10420_v10, %v8261_v61  ;;  %v8739_v61 = vpop.permute.xlu1 %3476 }
 0x5fe   : > { %10409 = vst [vmem:[#allocation66_spill] sm:$0xff] %v8688_v28  ;;  %v8709_v47 = vadd.f32 %v10416_v5, %v3070_v40  ;;  %v8728_v40 = vadd.f32 %v10424_v52, %v8269_v32  ;;  %v10432_v10 = vld [vmem:[#allocation30_spill] sm:$0xff]  ;;  %v10436_v52 = vld [vmem:[#allocation135_spill] sm:$0xff] }
 0x5ff   : > { %10411 = vst [vmem:[#allocation120_spill] sm:$0xff] %v8692_v8  ;;  %v8712_v8 = vadd.f32 %v10417_v59, %v3073_v39  ;;  %v10426_v39 = vld [vmem:[#allocation40_spill] sm:$0xff]  ;;  %v8747_v32 = vadd.f32 %v10432_v10, %v8286_v0  ;;  %v8769_v0 = vadd.f32 %v8045_v44, %v8310_v17  ;;  %v10448_v44 = vld [vmem:[#allocation143_spill] sm:$0xff] }
 0x600   : > { %10413 = vst [vmem:[#allocation67_spill] sm:$0xff] %v8696_v35  ;;  %v8716_v35 = vadd.f32 %v10418_v26, %v8257_v1  ;;  %v8732_v5 = vadd.f32 %v10426_v39, %v8273_v16  ;;  %v10428_v1 = vld [vmem:[#allocation131_spill] sm:$0xff]  ;;  %v10430_v26 = vld [vmem:[#allocation132_spill] sm:$0xff]  ;;  %v8751_v16 = vadd.f32 %v10434_v30, %v8290_v15  ;;  %v8773_v15 = vadd.f32 %v8049_v54, %v8314_v33  ;;  %v8814_v30 = vpop.permute.xlu0 %3845 }
 0x601   : > { %10421 = vst [vmem:[#allocation70_spill] sm:$0xff] %v8720_v11  ;;  %v8736_v59 = vadd.f32 %v10428_v1, %v8277_v13  ;;  %v8743_v12 = vadd.f32 %v10430_v26, %v8282_v57  ;;  %v8755_v13 = vadd.f32 %v10436_v52, %v8294_v4  ;;  %v8761_v39 = vld [vmem:[%s9966_s11 + $0x98] sm:$0xff]  ;;  %v8765_v57 = vadd.f32 %v8032_v50, %v8306_v49  ;;  %v10442_v4 = vld [vmem:[#allocation42_spill] sm:$0xff]  ;;  %v10444_v26 = vld [vmem:[#allocation141_spill] sm:$0xff] }
 0x602   : > { %10419 = vst [vmem:[#allocation69_spill] sm:$0xff] %v8716_v35  ;;  %v8777_v1 = vadd.f32 %v10442_v4, %v8318_v48  ;;  %v8781_v10 = vadd.f32 %v10444_v26, %v8323_v42  ;;  %v10446_v50 = vld [vmem:[#allocation142_spill] sm:$0xff]  ;;  %v8789_v17 = vadd.f32 %v10448_v44, %v8331_v27  ;;  %v8793_v54 = vadd.f32 %v8069_v6, %v8335_v43  ;;  %v6298_v48 = vld [vmem:[%s9966_s11 + $0x78] sm:$0xff]  ;;  %v10459_v4 = vld [vmem:[#allocation147_spill] sm:$0xff] }
 0x603   : > { %10423 = vst [vmem:[#allocation122_spill] sm:$0xff] %v8724_v20  ;;  %v8785_v49 = vadd.f32 %v10446_v50, %v8327_v34  ;;  %4562 = vmatpush.bf16.msra.mxu1 %v6298_v48  ;;  %v10451_v33 = vld [vmem:[#allocation144_spill] sm:$0xff]  ;;  %v10453_v34 = vld [vmem:[#allocation145_spill] sm:$0xff]  ;;  %v8808_v27 = vadd.f32 %v8081_v46, %v8347_v31  ;;  %v10456_v6 = vld [vmem:[#allocation146_spill] sm:$0xff]  ;;  %v8827_v46 = vadd.f32 %v8097_v62, %v8366_v22 }
 0x604   : > { %10425 = vst [vmem:[#allocation71_spill] sm:$0xff] %v8728_v40  ;;  %v8800_v42 = vadd.f32 %v10451_v33, %v8339_v58  ;;  %v8804_v2 = vadd.f32 %v10453_v34, %v8343_v9  ;;  %v8812_v43 = vadd.f32 %v10456_v6, %v8351_v23  ;;  %v10458_v52 = vld [vmem:[#allocation138_spill] sm:$0xff]  ;;  %v8819_v58 = vadd.f32 %v10459_v4, %v8358_v29  ;;  %v10461_v26 = vld [vmem:[#allocation148_spill] sm:$0xff]  ;;  %v10464_v31 = vld [vmem:[#allocation149_spill] sm:$0xff]  ;;  %v8855_v4 = vpop.permute.xlu2 %3516 }
 0x605   : > { %10427 = vst [vmem:[#allocation72_spill] sm:$0xff] %v8732_v5  ;;  %3913 = vperm.xlu2 %6261, %v10458_v52   ;;  %v8823_v9 = vadd.f32 %v10461_v26, %v8362_v56  ;;  %v8831_v23 = vadd.f32 %v10464_v31, %v8370_v53  ;;  %4655 = vmatpush.bf16.msrb.mxu0 %v8761_v39  ;;  %v8837_v50 = vld [vmem:[%s9966_s11 + $0x90] sm:$0xff]  ;;  %v10467_v29 = vld [vmem:[#allocation150_spill] sm:$0xff]  ;;  %v10469_v56 = vld [vmem:[#allocation21_spill] sm:$0xff]  ;;  %v10478_v26 = vmov 2  }
 0x606   : > { %10429 = vst [vmem:[#allocation124_spill] sm:$0xff] %v8736_v59  ;;  %v8841_v44 = vadd.f32 %v10467_v29, %v8374_v18  ;;  %v10470_v48 = vld [vmem:[#allocation151_spill] sm:$0xff]  ;;  %v10472_v22 = vld [vmem:[#allocation81_spill] sm:$0xff]  ;;  %v10473_v33 = vld [vmem:[#allocation152_spill] sm:$0xff]  ;;  %6264 = vset.pattern.permute.xlu1 %v10478_v26 }
 0x607   : > { %10431 = vst [vmem:[#allocation126_spill] sm:$0xff] %v8743_v12  ;;  %v8845_v62 = vadd.f32 %v10470_v48, %v10469_v56  ;;  %v8849_v53 = vadd.f32 %v10473_v33, %v10472_v22  ;;  %v10475_v34 = vld [vmem:[#allocation82_spill] sm:$0xff]  ;;  %v10476_v6 = vld [vmem:[#allocation153_spill] sm:$0xff]  ;;  %v10479_v31 = vld [vmem:[#allocation83_spill] sm:$0xff] }
 0x608   : > { %10433 = vst [vmem:[#allocation114_spill] sm:$0xff] %v8747_v32  ;;  %v8853_v52 = vadd.f32 %v10476_v6, %v10475_v34  ;;  %v10480_v18 = vld [vmem:[#allocation154_spill] sm:$0xff]  ;;  %v10485_v48 = vld [vmem:[#allocation85_spill] sm:$0xff]  ;;  %v10601_v5 = vld [vmem:[#allocation55_spill] sm:$0xff] }
 0x609   : > { %10435 = vst [vmem:[#allocation116_spill] sm:$0xff] %v8751_v16  ;;  %v8860_v29 = vadd.f32 %v10480_v18, %v10479_v31  ;;  %v10488_v33 = vld [vmem:[#allocation86_spill] sm:$0xff]  ;;  %v10491_v6 = vld [vmem:[#allocation13_spill] sm:$0xff]  ;;  %v10496_v18 = vld [vmem:[#allocation159_spill] sm:$0xff]  ;;  %4656 = vmatpush.bf16.msrb.mxu0 %v8837_v50 }
 0x60a   : > { %10437 = vst [vmem:[#allocation128_spill] sm:$0xff] %v8755_v13  ;;  %4563 = vmatpush.bf16.msra.mxu1 %v10491_v6  ;;  %v10495_v31 = vld [vmem:[#allocation22_spill] sm:$0xff]  ;;  %v10596_v32 = vld [vmem:[#allocation25_spill] sm:$0xff]  ;;  %v10630_v28 = vld [vmem:[#allocation67_spill] sm:$0xff] }
 0x60b   : > { %10438 = vst [vmem:[#allocation39_spill] sm:$0xff] %v8761_v39  ;;  %v10589_v16 = vld [vmem:[#allocation14_spill] sm:$0xff]  ;;  %v10629_v39 = vld [vmem:[#allocation36_spill] sm:$0xff] }
 0x60c   : > { %10439 = vst [vmem:[#allocation129_spill] sm:$0xff] %v8765_v57  ;;  %v10602_v20 = vld [vmem:[#allocation18_spill] sm:$0xff] }
 0x60d   : > { %10440 = vst [vmem:[#allocation130_spill] sm:$0xff] %v8769_v0  ;;  %6262 = vset.pattern.permute.xlu2 %v10478_v26  ;;  %v10559_v26 = vld [vmem:[#allocation73_spill] sm:$0xff] }
 0x60e   : > { %10441 = vst [vmem:[#allocation40_spill] sm:$0xff] %v8773_v15  ;;  %v10587_v15 = vld [vmem:[#allocation65_spill] sm:$0xff] }
 0x60f   : > { %10443 = vst [vmem:[#allocation131_spill] sm:$0xff] %v8777_v1 }
 0x610   : > { %10445 = vst [vmem:[#allocation132_spill] sm:$0xff] %v8781_v10 }
 0x611   : > { %10447 = vst [vmem:[#allocation30_spill] sm:$0xff] %v8785_v49 }
 0x612   : > { %10449 = vst [vmem:[#allocation134_spill] sm:$0xff] %v8789_v17  ;;  %v10579_v17 = vld [vmem:[#allocation45_spill] sm:$0xff] }
 0x613   : > { %10450 = vst [vmem:[#allocation135_spill] sm:$0xff] %v8793_v54 }
 0x614   : > { %10452 = vst [vmem:[#allocation42_spill] sm:$0xff] %v8800_v42  ;;  %v10578_v42 = vld [vmem:[#allocation179_spill] sm:$0xff] }
 0x615   : > { %10454 = vst [vmem:[#allocation141_spill] sm:$0xff] %v8804_v2  ;;  %v10530_v2 = vld [vmem:[#allocation133_spill] sm:$0xff] }
 0x616   : > { %10455 = vst [vmem:[#allocation142_spill] sm:$0xff] %v8808_v27 }
 0x617   : > { %10457 = vst [vmem:[#allocation143_spill] sm:$0xff] %v8812_v43  ;;  %v10532_v43 = vld [vmem:[#allocation95_spill] sm:$0xff] }
 0x618   : > { %10460 = vst [vmem:[#allocation144_spill] sm:$0xff] %v8819_v58 }
 0x619   : > { %10462 = vst [vmem:[#allocation145_spill] sm:$0xff] %v8823_v9  ;;  %v10486_v9 = vld [vmem:[#allocation156_spill] sm:$0xff] }
 0x61a   : > { %10463 = vst [vmem:[#allocation146_spill] sm:$0xff] %v8827_v46  ;;  %v8868_v22 = vadd.f32 %v10486_v9, %v10485_v48  ;;  %v10501_v9 = vld [vmem:[#allocation89_spill] sm:$0xff]  ;;  %v10533_v46 = vld [vmem:[#allocation136_spill] sm:$0xff] }
 0x61b   : > { %10465 = vst [vmem:[#allocation138_spill] sm:$0xff] %v8831_v23  ;;  %v10483_v23 = vld [vmem:[#allocation155_spill] sm:$0xff]  ;;  %v10502_v48 = vld [vmem:[#allocation161_spill] sm:$0xff] }
 0x61c   : > { %10466 = vst [vmem:[#allocation147_spill] sm:$0xff] %v8837_v50  ;;  %v10628_v50 = vld [vmem:[#allocation120_spill] sm:$0xff] }
 0x61d   : > { %10468 = vst [vmem:[#allocation148_spill] sm:$0xff] %v8841_v44  ;;  %v10482_v44 = vld [vmem:[#allocation84_spill] sm:$0xff]  ;;  %v3406_v35 = vadd.f32 %v10629_v39, %v10628_v50  ;;  %v3614_v50 = vmul.f32 %v10579_v17, %v8739_v61 }
 0x61e   : > { %10471 = vst [vmem:[#allocation149_spill] sm:$0xff] %v8845_v62  ;;  %v8864_v56 = vadd.f32 %v10483_v23, %v10482_v44  ;;  %v10493_v62 = vld [vmem:[#allocation158_spill] sm:$0xff]  ;;  %v10498_v23 = vld [vmem:[#allocation88_spill] sm:$0xff] }
 0x61f   : > { %10474 = vst [vmem:[#allocation150_spill] sm:$0xff] %v8849_v53  ;;  %v10489_v53 = vld [vmem:[#allocation157_spill] sm:$0xff]  ;;  %v10499_v44 = vld [vmem:[#allocation160_spill] sm:$0xff] }
 0x620   : > { %10477 = vst [vmem:[#allocation21_spill] sm:$0xff] %v8853_v52  ;;  %v8872_v34 = vadd.f32 %v10489_v53, %v10488_v33  ;;  %v10492_v52 = vld [vmem:[#allocation87_spill] sm:$0xff]  ;;  %v8891_v53 = vpop.permute.xlu1 %3805  ;;  %v8894_v33 = vld [vmem:[%s6894_s26 + $0xf8] sm:$0xff] }
 0x621   : > { %10481 = vst [vmem:[#allocation151_spill] sm:$0xff] %v8860_v29  ;;  %v8877_v27 = vadd.f32 %v10493_v62, %v10492_v52  ;;  %v8881_v29 = vadd.f32 %v10496_v18, %v10495_v31  ;;  %3600 = vperm.xlu1 %6264, %v8894_v33   ;;  %v10504_v62 = vld [vmem:[#allocation19_spill] sm:$0xff]  ;;  %v10505_v52 = vld [vmem:[#allocation162_spill] sm:$0xff]  ;;  %v10508_v18 = vld [vmem:[#allocation164_spill] sm:$0xff] }
 0x622   : > { %10484 = vst [vmem:[#allocation81_spill] sm:$0xff] %v8864_v56  ;;  %v8885_v56 = vadd.f32 %v10499_v44, %v10498_v23  ;;  %v8899_v6 = vadd.f32 %v10505_v52, %v10504_v62  ;;  %v10507_v31 = vld [vmem:[#allocation15_spill] sm:$0xff]  ;;  %v10510_v23 = vld [vmem:[#allocation90_spill] sm:$0xff]  ;;  %v10511_v44 = vld [vmem:[#allocation165_spill] sm:$0xff] }
 0x623   : > { %10487 = vst [vmem:[#allocation152_spill] sm:$0xff] %v8868_v22  ;;  %v8889_v22 = vadd.f32 %v10502_v48, %v10501_v9  ;;  %v10513_v9 = vld [vmem:[#allocation31_spill] sm:$0xff]  ;;  %v10514_v48 = vld [vmem:[#allocation166_spill] sm:$0xff]  ;;  %v10517_v62 = vld [vmem:[#allocation92_spill] sm:$0xff] }
 0x624   : > { %10490 = vst [vmem:[#allocation82_spill] sm:$0xff] %v8872_v34  ;;  %v10518_v52 = vld [vmem:[#allocation167_spill] sm:$0xff]  ;;  %v10529_v34 = vld [vmem:[#allocation16_spill] sm:$0xff] }
 0x625   : > { %10494 = vst [vmem:[#allocation153_spill] sm:$0xff] %v8877_v27  ;;  %v8907_v27 = vadd.f32 %v10511_v44, %v10510_v23  ;;  %v10523_v23 = vld [vmem:[#allocation93_spill] sm:$0xff]  ;;  %v8937_v58 = vadd.f32 %v10530_v2, %v10529_v34  ;;  %v10543_v2 = vld [vmem:[#allocation32_spill] sm:$0xff]  ;;  %v10544_v34 = vld [vmem:[#allocation174_spill] sm:$0xff] }
 0x626   : > { %10497 = vst [vmem:[#allocation83_spill] sm:$0xff] %v8881_v29  ;;  %v8903_v29 = vadd.f32 %v10508_v18, %v10507_v31  ;;  %v10520_v31 = vld [vmem:[#allocation23_spill] sm:$0xff]  ;;  %v10521_v18 = vld [vmem:[#allocation168_spill] sm:$0xff]  ;;  %v10524_v44 = vld [vmem:[#allocation169_spill] sm:$0xff] }
 0x627   : > { %10500 = vst [vmem:[#allocation154_spill] sm:$0xff] %v8885_v56  ;;  %v8917_v56 = vld [vmem:[%s9966_s11 + $0x88] sm:$0xff] }
 0x628   : > { %10503 = vst [vmem:[#allocation84_spill] sm:$0xff] %v8889_v22  ;;  %v8911_v22 = vadd.f32 %v10514_v48, %v10513_v9  ;;  %v10526_v9 = vld [vmem:[#allocation94_spill] sm:$0xff]  ;;  %4657 = vmatpush.bf16.msrb.mxu0 %v8917_v56 }
 0x629   : > { %10506 = vst [vmem:[#allocation155_spill] sm:$0xff] %v8899_v6  ;;  %v8921_v6 = vadd.f32 %v10518_v52, %v10517_v62  ;;  %v10527_v48 = vld [vmem:[#allocation170_spill] sm:$0xff]  ;;  %v8941_v62 = vadd.f32 %v10533_v46, %v10532_v43  ;;  %v10535_v52 = vld [vmem:[#allocation137_spill] sm:$0xff] }
 0x62a   : > { %10509 = vst [vmem:[#allocation85_spill] sm:$0xff] %v8903_v29  ;;  %v8925_v29 = vadd.f32 %v10521_v18, %v10520_v31  ;;  %v8945_v31 = vadd.f32 %v10535_v52, %v8480_v7  ;;  %v10537_v18 = vld [vmem:[#allocation171_spill] sm:$0xff]  ;;  %v10546_v43 = vld [vmem:[#allocation97_spill] sm:$0xff]  ;;  %v10549_v7 = vld [vmem:[#allocation98_spill] sm:$0xff] }
 0x62b   : > { %10512 = vst [vmem:[#allocation156_spill] sm:$0xff] %v8907_v27  ;;  %v8929_v27 = vadd.f32 %v10524_v44, %v10523_v23  ;;  %v8949_v23 = vadd.f32 %v10537_v18, %v8484_v51  ;;  %v10539_v44 = vld [vmem:[#allocation173_spill] sm:$0xff]  ;;  %v10550_v52 = vld [vmem:[#allocation139_spill] sm:$0xff]  ;;  %v10552_v51 = vld [vmem:[#allocation34_spill] sm:$0xff] }
 0x62c   : > { %10515 = vst [vmem:[#allocation86_spill] sm:$0xff] %v8911_v22  ;;  %v8933_v22 = vadd.f32 %v10527_v48, %v10526_v9  ;;  %4564 = vmatpush.bf16.msra.mxu1 %v10539_v44  ;;  %v10540_v9 = vld [vmem:[#allocation96_spill] sm:$0xff]  ;;  %v10547_v46 = vld [vmem:[#allocation41_spill] sm:$0xff]  ;;  %v3397_v18 = vadd.f32 %v10552_v51, %v8648_v55  ;;  %v8987_v55 = vadd.f32 %v7362_v36, %v10559_v26  ;;  %v8999_v51 = vpop.permute.xlu0 %3488 }
 0x62d   : > { %10516 = vst [vmem:[#allocation157_spill] sm:$0xff] %v8917_v56  ;;  %v10541_v48 = vld [vmem:[#allocation172_spill] sm:$0xff]  ;;  %v10553_v44 = vld [vmem:[#allocation113_spill] sm:$0xff] }
 0x62e   : > { %10519 = vst [vmem:[#allocation13_spill] sm:$0xff] %v8921_v6  ;;  %v10576_v6 = vld [vmem:[#allocation176_spill] sm:$0xff]  ;;  %v10623_v56 = vld [vmem:[#allocation117_spill] sm:$0xff] }
 0x62f   : > { %10522 = vst [vmem:[#allocation87_spill] sm:$0xff] %v8925_v29  ;;  %v8958_v29 = vadd.f32 %v10544_v34, %v10543_v2  ;;  %v10555_v34 = vld [vmem:[#allocation100_spill] sm:$0xff] }
 0x630   : > { %10525 = vst [vmem:[#allocation158_spill] sm:$0xff] %v8929_v27  ;;  %v8954_v27 = vadd.f32 %v10541_v48, %v10540_v9  ;;  %v3398_v9 = vadd.f32 %v10553_v44, %v8652_v41  ;;  %v10554_v48 = vld [vmem:[#allocation27_spill] sm:$0xff]  ;;  %v9001_v44 = vpop.permute.xlu2 %3849 }
 0x631   : > { %10528 = vst [vmem:[#allocation22_spill] sm:$0xff] %v8933_v22  ;;  %v3400_v2 = vadd.f32 %v10554_v48, %v8656_v38  ;;  %v10561_v38 = vld [vmem:[#allocation115_spill] sm:$0xff]  ;;  %v6300_v48 = vld [vmem:[%s6894_s26 + $0xe8] sm:$0xff] }
 0x632   : > { %10531 = vst [vmem:[#allocation159_spill] sm:$0xff] %v8937_v58  ;;  %3592 = vperm.xlu2 %6262, %v6300_v48   ;;  %v3727_v54 = vadd.f32 %v10576_v6, %v3398_v9  ;;  %v10584_v6 = vld [vmem:[#allocation163_spill] sm:$0xff] }
 0x633   : > { %10534 = vst [vmem:[#allocation88_spill] sm:$0xff] %v8941_v62  ;;  %v8962_v62 = vadd.f32 %v10547_v46, %v10546_v43  ;;  %v8983_v43 = vld [vmem:[%s9966_s11 + $0x80] sm:$0xff]  ;;  %v10560_v46 = vld [vmem:[#allocation74_spill] sm:$0xff]  ;;  %v10585_v9 = vld [vmem:[#allocation47_spill] sm:$0xff] }
 0x634   : > { %10536 = vst [vmem:[#allocation160_spill] sm:$0xff] %v8945_v31  ;;  %v8966_v31 = vadd.f32 %v10550_v52, %v10549_v7  ;;  %v8991_v41 = vadd.f32 %v7365_v14, %v10560_v46  ;;  %v3401_v7 = vadd.f32 %v10561_v38, %v8670_v3  ;;  %4658 = vmatpush.bf16.msrb.mxu0 %v8983_v43 }
 0x635   : > { %10538 = vst [vmem:[#allocation89_spill] sm:$0xff] %v8949_v23  ;;  %v10571_v23 = vld [vmem:[#allocation78_spill] sm:$0xff] }
 0x636   : > { %10542 = vst [vmem:[#allocation161_spill] sm:$0xff] %v8954_v27  ;;  %v10556_v27 = vld [vmem:[#allocation140_spill] sm:$0xff]  ;;  %v9023_v48 = vadd.f32 %v7365_v14, %v10571_v23 }
 0x637   : > { %10545 = vst [vmem:[#allocation19_spill] sm:$0xff] %v8958_v29  ;;  %v8977_v29 = vadd.f32 %v10556_v27, %v10555_v34  ;;  %v10562_v27 = vld [vmem:[#allocation177_spill] sm:$0xff]  ;;  %v10565_v34 = vld [vmem:[#allocation75_spill] sm:$0xff]  ;;  %v10577_v23 = vld [vmem:[#allocation24_spill] sm:$0xff] }
 0x638   : > { %10548 = vst [vmem:[#allocation162_spill] sm:$0xff] %v8962_v62  ;;  %v8997_v52 = vadd.f32 %v10562_v27, %v8709_v47  ;;  %v9006_v26 = vadd.f32 %v7362_v36, %v10565_v34  ;;  %v10567_v62 = vld [vmem:[#allocation77_spill] sm:$0xff]  ;;  %v10570_v27 = vld [vmem:[#allocation178_spill] sm:$0xff]  ;;  %v10572_v34 = vld [vmem:[#allocation79_spill] sm:$0xff]  ;;  %v3729_v10 = vadd.f32 %v10577_v23, %v3400_v2  ;;  %v3959_v2 = vmul.f32 %v10585_v9, %v10584_v6  ;;  %v9090_v40 = vpop.permute.xlu2 %3813 }
 0x639   : > { %10551 = vst [vmem:[#allocation15_spill] sm:$0xff] %v8966_v31  ;;  %v10566_v31 = vld [vmem:[#allocation76_spill] sm:$0xff]  ;;  %v9014_v3 = vadd.f32 %v7362_v36, %v10567_v62  ;;  %v10568_v47 = vld [vmem:[#allocation181_spill] sm:$0xff]  ;;  %4565 = vmatpush.bf16.msra.mxu1 %v10570_v27 }
 0x63a   : > { %10557 = vst [vmem:[#allocation164_spill] sm:$0xff] %v8977_v29  ;;  %v9010_v46 = vadd.f32 %v7365_v14, %v10566_v31  ;;  %v9018_v38 = vadd.f32 %v10568_v47, %v8712_v8  ;;  %v9027_v29 = vadd.f32 %v7362_v36, %v10572_v34  ;;  %v10573_v31 = vld [vmem:[#allocation80_spill] sm:$0xff]  ;;  %v10574_v62 = vld [vmem:[#allocation17_spill] sm:$0xff]  ;;  %v9037_v8 = vpop.permute.xlu1 %3520  ;;  %v10575_v47 = vld [vmem:[#allocation175_spill] sm:$0xff]  ;;  %v3638_v36 = vmul.f32 %v10579_v17, %v10578_v42 }
 0x63b   : > { %10558 = vst [vmem:[#allocation90_spill] sm:$0xff] %v8983_v43  ;;  %v9031_v58 = vadd.f32 %v7365_v14, %v10573_v31  ;;  %v9035_v22 = vadd.f32 %v10574_v62, %v8544_v45  ;;  %v3726_v27 = vadd.f32 %v10575_v47, %v3397_v18  ;;  %v10580_v14 = vld [vmem:[#allocation101_spill] sm:$0xff]  ;;  %v10581_v31 = vld [vmem:[#allocation102_spill] sm:$0xff]  ;;  %v10583_v18 = vld [vmem:[#allocation99_spill] sm:$0xff] }
 0x63c   : > { %10563 = vst [vmem:[#allocation165_spill] sm:$0xff] %v8997_v52  ;;  %v3380_v34 = vadd.f32 %v10580_v14, %v8550_v24  ;;  %v9049_v45 = vadd.f32 %v10581_v31, %v8554_v60  ;;  %v10582_v62 = vld [vmem:[#allocation33_spill] sm:$0xff]  ;;  %v3730_v47 = vadd.f32 %v10583_v18, %v3401_v7  ;;  %v10586_v23 = vld [vmem:[#allocation48_spill] sm:$0xff]  ;;  %v9059_v0 = vadd.f32 %v3638_v36, %v10587_v15  ;;  %v10590_v60 = vld [vmem:[#allocation91_spill] sm:$0xff] }
 0x63d   : > { %10564 = vst [vmem:[#allocation31_spill] sm:$0xff] %v9001_v44  ;;  %v3382_v1 = vadd.f32 %v10582_v62, %v8566_v19  ;;  %v3960_v49 = vmul.f32 %v10586_v23, %v10584_v6  ;;  %v3962_v24 = vmul.f32 %v10585_v9, %v10589_v16  ;;  %4566 = vmatpush.bf16.msra.mxu1 %v10590_v60  ;;  %v10591_v14 = vld [vmem:[#allocation105_spill] sm:$0xff]  ;;  %v10592_v31 = vld [vmem:[#allocation103_spill] sm:$0xff]  ;;  %v10594_v7 = vld [vmem:[#allocation104_spill] sm:$0xff] }
 0x63e   : > { %10569 = vst [vmem:[#allocation166_spill] sm:$0xff] %v9018_v38  ;;  %v3383_v19 = vadd.f32 %v10592_v31, %v10591_v14  ;;  %v10593_v62 = vld [vmem:[#allocation107_spill] sm:$0xff]  ;;  %v10595_v38 = vld [vmem:[#allocation54_spill] sm:$0xff]  ;;  %v3963_v15 = vmul.f32 %v10586_v23, %v10589_v16  ;;  %v10598_v36 = vld [vmem:[#allocation109_spill] sm:$0xff]  ;;  %v4055_v12 = vadd.f32 %v3959_v2, %v3726_v27  ;;  %v9080_v14 = vadd.f32 %v10602_v20, %v10601_v5 }
 0x63f   : > { %10588 = vst [vmem:[#allocation92_spill] sm:$0xff] %v9059_v0  ;;  %v3384_v18 = vadd.f32 %v10594_v7, %v10593_v62  ;;  %v9070_v13 = vadd.f32 %v10596_v32, %v10595_v38  ;;  %v10599_v0 = vld [vmem:[#allocation106_spill] sm:$0xff]  ;;  %v4056_v59 = vadd.f32 %v3960_v49, %v3727_v54  ;;  %v4058_v60 = vadd.f32 %v3962_v24, %v3729_v10  ;;  %v10604_v62 = vld [vmem:[#allocation108_spill] sm:$0xff]  ;;  %v10605_v32 = vld [vmem:[#allocation59_spill] sm:$0xff] }
 0x640   : > { %v9076_v52 = vadd.f32 %v10599_v0, %v10598_v36  ;;  %v10603_v31 = vld [vmem:[#allocation58_spill] sm:$0xff]  ;;  %v4059_v11 = vadd.f32 %v3963_v15, %v3730_v47  ;;  %10608 = vst [vmem:[#allocation93_spill] sm:$0xff] %v9090_v40  ;;  %v6301_v0 = vld [vmem:[%s6894_s26 + $0xf0] sm:$0xff]  ;;  %v10609_v27 = vld [vmem:[#allocation60_spill] sm:$0xff] }
 0x641   : > { %10597 = vst [vmem:[#allocation167_spill] sm:$0xff] %v9070_v13  ;;  %v9084_v7 = vadd.f32 %v10604_v62, %v10603_v31  ;;  %v10606_v38 = vld [vmem:[#allocation26_spill] sm:$0xff]  ;;  %3596 = vperm.xlu2 %6262, %v6301_v0   ;;  %v10612_v54 = vld [vmem:[#allocation61_spill] sm:$0xff]  ;;  %v10613_v20 = vld [vmem:[#allocation20_spill] sm:$0xff]  ;;  %v10635_v13 = vmov 3  }
 0x642   : > { %10600 = vst [vmem:[#allocation23_spill] sm:$0xff] %v9076_v52  ;;  %v9088_v43 = vadd.f32 %v10606_v38, %v10605_v32  ;;  %v10610_v49 = vld [vmem:[#allocation110_spill] sm:$0xff]  ;;  %v9099_v5 = vadd.f32 %v10613_v20, %v10612_v54  ;;  %v10616_v24 = vld [vmem:[#allocation112_spill] sm:$0xff]  ;;  %v10618_v31 = vld [vmem:[#allocation53_spill] sm:$0xff] }
 0x643   : > { %v9095_v10 = vadd.f32 %v10610_v49, %v10609_v27  ;;  %v10615_v2 = vld [vmem:[#allocation62_spill] sm:$0xff]  ;;  %v3641_v62 = vmul.f32 %v10579_v17, %v10618_v31  ;;  %v10621_v32 = vld [vmem:[#allocation35_spill] sm:$0xff]  ;;  %v10625_v54 = vld [vmem:[#allocation44_spill] sm:$0xff] }
 0x644   : > { %10607 = vst [vmem:[#allocation168_spill] sm:$0xff] %v9088_v43  ;;  %v9103_v36 = vadd.f32 %v10616_v24, %v10615_v2  ;;  %v10619_v47 = vld [vmem:[#allocation182_spill] sm:$0xff]  ;;  %v10622_v0 = vld [vmem:[#allocation63_spill] sm:$0xff]  ;;  %v3616_v20 = vmul.f32 %v10625_v54, %v8706_v25  ;;  %v9116_v43 = vpop.permute.xlu0 %3853  ;;  %v9118_v2 = vpop.permute.xlu1 %3484  ;;  %v4151_v24 = vmax.f32 %v4055_v12, 0.0 }
 0x645   : > { %10611 = vst [vmem:[#allocation169_spill] sm:$0xff] %v9095_v10  ;;  %4567 = vmatpush.bf16.msra.mxu1 %v10619_v47  ;;  %v10620_v15 = vld [vmem:[#allocation118_spill] sm:$0xff]  ;;  %v3404_v27 = vadd.f32 %v10623_v56, %v10622_v0  ;;  %v10624_v49 = vld [vmem:[#allocation43_spill] sm:$0xff]  ;;  %v10626_v47 = vld [vmem:[#allocation68_spill] sm:$0xff]  ;;  %v3617_v56 = vmul.f32 %v10579_v17, %v8706_v25  ;;  %v3613_v0 = vmul.f32 %v10625_v54, %v8739_v61 }
 0x646   : > { %10614 = vst [vmem:[#allocation94_spill] sm:$0xff] %v9099_v5  ;;  %v3403_v38 = vadd.f32 %v10621_v32, %v10620_v15  ;;  %v3615_v10 = vmul.f32 %v10624_v49, %v8706_v25  ;;  %v4154_v5 = vmax.f32 %v4058_v60, 0.0  ;;  %v9121_v57 = vadd.f32 %v3641_v62, %v10626_v47  ;;  %v10631_v40 = vld [vmem:[#allocation119_spill] sm:$0xff] }
 0x647   : > { %10617 = vst [vmem:[#allocation170_spill] sm:$0xff] %v9103_v36  ;;  %v4152_v36 = vmax.f32 %v4056_v59, 0.0  ;;  %v4155_v15 = vmax.f32 %v4059_v11, 0.0  ;;  %v3712_v32 = vadd.f32 %v3616_v20, %v3383_v19  ;;  %v3407_v44 = vadd.f32 %v10631_v40, %v10630_v28  ;;  %v10632_v12 = vld [vmem:[#allocation187_spill] sm:$0xff]  ;;  %v10633_v11 = vld [vmem:[#allocation57_spill] sm:$0xff] }
 0x648   : > { %10627 = vst [vmem:[#allocation16_spill] sm:$0xff] %v9121_v57  ;;  %v3944_v59 = vmul.f32 %v10585_v9, %v10632_v12  ;;  %v3639_v60 = vmul.f32 %v10624_v49, %v10618_v31  ;;  %v3636_v25 = vmul.f32 %v10624_v49, %v10578_v42  ;;  %v3711_v19 = vadd.f32 %v3615_v10, %v3382_v1  ;;  %v10634_v28 = vld [vmem:[#allocation51_spill] sm:$0xff]  ;;  %v9148_v10 = vpop.permute.xlu2 %3524 }
 0x649   : > { %4568 = vmatpush.bf16.msra.mxu1 %v10633_v11  ;;  %v3612_v62 = vmul.f32 %v10624_v49, %v8739_v61  ;;  %v3709_v20 = vadd.f32 %v3613_v0, %v3380_v34  ;;  %v3945_v39 = vmul.f32 %v10586_v23, %v10632_v12  ;;  %v3946_v40 = vmul.f32 %v10634_v28, %v10632_v12 }
 0x64a   : > { %v4238_v47 = vpack.c.bf16 %v4154_v5, %v4151_v24  ;;  %v3637_v11 = vmul.f32 %v10625_v54, %v10578_v42  ;;  %v3732_v57 = vadd.f32 %v3636_v25, %v3403_v38  ;;  %v3713_v52 = vadd.f32 %v3617_v56, %v3384_v18  ;;  %6265 = vset.pattern.permute.xlu2 %v10635_v13 }
 0x64b   : > { %v4239_v1 = vpack.c.bf16 %v4155_v15, %v4152_v36  ;;  %v3640_v34 = vmul.f32 %v10625_v54, %v10618_v31  ;;  %v3735_v0 = vadd.f32 %v3639_v60, %v3406_v35  ;;  %v3644_v12 = vmul.f32 %v10579_v17, %v8855_v4  ;;  %v10636_v31 = vld [vmem:[#allocation64_spill] sm:$0xff]  ;;  %3929 = vperm.xlu2 %6265, %v8894_v33  }
 0x64c   : > { %4496 = vmatmul.bf16.vlgmr.msrb.gmra.mxu2 %v4238_v47  ;;  %v4040_v61 = vadd.f32 %v3944_v59, %v3711_v19  ;;  %v4041_v5 = vadd.f32 %v3945_v39, %v3712_v32  ;;  %v3708_v42 = vadd.f32 %v3612_v62, %v9035_v22  ;;  %v3941_v18 = vmul.f32 %v10585_v9, %v8891_v53  ;;  %v9159_v36 = vpop.permute.xlu1 %3817  ;;  %v10637_v22 = vld [vmem:[#allocation28_spill] sm:$0xff]  ;;  %v9174_v32 = vpop.permute.xlu0 %3825  ;;  %v10638_v59 = vld [vmem:[#allocation46_spill] sm:$0xff] }
 0x64d   : > { %4569 = vmatpush.bf16.msra.mxu1 %v8666_v21  ;;  %4585 = vmatmul.bf16.vlgmr.msrb.gmra.mxu3 %v4239_v1  ;;  %v3710_v13 = vadd.f32 %v3614_v50, %v9049_v45  ;;  %v9163_v35 = vadd.f32 %v3644_v12, %v10636_v31  ;;  %v3942_v38 = vmul.f32 %v10586_v23, %v8891_v53  ;;  %v10639_v1 = vld [vmem:[#allocation184_spill] sm:$0xff] }
 0x64e   : > { %v3943_v21 = vmul.f32 %v10634_v28, %v8891_v53  ;;  %v9172_v24 = vadd.f32 %v10637_v22, %v8987_v55  ;;  %v3733_v15 = vadd.f32 %v3637_v11, %v3404_v27  ;;  %v4042_v56 = vadd.f32 %v3946_v40, %v3713_v52  ;;  %v10643_v22 = vld [vmem:[#allocation123_spill] sm:$0xff] }
 0x64f   : > { %v4037_v45 = vadd.f32 %v3941_v18, %v3708_v42  ;;  %v3968_v60 = vmul.f32 %v10585_v9, %v10638_v59  ;;  %v3736_v25 = vadd.f32 %v3640_v34, %v3407_v44  ;;  %v4038_v19 = vadd.f32 %v3942_v38, %v3709_v20  ;;  %v10640_v34 = vld [vmem:[#allocation121_spill] sm:$0xff] }
 0x650   : > { %v4039_v62 = vadd.f32 %v3943_v21, %v3710_v13  ;;  %v4136_v39 = vmax.f32 %v4040_v61, 0.0  ;;  %v4137_v50 = vmax.f32 %v4041_v5, 0.0  ;;  %v3647_v33 = vmul.f32 %v10579_v17, %v9037_v8  ;;  %v9186_v20 = vpop.permute.xlu2 %3857  ;;  %v10641_v5 = vld [vmem:[#allocation37_spill] sm:$0xff] }
 0x651   : > { %v4133_v53 = vmax.f32 %v4037_v45, 0.0  ;;  %v4134_v47 = vmax.f32 %v4038_v19, 0.0  ;;  %v4061_v27 = vadd.f32 %v10639_v1, %v3732_v57  ;;  %v4064_v52 = vadd.f32 %v3968_v60, %v3735_v0  ;;  %v10642_v57 = vld [vmem:[#allocation185_spill] sm:$0xff] }
 0x652   : > { %v4135_v55 = vmax.f32 %v4039_v62, 0.0  ;;  %v3969_v40 = vmul.f32 %v10586_v23, %v10638_v59  ;;  %v4138_v11 = vmax.f32 %v4042_v56, 0.0  ;;  %v9184_v12 = vadd.f32 %v3647_v33, %v8700_v63  ;;  %v10647_v62 = vld [vmem:[#allocation180_spill] sm:$0xff] }
 0x653   : > { %v4229_v44 = vpack.c.bf16 %v4136_v39, %v4133_v53  ;;  %v9190_v61 = vadd.f32 %v10640_v34, %v8991_v41  ;;  %v3412_v42 = vadd.f32 %v10641_v5, %v9006_v26  ;;  %v9194_v18 = vpack.c.bf16 %v4137_v50, %v4134_v47  ;;  %v10644_v41 = vld [vmem:[#allocation38_spill] sm:$0xff]  ;;  %v10645_v26 = vld [vmem:[#allocation125_spill] sm:$0xff] }
 0x654   : > { %v4062_v0 = vadd.f32 %v10642_v57, %v3733_v15  ;;  %v4157_v13 = vmax.f32 %v4061_v27, 0.0  ;;  %v4160_v31 = vmax.f32 %v4064_v52, 0.0  ;;  %v4065_v38 = vadd.f32 %v3969_v40, %v3736_v25  ;;  %v9197_v21 = vpop.permute.xlu1 %3528  ;;  %v10646_v15 = vld [vmem:[#allocation29_spill] sm:$0xff]  ;;  %v10648_v25 = vld [vmem:[#allocation127_spill] sm:$0xff]  ;;  %v9236_v47 = vpop.permute.xlu0 %3861 }
 0x655   : > { %4481 = vmatmul.bf16.vlgmr.msrb.gmra.mxu1 %v4229_v44  ;;  %v4231_v63 = vpack.c.bf16 %v4138_v11, %v4135_v55  ;;  %v3413_v56 = vadd.f32 %v10643_v22, %v9010_v46  ;;  %v9203_v45 = vadd.f32 %v10644_v41, %v9014_v3  ;;  %v9207_v60 = vadd.f32 %v10645_v26, %v9023_v48  ;;  %v10649_v52 = vld [vmem:[#allocation49_spill] sm:$0xff]  ;;  %v10650_v44 = vld [vmem:[#allocation183_spill] sm:$0xff] }
 0x656   : > { %v9211_v19 = vadd.f32 %v10646_v15, %v9027_v29  ;;  %6113 = vmatpush.bf16.msrb.mxu1 %v10647_v62  ;;  %v9216_v39 = vadd.f32 %v10648_v25, %v9031_v58  ;;  %v9220_v46 = vmul.f32 %v10634_v28, %v10584_v6  ;;  %v4158_v3 = vmax.f32 %v4062_v0, 0.0 }
 0x657   : > { %v4161_v50 = vmax.f32 %v4065_v38, 0.0  ;;  %4659 = vmatmul.bf16.vlgmr.msrb.gmra.mxu0 %v4231_v63  ;;  %v9224_v48 = vmul.f32 %v10634_v28, %v10589_v16  ;;  %v3971_v29 = vmul.f32 %v10585_v9, %v8814_v30  ;;  %v3621_v53 = vmul.f32 %v10624_v49, %v8999_v51  ;;  %v10651_v63 = vld [vmem:[#allocation50_spill] sm:$0xff] }
 0x658   : > { %v3619_v58 = vmul.f32 %v10625_v54, %v9118_v2  ;;  %v3622_v6 = vmul.f32 %v10625_v54, %v8999_v51  ;;  %v3623_v33 = vmul.f32 %v10579_v17, %v8999_v51  ;;  %v3645_v16 = vmul.f32 %v10624_v49, %v9037_v8  ;;  %v9256_v0 = vpop.permute.xlu2 %3496 }
 0x659   : > { %v4241_v55 = vpack.c.bf16 %v4160_v31, %v4157_v13  ;;  %v3618_v1 = vmul.f32 %v10624_v49, %v9118_v2  ;;  %v3620_v27 = vmul.f32 %v10579_v17, %v9118_v2  ;;  %v3650_v11 = vmul.f32 %v10579_v17, %v9148_v10 }
 0x65a   : > { %v9245_v40 = vadd.f32 %v3619_v58, %v10649_v52  ;;  %6114 = vmatpush.bf16.msrb.mxu1 %v10650_v44  ;;  %v3972_v51 = vmul.f32 %v10586_v23, %v8814_v30  ;;  %v3642_v34 = vmul.f32 %v10624_v49, %v8855_v4  ;;  %v3646_v5 = vmul.f32 %v10625_v54, %v9037_v8 }
 0x65b   : > { %v4242_v57 = vpack.c.bf16 %v4161_v50, %v4158_v3  ;;  %v9260_v2 = vmul.f32 %v10634_v28, %v8814_v30  ;;  %v9264_v13 = vmul.f32 %v10634_v28, %v10638_v59  ;;  %v3717_v31 = vadd.f32 %v3621_v53, %v9080_v14  ;;  %v10652_v14 = vld [vmem:[#allocation167_spill] sm:$0xff] }
 0x65c   : > { %4501 = vmatmul.bf16.gmra.mxu2 %v4241_v55  ;;  %v9268_v38 = vadd.f32 %v3650_v11, %v8704_v37  ;;  %v9271_v22 = vadd.f32 %v3622_v6, %v10651_v63  ;;  %v3719_v8 = vadd.f32 %v3623_v33, %v9084_v7  ;;  %v3643_v41 = vmul.f32 %v10625_v54, %v8855_v4  ;;  %v9276_v26 = vpop.permute.xlu1 %3492  ;;  %v10653_v37 = vld [vmem:[#allocation23_spill] sm:$0xff]  ;;  %v10656_v33 = vld [vmem:[#allocation93_spill] sm:$0xff] }
 0x65d   : > { %v3741_v30 = vadd.f32 %v3645_v16, %v3412_v42  ;;  %4590 = vmatmul.bf16.gmra.mxu3 %v4242_v57  ;;  %v9280_v59 = vmul.f32 %v10585_v9, %v9116_v43  ;;  %v3714_v15 = vadd.f32 %v3618_v1, %v10652_v14  ;;  %v3716_v62 = vadd.f32 %v3620_v27, %v10653_v37  ;;  %v10654_v3 = vld [vmem:[#allocation111_spill] sm:$0xff] }
 0x65e   : > { %v3950_v25 = vmul.f32 %v10585_v9, %v9159_v36  ;;  %6115 = vmatpush.bf16.msrb.mxu1 %v10654_v3  ;;  %v3738_v7 = vadd.f32 %v3642_v34, %v9172_v24  ;;  %v10655_v4 = vld [vmem:[#allocation31_spill] sm:$0xff]  ;;  %v3742_v50 = vadd.f32 %v3646_v5, %v3413_v56  ;;  %v3952_v53 = vmul.f32 %v10634_v28, %v9159_v36  ;;  %v10657_v5 = vld [vmem:[#allocation66_spill] sm:$0xff]  ;;  %v10658_v3 = vld [vmem:[#allocation69_spill] sm:$0xff] }
 0x65f   : > { %v3974_v42 = vmul.f32 %v10585_v9, %v10655_v4  ;;  %v9294_v58 = vmul.f32 %v10586_v23, %v9116_v43  ;;  %v9298_v6 = vmul.f32 %v10585_v9, %v9174_v32  ;;  %v3947_v16 = vmul.f32 %v10585_v9, %v10656_v33 }
 0x660   : > { %v3949_v24 = vmul.f32 %v10634_v28, %v10656_v33  ;;  %v3739_v55 = vadd.f32 %v3643_v41, %v9190_v61  ;;  %v9307_v56 = vmul.f32 %v10634_v28, %v9174_v32  ;;  %v3975_v1 = vmul.f32 %v10586_v23, %v10655_v4  ;;  %v3545_v61 = vpop.permute.xlu0 %3544  ;;  %v3533_v37 = vpop.permute.xlu2 %3532 }
 0x661   : > { %v4070_v27 = vadd.f32 %v3974_v42, %v3741_v30  ;;  %v3653_v52 = vmul.f32 %v10579_v17, %v9197_v21  ;;  %v4043_v11 = vadd.f32 %v3947_v16, %v3714_v15  ;;  %v4046_v44 = vadd.f32 %v3950_v25, %v3717_v31 }
 0x662   : > { %v4045_v34 = vadd.f32 %v3949_v24, %v3716_v62  ;;  %6116 = vmatpush.bf16.msrb.mxu1 %v10657_v5  ;;  %v9316_v57 = vmul.f32 %v10585_v9, %v9236_v47  ;;  %v4067_v63 = vadd.f32 %v3971_v29, %v3738_v7  ;;  %v4071_v41 = vadd.f32 %v3975_v1, %v3742_v50 }
 0x663   : > { %v4048_v14 = vadd.f32 %v3952_v53, %v3719_v8  ;;  %v3651_v30 = vmul.f32 %v10624_v49, %v9197_v21  ;;  %v9321_v42 = vadd.f32 %v3653_v52, %v10658_v3  ;;  %v4139_v15 = vmax.f32 %v4043_v11, 0.0  ;;  %v10659_v53 = vld [vmem:[#allocation39_spill] sm:$0xff] }
 0x664   : > { %v4142_v31 = vmax.f32 %v4046_v44, 0.0  ;;  %v4166_v62 = vmax.f32 %v4070_v27, 0.0  ;;  %v4068_v25 = vadd.f32 %v3972_v51, %v3739_v55  ;;  %v4141_v16 = vmax.f32 %v4045_v34, 0.0  ;;  %v9323_v5 = vpop.permute.xlu1 %3821 }
 0x665   : > { %v4144_v24 = vmax.f32 %v4048_v14, 0.0  ;;  %v9327_v29 = vmul.f32 %v10586_v23, %v9236_v47  ;;  %v9331_v8 = vmul.f32 %v10634_v28, %v10655_v4  ;;  %v3663_v7 = vmul.f32 %v10624_v49, %v3545_v61 }
 0x666   : > { %v4232_v50 = vpack.c.bf16 %v4142_v31, %v4139_v15  ;;  %6117 = vmatpush.bf16.msrb.mxu1 %v10659_v53  ;;  %v3648_v51 = vmul.f32 %v10624_v49, %v9148_v10  ;;  %v4163_v55 = vmax.f32 %v4067_v63, 0.0  ;;  %v4167_v1 = vmax.f32 %v4071_v41, 0.0  ;;  %v10661_v15 = vld [vmem:[#allocation129_spill] sm:$0xff] }
 0x667   : > { %v4234_v27 = vpack.c.bf16 %v4144_v24, %v4141_v16  ;;  %v9339_v52 = vmul.f32 %v10586_v23, %v10656_v33  ;;  %v3649_v11 = vmul.f32 %v10625_v54, %v9148_v10  ;;  %v3652_v4 = vmul.f32 %v10625_v54, %v9197_v21 }
 0x668   : > { %v3747_v44 = vadd.f32 %v3651_v30, %v9211_v19  ;;  %4486 = vmatmul.bf16.gmra.mxu1 %v4232_v50  ;;  %v9347_v34 = vmul.f32 %v10625_v54, %v3545_v61  ;;  %v4244_v14 = vpack.c.bf16 %v4166_v62, %v4163_v55  ;;  %v4164_v63 = vmax.f32 %v4068_v25, 0.0  ;;  %v10660_v30 = vld [vmem:[#allocation147_spill] sm:$0xff]  ;;  %v9367_v25 = vpop.permute.xlu2 %3865 }
 0x669   : > { %v3951_v41 = vmul.f32 %v10586_v23, %v9159_v36  ;;  %4664 = vmatmul.bf16.gmra.mxu0 %v4234_v27  ;;  %v3980_v33 = vmul.f32 %v10585_v9, %v9186_v20  ;;  %v3627_v10 = vmul.f32 %v10624_v49, %v9256_v0  ;;  %v3629_v21 = vmul.f32 %v10579_v17, %v9256_v0  ;;  %v10663_v27 = vld [vmem:[#allocation170_spill] sm:$0xff] }
 0x66a   : > { %v3624_v19 = vmul.f32 %v10624_v49, %v9276_v26  ;;  %6118 = vmatpush.bf16.msrb.mxu1 %v10660_v30  ;;  %v9361_v3 = vmul.f32 %v10579_v17, %v3545_v61  ;;  %v9364_v36 = vadd.f32 %v3663_v7, %v10661_v15  ;;  %v3744_v31 = vadd.f32 %v3648_v51, %v9203_v45 }
 0x66b   : > { %v4245_v62 = vpack.c.bf16 %v4167_v1, %v4164_v63  ;;  %v3745_v16 = vadd.f32 %v3649_v11, %v9207_v60  ;;  %v3748_v24 = vadd.f32 %v3652_v4, %v9216_v39  ;;  %v3626_v50 = vmul.f32 %v10579_v17, %v9276_v26  ;;  %v10662_v60 = vld [vmem:[#allocation94_spill] sm:$0xff]  ;;  %v10664_v11 = vld [vmem:[#allocation168_spill] sm:$0xff] }
 0x66c   : > { %4506 = vmatmul.bf16.gmra.mxu2 %v4244_v14  ;;  %v4076_v53 = vadd.f32 %v3980_v33, %v3747_v44  ;;  %v9374_v61 = vadd.f32 %v3951_v41, %v9271_v22  ;;  %v3981_v7 = vmul.f32 %v10586_v23, %v9186_v20  ;;  %v3654_v45 = vmul.f32 %v10624_v49, %v3533_v37  ;;  %v3537_v55 = vpop.permute.xlu1 %3536  ;;  %v10665_v14 = vld [vmem:[#allocation157_spill] sm:$0xff]  ;;  %v10666_v41 = vld [vmem:[#allocation71_spill] sm:$0xff] }
 0x66d   : > { %4595 = vmatmul.bf16.gmra.mxu3 %v4245_v62  ;;  %v3656_v51 = vmul.f32 %v10579_v17, %v3533_v37  ;;  %v3723_v1 = vadd.f32 %v3627_v10, %v10662_v60  ;;  %v3725_v39 = vadd.f32 %v3629_v21, %v10663_v27  ;;  %v3720_v4 = vadd.f32 %v3624_v19, %v10664_v11  ;;  %v10668_v10 = vld [vmem:[#allocation169_spill] sm:$0xff]  ;;  %v10669_v60 = vld [vmem:[#allocation70_spill] sm:$0xff] }
 0x66e   : > { %v3953_v44 = vmul.f32 %v10585_v9, %v9323_v5  ;;  %6119 = vmatpush.bf16.msrb.mxu1 %v10665_v14  ;;  %v4073_v22 = vadd.f32 %v9280_v59, %v3744_v31  ;;  %v3655_v63 = vmul.f32 %v10625_v54, %v3533_v37  ;;  %v3955_v30 = vmul.f32 %v10634_v28, %v9323_v5 }
 0x66f   : > { %v9389_v33 = vadd.f32 %v3656_v51, %v10666_v41  ;;  %v3722_v15 = vadd.f32 %v3626_v50, %v10668_v10  ;;  %v4172_v21 = vmax.f32 %v4076_v53, 0.0  ;;  %v4074_v19 = vadd.f32 %v9294_v58, %v3745_v16  ;;  %v10671_v50 = vld [vmem:[#allocation122_spill] sm:$0xff]  ;;  %v10672_v58 = vld [vmem:[#allocation72_spill] sm:$0xff] }
 0x670   : > { %v4077_v62 = vadd.f32 %v3981_v7, %v3748_v24  ;;  %v3750_v27 = vadd.f32 %v3654_v45, %v10669_v60  ;;  %v3657_v11 = vmul.f32 %v10624_v49, %v3537_v55  ;;  %v3658_v59 = vmul.f32 %v10625_v54, %v3537_v55  ;;  %v10673_v24 = vld [vmem:[#allocation124_spill] sm:$0xff]  ;;  %v10674_v45 = vld [vmem:[#allocation126_spill] sm:$0xff]  ;;  %v9408_v60 = vpop.permute.xlu2 %3869 }
 0x671   : > { %10667 = vst [vmem:[#allocation133_spill] sm:$0xff] %v9389_v33  ;;  %v3659_v37 = vmul.f32 %v10579_v17, %v3537_v55  ;;  %v4049_v31 = vadd.f32 %v3953_v44, %v3720_v4  ;;  %v4052_v51 = vadd.f32 %v9298_v6, %v3723_v1  ;;  %v4051_v14 = vadd.f32 %v3955_v30, %v3722_v15  ;;  %v10670_v33 = vld [vmem:[#allocation90_spill] sm:$0xff] }
 0x672   : > { %v4054_v41 = vadd.f32 %v9307_v56, %v3725_v39  ;;  %6120 = vmatpush.bf16.msrb.mxu1 %v10670_v33  ;;  %v3751_v53 = vadd.f32 %v3655_v63, %v10671_v50  ;;  %v3753_v16 = vadd.f32 %v3657_v11, %v10672_v58  ;;  %v3754_v7 = vadd.f32 %v3658_v59, %v10673_v24  ;;  %v10675_v50 = vld [vmem:[#allocation165_spill] sm:$0xff] }
 0x673   : > { %v9406_v10 = vadd.f32 %v3659_v37, %v10674_v45  ;;  %v4145_v55 = vmax.f32 %v4049_v31, 0.0  ;;  %v4148_v4 = vmax.f32 %v4052_v51, 0.0  ;;  %v4147_v44 = vmax.f32 %v4051_v14, 0.0  ;;  %v10677_v45 = vld [vmem:[#allocation114_spill] sm:$0xff] }
 0x674   : > { %v4150_v6 = vmax.f32 %v4054_v41, 0.0  ;;  %v4169_v1 = vmax.f32 %v4073_v22, 0.0  ;;  %v4173_v30 = vmax.f32 %v4077_v62, 0.0  ;;  %v3986_v56 = vmul.f32 %v10585_v9, %v9367_v25  ;;  %v3541_v39 = vpop.permute.xlu1 %3540 }
 0x675   : > { %v4079_v63 = vadd.f32 %v9316_v57, %v3750_v27  ;;  %v4170_v33 = vmax.f32 %v4074_v19, 0.0  ;;  %v3987_v15 = vmul.f32 %v10586_v23, %v9367_v25  ;;  %v4235_v11 = vpack.c.bf16 %v4148_v4, %v4145_v55  ;;  %v10676_v27 = vld [vmem:[#allocation128_spill] sm:$0xff] }
 0x676   : > { %v4237_v59 = vpack.c.bf16 %v4150_v6, %v4147_v44  ;;  %v4247_v37 = vpack.c.bf16 %v4172_v21, %v4169_v1  ;;  %v3660_v31 = vmul.f32 %v10624_v49, %v3541_v39  ;;  %v3662_v51 = vmul.f32 %v10579_v17, %v3541_v39  ;;  %v10678_v44 = vld [vmem:[#allocation166_spill] sm:$0xff] }
 0x677   : > { %v4082_v14 = vadd.f32 %v3986_v56, %v3753_v16  ;;  %v3661_v22 = vmul.f32 %v10625_v54, %v3541_v39  ;;  %v4080_v62 = vadd.f32 %v9327_v29, %v3751_v53  ;;  %v4083_v41 = vadd.f32 %v3987_v15, %v3754_v7  ;;  %v10679_v7 = vld [vmem:[#allocation92_spill] sm:$0xff] }
 0x678   : > { %4491 = vmatmul.bf16.gmra.mxu1 %v4235_v11  ;;  %v4057_v57 = vadd.f32 %v9220_v46, %v10675_v50  ;;  %v4248_v19 = vpack.c.bf16 %v4173_v30, %v4170_v33  ;;  %v9422_v58 = vadd.f32 %v3662_v51, %v10676_v27  ;;  %v4175_v21 = vmax.f32 %v4079_v63, 0.0  ;;  %v3549_v29 = vpop.permute.xlu2 %3548  ;;  %v10680_v46 = vld [vmem:[#allocation186_spill] sm:$0xff]  ;;  %v10681_v56 = vld [vmem:[#allocation16_spill] sm:$0xff] }
 0x679   : > { %4669 = vmatmul.bf16.gmra.mxu0 %v4237_v59  ;;  %v4178_v24 = vmax.f32 %v4082_v14, 0.0  ;;  %v3756_v55 = vadd.f32 %v3660_v31, %v10677_v45  ;;  %v4176_v4 = vmax.f32 %v4080_v62, 0.0  ;;  %v4179_v16 = vmax.f32 %v4083_v41, 0.0  ;;  %v10682_v33 = vld [vmem:[#allocation116_spill] sm:$0xff]  ;;  %v10683_v59 = vld [vmem:[#allocation130_spill] sm:$0xff] }
 0x67a   : > { %v4060_v6 = vadd.f32 %v9224_v48, %v10678_v44  ;;  %v4153_v53 = vmax.f32 %v4057_v57, 0.0  ;;  %v4063_v30 = vadd.f32 %v10680_v46, %v10679_v7  ;;  %v4066_v39 = vadd.f32 %v9264_v13, %v10681_v56  ;;  %v10684_v51 = vld [vmem:[#allocation40_spill] sm:$0xff] }
 0x67b   : > { %v9427_v1 = vpack.c.bf16 %v4178_v24, %v4175_v21  ;;  %v3989_v63 = vmul.f32 %v10585_v9, %v9408_v60  ;;  %v3757_v15 = vadd.f32 %v3661_v22, %v10682_v33  ;;  %v9436_v11 = vpack.c.bf16 %v4179_v16, %v4176_v4  ;;  %v10685_v22 = vld [vmem:[#allocation30_spill] sm:$0xff] }
 0x67c   : > { %4511 = vmatmul.bf16.gmra.mxu2 %v4247_v37  ;;  %v3668_v48 = vmul.f32 %v10579_v17, %v3549_v29  ;;  %v3760_v31 = vadd.f32 %v9347_v34, %v10683_v59  ;;  %v3761_v14 = vadd.f32 %v9361_v3, %v10684_v51  ;;  %v3625_v62 = vmul.f32 %v10625_v54, %v9276_v26  ;;  %v3874_v37 = vpop.permute.xlu1 %3873  ;;  %v10686_v59 = vld [vmem:[#allocation131_spill] sm:$0xff] }
 0x67d   : > { %4600 = vmatmul.bf16.gmra.mxu3 %v4248_v19  ;;  %v4156_v13 = vmax.f32 %v4060_v6, 0.0  ;;  %v3990_v41 = vmul.f32 %v10586_v23, %v9408_v60  ;;  %v3992_v57 = vmul.f32 %v10585_v9, %v3874_v37  ;;  %v4085_v27 = vadd.f32 %v3989_v63, %v3756_v55 }
 0x67e   : > { %v9448_v50 = vadd.f32 %v3668_v48, %v10685_v22  ;;  %v3666_v34 = vmul.f32 %v10624_v49, %v3549_v29  ;;  %v3993_v3 = vmul.f32 %v10586_v23, %v3874_v37  ;;  %v3994_v24 = vmul.f32 %v10634_v28, %v3874_v37  ;;  %v10687_v37 = vld [vmem:[#allocation52_spill] sm:$0xff] }
 0x67f   : > { %v4240_v21 = vpack.c.bf16 %v4156_v13, %v4153_v53  ;;  %v4088_v26 = vadd.f32 %v3992_v57, %v9364_v36  ;;  %v4086_v19 = vadd.f32 %v3990_v41, %v3757_v15  ;;  %v4044_v45 = vadd.f32 %v9339_v52, %v9245_v40  ;;  %v9468_v52 = vpop.permute.xlu0 %3877  ;;  %v10688_v57 = vld [vmem:[#allocation134_spill] sm:$0xff] }
 0x680   : > { %v4143_v4 = vmax.f32 %v9374_v61, 0.0  ;;  %v4089_v16 = vadd.f32 %v3993_v3, %v3760_v31  ;;  %v9458_v44 = vadd.f32 %v3994_v24, %v3761_v14  ;;  %v4159_v6 = vmax.f32 %v4063_v30, 0.0  ;;  %v9460_v63 = vpop.permute.xlu2 %3881 }
 0x681   : > { %v4162_v55 = vmax.f32 %v4066_v39, 0.0  ;;  %v4181_v7 = vmax.f32 %v4085_v27, 0.0  ;;  %v4184_v46 = vmax.f32 %v4088_v26, 0.0  ;;  %v4182_v53 = vmax.f32 %v4086_v19, 0.0  ;;  %v10690_v26 = vld [vmem:[#allocation56_spill] sm:$0xff] }
 0x682   : > { %v4140_v56 = vmax.f32 %v4044_v45, 0.0  ;;  %v4185_v33 = vmax.f32 %v4089_v16, 0.0  ;;  %v4069_v36 = vadd.f32 %v9260_v2, %v9163_v35  ;;  %v4072_v40 = vadd.f32 %v9331_v8, %v9184_v12 }
 0x683   : > { %v9462_v48 = vpack.c.bf16 %v4162_v55, %v4159_v6  ;;  %v3628_v61 = vmul.f32 %v10625_v54, %v9256_v0  ;;  %v3954_v30 = vmul.f32 %v10586_v23, %v9323_v5  ;;  %v3667_v39 = vmul.f32 %v10625_v54, %v3549_v29 }
 0x684   : > { %v9475_v15 = vpack.c.bf16 %v4184_v46, %v4181_v7  ;;  %v3762_v31 = vadd.f32 %v3666_v34, %v10686_v59  ;;  %v3553_v51 = vpop.permute.xlu1 %3552  ;;  %v9478_v14 = vpack.c.bf16 %v4185_v33, %v4182_v53  ;;  %v9480_v35 = vpack.c.bf16 %v4143_v4, %v4140_v56  ;;  %v10689_v34 = vld [vmem:[#allocation42_spill] sm:$0xff]  ;;  %v10692_v4 = vld [vmem:[#allocation135_spill] sm:$0xff] }
 0x685   : > { %v4165_v12 = vmax.f32 %v4069_v36, 0.0  ;;  %v3669_v2 = vmul.f32 %v10624_v49, %v3553_v51  ;;  %v3670_v8 = vmul.f32 %v10625_v54, %v3553_v51  ;;  %v3671_v0 = vmul.f32 %v10579_v17, %v3553_v51 }
 0x686   : > { %v4168_v13 = vmax.f32 %v4072_v40, 0.0  ;;  %v3979_v5 = vmul.f32 %v10634_v28, %v9116_v43  ;;  %v3995_v29 = vmul.f32 %v10585_v9, %v9468_v52  ;;  %v3721_v41 = vadd.f32 %v3625_v62, %v10687_v37  ;;  %v10691_v43 = vld [vmem:[#allocation132_spill] sm:$0xff] }
 0x687   : > { %v3998_v22 = vmul.f32 %v10585_v9, %v9460_v63  ;;  %v3765_v27 = vadd.f32 %v3669_v2, %v10688_v57  ;;  %v9495_v3 = vadd.f32 %v3671_v0, %v10689_v34  ;;  %v3724_v19 = vadd.f32 %v3628_v61, %v10690_v26  ;;  %v9517_v0 = vpop.permute.xlu0 %3889  ;;  %v10695_v37 = vld [vmem:[#allocation144_spill] sm:$0xff] }
 0x688   : > { %4570 = vmatmul.bf16.vlgmr.msra.gmra.mxu1 %v9194_v18  ;;  %v9497_v24 = vpack.c.bf16 %v4168_v13, %v4165_v12  ;;  %v3763_v45 = vadd.f32 %v3667_v39, %v10691_v43  ;;  %v3766_v16 = vadd.f32 %v3670_v8, %v10692_v4  ;;  %v4091_v62 = vadd.f32 %v3995_v29, %v3762_v31  ;;  %v3561_v56 = vpop.permute.xlu2 %3560  ;;  %v10693_v39 = vld [vmem:[#allocation146_spill] sm:$0xff] }
 0x689   : > { %4674 = vmatmul.bf16.gmra.mxu0 %v4240_v21  ;;  %v4050_v6 = vadd.f32 %v3954_v30, %v3721_v41  ;;  %v4094_v18 = vadd.f32 %v3998_v22, %v3765_v27  ;;  %v4075_v55 = vadd.f32 %v3979_v5, %v9268_v38  ;;  %v3957_v7 = vmul.f32 %v10586_v23, %v9174_v32  ;;  %v10694_v5 = vld [vmem:[#allocation143_spill] sm:$0xff] }
 0x68a   : > { %v3996_v46 = vmul.f32 %v10586_v23, %v9468_v52  ;;  %v3999_v53 = vmul.f32 %v10586_v23, %v9460_v63  ;;  %v3677_v21 = vmul.f32 %v10579_v17, %v3561_v56  ;;  %v4187_v40 = vmax.f32 %v4091_v62, 0.0  ;;  %v10697_v62 = vld [vmem:[#allocation142_spill] sm:$0xff] }
 0x68b   : > { %v4190_v33 = vmax.f32 %v4094_v18, 0.0  ;;  %v4053_v30 = vadd.f32 %v3957_v7, %v3724_v19  ;;  %v3675_v32 = vmul.f32 %v10624_v49, %v3561_v56  ;;  %v4146_v31 = vmax.f32 %v4050_v6, 0.0  ;;  %v10698_v18 = vld [vmem:[#allocation149_spill] sm:$0xff] }
 0x68c   : > { %4516 = vmatmul.bf16.gmra.mxu2 %v9427_v1  ;;  %v3557_v36 = vpop.permute.xlu1 %3556  ;;  %v4092_v38 = vadd.f32 %v3996_v46, %v3763_v45  ;;  %v4095_v61 = vadd.f32 %v3999_v53, %v3766_v16  ;;  %v9514_v59 = vadd.f32 %v3677_v21, %v10693_v39  ;;  %v4004_v26 = vmul.f32 %v10585_v9, %v9517_v0  ;;  %v10696_v45 = vld [vmem:[#allocation141_spill] sm:$0xff] }
 0x68d   : > { %4605 = vmatmul.bf16.gmra.mxu3 %v9436_v11  ;;  %v3674_v51 = vmul.f32 %v10579_v17, %v3557_v36  ;;  %v4256_v12 = vpack.c.bf16 %v4190_v33, %v4187_v40  ;;  %v4149_v8 = vmax.f32 %v4053_v30, 0.0  ;;  %v3982_v11 = vmul.f32 %v10634_v28, %v9186_v20 }
 0x68e   : > { %v4188_v1 = vmax.f32 %v4092_v38, 0.0  ;;  %v4191_v2 = vmax.f32 %v4095_v61, 0.0  ;;  %v3672_v13 = vmul.f32 %v10624_v49, %v3557_v36  ;;  %v3771_v41 = vadd.f32 %v3675_v32, %v10695_v37 }
 0x68f   : > { %v3770_v29 = vadd.f32 %v3674_v51, %v10694_v5  ;;  %v3673_v22 = vmul.f32 %v10625_v54, %v3557_v36  ;;  %v4236_v27 = vpack.c.bf16 %v4149_v8, %v4146_v31  ;;  %v4078_v43 = vadd.f32 %v3982_v11, %v9321_v42  ;;  %v10700_v11 = vld [vmem:[#allocation151_spill] sm:$0xff] }
 0x690   : > { %v4257_v57 = vpack.c.bf16 %v4191_v2, %v4188_v1  ;;  %v3565_v34 = vpop.permute.xlu2 %3564  ;;  %v3676_v20 = vmul.f32 %v10625_v54, %v3561_v56  ;;  %v3768_v4 = vadd.f32 %v3672_v13, %v10696_v45  ;;  %v4100_v53 = vadd.f32 %v4004_v26, %v3771_v41  ;;  %v10699_v56 = vld [vmem:[#allocation145_spill] sm:$0xff]  ;;  %v10702_v45 = vld [vmem:[#allocation82_spill] sm:$0xff] }
 0x691   : > { %v3680_v19 = vmul.f32 %v10579_v17, %v3565_v34  ;;  %v3769_v6 = vadd.f32 %v3673_v22, %v10697_v62  ;;  %v4171_v36 = vmax.f32 %v4075_v55, 0.0  ;;  %v4174_v40 = vmax.f32 %v4078_v43, 0.0  ;;  %v10701_v26 = vld [vmem:[#allocation133_spill] sm:$0xff] }
 0x692   : > { %v3772_v38 = vadd.f32 %v3676_v20, %v10699_v56  ;;  %v4196_v31 = vmax.f32 %v4100_v53, 0.0  ;;  %v4005_v51 = vmul.f32 %v10586_v23, %v9517_v0 }
 0x693   : > { %v9533_v7 = vadd.f32 %v3680_v19, %v10698_v18  ;;  %v4249_v32 = vpack.c.bf16 %v4174_v40, %v4171_v36  ;;  %v10704_v40 = vld [vmem:[#allocation138_spill] sm:$0xff] }
 0x694   : > { %v3886_v16 = vpop.permute.xlu1 %3885  ;;  %v4101_v1 = vadd.f32 %v4005_v51, %v3772_v38  ;;  %v10706_v38 = vld [vmem:[#allocation150_spill] sm:$0xff] }
 0x695   : > { %v4001_v46 = vmul.f32 %v10585_v9, %v3886_v16  ;;  %v4002_v21 = vmul.f32 %v10586_v23, %v3886_v16  ;;  %v4003_v33 = vmul.f32 %v10634_v28, %v3886_v16 }
 0x696   : > { %v4197_v8 = vmax.f32 %v4101_v1, 0.0 }
 0x697   : > { %v4097_v42 = vadd.f32 %v4001_v46, %v3768_v4  ;;  %v4098_v61 = vadd.f32 %v4002_v21, %v3769_v6  ;;  %v9541_v30 = vadd.f32 %v4003_v33, %v3770_v29  ;;  %v9551_v29 = vpop.permute.xlu0 %3893  ;;  %v10703_v46 = vld [vmem:[#allocation154_spill] sm:$0xff]  ;;  %v3991_v21 = vmul.f32 %v10634_v28, %v9408_v60 }
 0x698   : > { %4575 = vmatmul.bf16.gmra.mxu1 %v9480_v35  ;;  %v9553_v37 = vpop.permute.xlu2 %3897  ;;  %v4007_v51 = vmul.f32 %v10585_v9, %v9551_v29  ;;  %v4008_v60 = vmul.f32 %v10586_v23, %v9551_v29 }
 0x699   : > { %4679 = vmatmul.bf16.gmra.mxu0 %v9462_v48  ;;  %v4193_v39 = vmax.f32 %v4097_v42, 0.0  ;;  %v4194_v2 = vmax.f32 %v4098_v61, 0.0  ;;  %v10705_v42 = vld [vmem:[#allocation148_spill] sm:$0xff] }
 0x69b   : > { %v4259_v55 = vpack.c.bf16 %v4196_v31, %v4193_v39  ;;  %v4260_v5 = vpack.c.bf16 %v4197_v8, %v4194_v2  ;;  %v4087_v31 = vadd.f32 %v3991_v21, %v9422_v58  ;;  %v4010_v2 = vmul.f32 %v10585_v9, %v9553_v37 }
 0x69c   : > { %4521 = vmatmul.bf16.gmra.mxu2 %v9475_v15  ;;  %v3569_v35 = vpop.permute.xlu1 %3568  ;;  %v3985_v15 = vmul.f32 %v10634_v28, %v9236_v47 }
 0x69d   : > { %4610 = vmatmul.bf16.gmra.mxu3 %v9478_v14  ;;  %v3683_v48 = vmul.f32 %v10579_v17, %v3569_v35  ;;  %v3988_v14 = vmul.f32 %v10634_v28, %v9367_v25  ;;  %v3678_v25 = vmul.f32 %v10624_v49, %v3565_v34  ;;  %v3681_v62 = vmul.f32 %v10624_v49, %v3569_v35 }
 0x69e   : > { %v4081_v19 = vadd.f32 %v3985_v15, %v10701_v26 }
 0x69f   : > { %v9549_v13 = vadd.f32 %v3683_v48, %v10700_v11  ;;  %v3577_v43 = vpop.permute.xlu0 %3576  ;;  %v3777_v61 = vadd.f32 %v3681_v62, %v10706_v38  ;;  %v4011_v11 = vmul.f32 %v10586_v23, %v9553_v37  ;;  %v4183_v62 = vmax.f32 %v4087_v31, 0.0 }
 0x6a0   : > { %v9566_v20 = vpop.permute.xlu2 %3901  ;;  %v4177_v47 = vmax.f32 %v4081_v19, 0.0 }
 0x6a1   : > { %v4015_v6 = vmul.f32 %v10634_v28, %v9566_v20 }
 0x6a4   : > { %v9555_v41 = vpop.permute.xlu1 %3572 }
 0x6a5   : > { %v3686_v22 = vmul.f32 %v10579_v17, %v9555_v41 }
 0x6a7   : > { %v3782_v4 = vadd.f32 %v3686_v22, %v10702_v45  ;;  %v4106_v22 = vadd.f32 %v4010_v2, %v3777_v61  ;;  %v10711_v61 = vld [vmem:[#allocation152_spill] sm:$0xff]  ;;  %v4014_v2 = vmul.f32 %v10586_v23, %v9566_v20 }
 0x6a8   : > { %4580 = vmatmul.bf16.gmra.mxu1 %v4236_v27  ;;  %v4084_v27 = vadd.f32 %v3988_v14, %v9406_v10  ;;  %v3682_v10 = vmul.f32 %v10625_v54, %v3569_v35  ;;  %v10707_v35 = vld [vmem:[#allocation21_spill] sm:$0xff]  ;;  %v9595_v15 = vpop.permute.xlu2 %3580 }
 0x6a9   : > { %4684 = vmatmul.bf16.gmra.mxu0 %v9497_v24  ;;  %v3689_v24 = vmul.f32 %v10579_v17, %v3577_v43  ;;  %v4111_v33 = vadd.f32 %v4015_v6, %v3782_v4  ;;  %v4202_v45 = vmax.f32 %v4106_v22, 0.0  ;;  %v4186_v6 = vmax.f32 %v9458_v44, 0.0 }
 0x6aa   : > { %v4180_v16 = vmax.f32 %v4084_v27, 0.0  ;;  %v3778_v1 = vadd.f32 %v3682_v10, %v10707_v35  ;;  %v3997_v27 = vmul.f32 %v10634_v28, %v9468_v52  ;;  %v3687_v10 = vmul.f32 %v10624_v49, %v3577_v43  ;;  %v10712_v35 = vld [vmem:[#allocation85_spill] sm:$0xff] }
 0x6ab   : > { %v3785_v53 = vadd.f32 %v3689_v24, %v10703_v46  ;;  %v4207_v48 = vmax.f32 %v4111_v33, 0.0  ;;  %v3688_v52 = vmul.f32 %v10625_v54, %v3577_v43  ;;  %v3684_v46 = vmul.f32 %v10624_v49, %v9555_v41  ;;  %v10708_v33 = vld [vmem:[#allocation153_spill] sm:$0xff]  ;;  %v10709_v43 = vld [vmem:[#allocation83_spill] sm:$0xff] }
 0x6ac   : > { %4526 = vmatmul.bf16.gmra.mxu2 %v4256_v12  ;;  %v3679_v12 = vmul.f32 %v10625_v54, %v3565_v34  ;;  %v9575_v18 = vpack.c.bf16 %v4180_v16, %v4177_v47  ;;  %v3774_v34 = vadd.f32 %v3678_v25, %v10704_v40  ;;  %v4107_v19 = vadd.f32 %v4011_v11, %v3778_v1 }
 0x6ad   : > { %4615 = vmatmul.bf16.gmra.mxu3 %v4257_v57  ;;  %v3906_v57 = vpop.permute.xlu1 %3905  ;;  %v4093_v25 = vadd.f32 %v3997_v27, %v9448_v50  ;;  %v3692_v21 = vmul.f32 %v10579_v17, %v9595_v15  ;;  %v3784_v40 = vadd.f32 %v3688_v52, %v10709_v43 }
 0x6ae   : > { %v4018_v36 = vmul.f32 %v10634_v28, %v3906_v57  ;;  %v3775_v56 = vadd.f32 %v3679_v12, %v10705_v42  ;;  %v4103_v14 = vadd.f32 %v4007_v51, %v3774_v34  ;;  %v4203_v16 = vmax.f32 %v4107_v19, 0.0 }
 0x6af   : > { %v4017_v50 = vmul.f32 %v10586_v23, %v3906_v57  ;;  %v4000_v42 = vmul.f32 %v10634_v28, %v9460_v63  ;;  %v3788_v1 = vadd.f32 %v3692_v21, %v10712_v35 }
 0x6b0   : > { %v4114_v39 = vadd.f32 %v4018_v36, %v3785_v53  ;;  %v4104_v26 = vadd.f32 %v4008_v60, %v3775_v56  ;;  %v4199_v24 = vmax.f32 %v4103_v14, 0.0  ;;  %v4016_v53 = vmul.f32 %v10585_v9, %v3906_v57  ;;  %v9615_v44 = vpop.permute.xlu2 %3913  ;;  %v10710_v56 = vld [vmem:[#allocation81_spill] sm:$0xff] }
 0x6b1   : > { %v3783_v36 = vadd.f32 %v3687_v10, %v10708_v33  ;;  %v3780_v38 = vadd.f32 %v3684_v46, %v10710_v56  ;;  %v4113_v31 = vadd.f32 %v4017_v50, %v3784_v40  ;;  %v4013_v60 = vmul.f32 %v10585_v9, %v9566_v20 }
 0x6b2   : > { %v4210_v8 = vmax.f32 %v4114_v39, 0.0  ;;  %v4200_v47 = vmax.f32 %v4104_v26, 0.0  ;;  %v4096_v63 = vadd.f32 %v4000_v42, %v9495_v3 }
 0x6b3   : > { %v4112_v39 = vadd.f32 %v4016_v53, %v3783_v36  ;;  %v4109_v14 = vadd.f32 %v4013_v60, %v3780_v38  ;;  %v4209_v19 = vmax.f32 %v4113_v31, 0.0 }
 0x6b4   : > { %v4267_v58 = vpack.c.bf16 %v4210_v8, %v4207_v48  ;;  %v4263_v12 = vpack.c.bf16 %v4203_v16, %v4200_v47  ;;  %v10713_v48 = vld [vmem:[#allocation13_spill] sm:$0xff]  ;;  %v4006_v47 = vmul.f32 %v10634_v28, %v9517_v0  ;;  %v4192_v46 = vmax.f32 %v4096_v63, 0.0 }
 0x6b5   : > { %v9599_v4 = vpop.permute.xlu1 %3584  ;;  %v4208_v22 = vmax.f32 %v4112_v39, 0.0  ;;  %v3690_v0 = vmul.f32 %v10624_v49, %v9595_v15  ;;  %v10714_v39 = vld [vmem:[#allocation84_spill] sm:$0xff] }
 0x6b6   : > { %v3695_v34 = vmul.f32 %v10579_v17, %v9599_v4  ;;  %v4102_v50 = vadd.f32 %v4006_v47, %v9514_v59  ;;  %v3693_v33 = vmul.f32 %v10624_v49, %v9599_v4  ;;  %v4009_v59 = vmul.f32 %v10634_v28, %v9551_v29  ;;  %v10715_v29 = vld [vmem:[#allocation155_spill] sm:$0xff] }
 0x6b7   : > { %v3694_v42 = vmul.f32 %v10625_v54, %v9599_v4  ;;  %v3786_v31 = vadd.f32 %v3690_v0, %v10714_v39 }
 0x6b8   : > { %4719 = vmatmul.bf16.vlgmr.msrb.gmra.mxu1 %v4267_v58  ;;  %v3791_v8 = vadd.f32 %v3695_v34, %v10713_v48  ;;  %v4024_v58 = vmul.f32 %v10634_v28, %v9615_v44  ;;  %v3593_v3 = vpop.permute.xlu2 %3592 }
 0x6b9   : > { %4689 = vmatmul.bf16.gmra.mxu0 %v4249_v32  ;;  %v4262_v32 = vpack.c.bf16 %v4202_v45, %v4199_v24  ;;  %v4205_v24 = vmax.f32 %v4109_v14, 0.0  ;;  %v3699_v56 = vmul.f32 %v10624_v49, %v3593_v3  ;;  %v3701_v38 = vmul.f32 %v10579_v17, %v3593_v3 }
 0x6ba   : > { %v4120_v20 = vadd.f32 %v4024_v58, %v3791_v8  ;;  %v3700_v4 = vmul.f32 %v10625_v54, %v3593_v3  ;;  %v10717_v8 = vld [vmem:[#allocation22_spill] sm:$0xff]  ;;  %v4022_v14 = vmul.f32 %v10585_v9, %v9615_v44 }
 0x6bb   : > { %v4265_v16 = vpack.c.bf16 %v4208_v22, %v4205_v24  ;;  %v4023_v22 = vmul.f32 %v10586_v23, %v9615_v44  ;;  %v10719_v24 = vld [vmem:[#allocation159_spill] sm:$0xff]  ;;  %v4195_v44 = vmax.f32 %v9541_v30, 0.0 }
 0x6bc   : > { %4531 = vmatmul.bf16.gmra.mxu2 %v4259_v55  ;;  %v9605_v55 = vpack.c.bf16 %v4186_v6, %v4183_v62  ;;  %v4216_v10 = vmax.f32 %v4120_v20, 0.0  ;;  %v10720_v20 = vld [vmem:[#allocation160_spill] sm:$0xff] }
 0x6bd   : > { %4620 = vmatmul.bf16.gmra.mxu3 %v4260_v5  ;;  %v3685_v5 = vmul.f32 %v10625_v54, %v9555_v41  ;;  %v3910_v41 = vpop.permute.xlu0 %3909  ;;  %v3589_v51 = vpop.permute.xlu1 %3588 }
 0x6be   : > { %v4021_v11 = vmul.f32 %v10634_v28, %v3910_v41  ;;  %v3698_v43 = vmul.f32 %v10579_v17, %v3589_v51  ;;  %v4019_v40 = vmul.f32 %v10585_v9, %v3910_v41  ;;  %v3697_v48 = vmul.f32 %v10625_v54, %v3589_v51 }
 0x6bf   : > { %v3781_v57 = vadd.f32 %v3685_v5, %v10711_v61 }
 0x6c0   : > { %v4117_v27 = vadd.f32 %v4021_v11, %v3788_v1  ;;  %v10716_v1 = vld [vmem:[#allocation156_spill] sm:$0xff]  ;;  %v3794_v63 = vadd.f32 %v3698_v43, %v10717_v8  ;;  %v3597_v11 = vpop.permute.xlu2 %3596 }
 0x6c1   : > { %v4110_v26 = vadd.f32 %v4014_v2, %v3781_v57  ;;  %v3789_v60 = vadd.f32 %v3693_v33, %v10716_v1  ;;  %v10723_v33 = vld [vmem:[#allocation158_spill] sm:$0xff] }
 0x6c2   : > { %v4213_v6 = vmax.f32 %v4117_v27, 0.0  ;;  %v9683_v27 = vadd.f32 %v4009_v59, %v9533_v7  ;;  %v3793_v43 = vadd.f32 %v3697_v48, %v10723_v33 }
 0x6c3   : > { %v4206_v45 = vmax.f32 %v4110_v26, 0.0  ;;  %v10718_v26 = vld [vmem:[#allocation86_spill] sm:$0xff] }
 0x6c4   : > { %v4270_v53 = vpack.c.bf16 %v4216_v10, %v4213_v6  ;;  %v4115_v10 = vadd.f32 %v4019_v40, %v3786_v31 }
 0x6c5   : > { %v4266_v62 = vpack.c.bf16 %v4209_v19, %v4206_v45  ;;  %v3790_v19 = vadd.f32 %v3694_v42, %v10718_v26  ;;  %v3795_v45 = vadd.f32 %v3699_v56, %v10719_v24  ;;  %v3704_v26 = vmul.f32 %v10579_v17, %v3597_v11 }
 0x6c6   : > { %v4211_v42 = vmax.f32 %v4115_v10, 0.0 }
 0x6c8   : > { %4724 = vmatmul.bf16.gmra.mxu1 %v4270_v53  ;;  %v10721_v53 = vld [vmem:[#allocation88_spill] sm:$0xff] }
 0x6c9   : > { %4694 = vmatmul.bf16.gmra.mxu0 %v9575_v18  ;;  %v4189_v18 = vmax.f32 %v4093_v25, 0.0  ;;  %v3922_v25 = vpop.permute.xlu0 %3921  ;;  %v3796_v0 = vadd.f32 %v3700_v4, %v10721_v53 }
 0x6ca   : > { %v4030_v57 = vmul.f32 %v10634_v28, %v3922_v25  ;;  %v4029_v48 = vmul.f32 %v10586_v23, %v3922_v25 }
 0x6cb   : > { %v9643_v21 = vpack.c.bf16 %v4192_v46, %v4189_v18  ;;  %v4118_v18 = vadd.f32 %v4022_v14, %v3789_v60  ;;  %v4012_v14 = vmul.f32 %v10634_v28, %v9553_v37 }
 0x6cc   : > { %4536 = vmatmul.bf16.gmra.mxu2 %v4262_v32  ;;  %v3918_v32 = vpop.permute.xlu1 %3917 }
 0x6cd   : > { %4625 = vmatmul.bf16.gmra.mxu3 %v4263_v12  ;;  %v3691_v12 = vmul.f32 %v10625_v54, %v9595_v15  ;;  %v4020_v15 = vmul.f32 %v10586_v23, %v3910_v41  ;;  %v4027_v61 = vmul.f32 %v10634_v28, %v3918_v32  ;;  %v3696_v41 = vmul.f32 %v10624_v49, %v3589_v51 }
 0x6ce   : > { %v3797_v51 = vadd.f32 %v3701_v38, %v10720_v20  ;;  %v4025_v47 = vmul.f32 %v10585_v9, %v3918_v32  ;;  %v4026_v59 = vmul.f32 %v10586_v23, %v3918_v32  ;;  %v4214_v56 = vmax.f32 %v4118_v18, 0.0  ;;  %v10726_v18 = vld [vmem:[#allocation162_spill] sm:$0xff] }
 0x6cf   : > { %v9638_v52 = vpop.f32.mrf.mxu2  ;;  %v3787_v35 = vadd.f32 %v3691_v12, %v10715_v29  ;;  %v4123_v3 = vadd.f32 %v4027_v61, %v3794_v63  ;;  %v10722_v12 = vld [vmem:[#allocation87_spill] sm:$0xff]  ;;  %v4119_v38 = vadd.f32 %v4023_v22, %v3790_v19  ;;  %v4198_v61 = vmax.f32 %v4102_v50, 0.0  ;;  %v3930_v19 = vpop.permute.xlu2 %3929 }
 0x6d0   : > { %v9640_v5 = vpop.f32.mrf.mxu3  ;;  %v3792_v7 = vadd.f32 %v3696_v41, %v10722_v12  ;;  %v4126_v39 = vadd.f32 %v4030_v57, %v3797_v51  ;;  %v4268_v29 = vpack.c.bf16 %v4214_v56, %v4211_v42  ;;  %v3702_v32 = vmul.f32 %v10624_v49, %v3597_v11 }
 0x6d1   : > { %v4116_v46 = vadd.f32 %v4020_v15, %v3787_v35  ;;  %v4215_v35 = vmax.f32 %v4119_v38, 0.0  ;;  %v4219_v1 = vmax.f32 %v4123_v3, 0.0  ;;  %v9699_v60 = vpack.c.bf16 %v4198_v61, %v4195_v44  ;;  %v3926_v12 = vpop.permute.xlu0 %3925 }
 0x6d2   : > { %v9651_v36 = vpop.f32.mrf.mxu1  ;;  %v4121_v40 = vadd.f32 %v4025_v47, %v3792_v7  ;;  %v4122_v50 = vadd.f32 %v4026_v59, %v3793_v43  ;;  %v4028_v41 = vmul.f32 %v10585_v9, %v3922_v25  ;;  %v3703_v22 = vmul.f32 %v10625_v54, %v3597_v11  ;;  %v10725_v25 = vld [vmem:[#allocation89_spill] sm:$0xff]  ;;  %v10728_v7 = vld [vmem:[#allocation19_spill] sm:$0xff] }
 0x6d3   : > { %v4212_v30 = vmax.f32 %v4116_v46, 0.0  ;;  %v4125_v3 = vadd.f32 %v4029_v48, %v3796_v0  ;;  %v3798_v10 = vadd.f32 %v3702_v32, %v10725_v25  ;;  %v4108_v44 = vadd.f32 %v4012_v14, %v9549_v13  ;;  %v10729_v32 = vld [vmem:[#allocation161_spill] sm:$0xff] }
 0x6d4   : > { %v9657_v34 = vpop.f32.mrf.mxu0  ;;  %v3601_v6 = vpop.permute.xlu1 %3600  ;;  %v4124_v51 = vadd.f32 %v4028_v41, %v3795_v45  ;;  %v4217_v47 = vmax.f32 %v4121_v40, 0.0  ;;  %v4036_v37 = vmul.f32 %v10634_v28, %v3930_v19  ;;  %v3800_v33 = vadd.f32 %v3704_v26, %v10728_v7  ;;  %v9757_v25 = vld [vmem:[%s9967_s12] ss:$0 sm:$0xff] }
 0x6d5   : > { %v3707_v15 = vmul.f32 %v10579_v17, %v3601_v6  ;;  %v3705_v4 = vmul.f32 %v10624_v49, %v3601_v6  ;;  %v3706_v8 = vmul.f32 %v10625_v54, %v3601_v6  ;;  %v4269_v63 = vpack.c.bf16 %v4215_v35, %v4212_v30  ;;  %v10724_v49 = vld [vmem:[#allocation164_spill] sm:$0xff]  ;;  %v10727_v54 = vld [vmem:[#allocation15_spill] sm:$0xff] }
 0x6d6   : > { %v4218_v6 = vmax.f32 %v4122_v50, 0.0  ;;  %v4220_v17 = vmax.f32 %v4124_v51, 0.0  ;;  %v4221_v11 = vmax.f32 %v4125_v3, 0.0  ;;  %v4034_v0 = vmul.f32 %v10585_v9, %v3930_v19 }
 0x6d7   : > { %v9669_v2 = vpop.f32.mrf.mxu2  ;;  %v3803_v20 = vadd.f32 %v3707_v15, %v10724_v49  ;;  %v3801_v46 = vadd.f32 %v3705_v4, %v10726_v18  ;;  %v3802_v53 = vadd.f32 %v3706_v8, %v10727_v54  ;;  %v4201_v43 = vmax.f32 %v9683_v27, 0.0 }
 0x6d8   : > { %v9675_v58 = vpop.f32.mrf.mxu3  ;;  %v4204_v59 = vmax.f32 %v4108_v44, 0.0  ;;  %v4035_v13 = vmul.f32 %v10586_v23, %v3930_v19  ;;  %v4271_v38 = vpack.c.bf16 %v4220_v17, %v4217_v47  ;;  %v4272_v61 = vpack.c.bf16 %v4221_v11, %v4218_v6 }
 0x6d9   : > { %4699 = vmatmul.bf16.gmra.mxu0 %v9605_v55  ;;  %v4132_v56 = vadd.f32 %v4036_v37, %v3803_v20  ;;  %v4130_v15 = vadd.f32 %v4034_v0, %v3801_v46  ;;  %v4033_v35 = vmul.f32 %v10634_v28, %v3926_v12  ;;  %v3799_v27 = vadd.f32 %v3703_v22, %v10729_v32 }
 0x6da   : > { %v9694_v55 = vpop.f32.mrf.mxu1  ;;  %v4264_v30 = vpack.c.bf16 %v4204_v59, %v4201_v43  ;;  %v4131_v50 = vadd.f32 %v4035_v13, %v3802_v53  ;;  %v4032_v4 = vmul.f32 %v10586_v23, %v3926_v12  ;;  %v4498_v44 = vadd.f32 %v9757_v25, %v9638_v52 }
 0x6db   : > { %v4228_v41 = vmax.f32 %v4132_v56, 0.0  ;;  %v4226_v8 = vmax.f32 %v4130_v15, 0.0  ;;  %v4500_v52 = vadd.f32 %v9757_v25, %v9669_v2 }
 0x6dc   : > { %4541 = vmatmul.bf16.gmra.mxu2 %v4265_v16  ;;  %v9697_v31 = vpop.f32.mrf.mxu0  ;;  %v4128_v19 = vadd.f32 %v4032_v4, %v3799_v27  ;;  %v4587_v37 = vadd.f32 %v9640_v5, %v4498_v44  ;;  %v4485_v5 = vadd.f32 %v9757_v25, %v9694_v55 }
 0x6dd   : > { %4630 = vmatmul.bf16.gmra.mxu3 %v4266_v62  ;;  %v4222_v62 = vmax.f32 %v4126_v39, 0.0  ;;  %v4031_v39 = vmul.f32 %v10585_v9, %v3926_v12  ;;  %v4227_v9 = vmax.f32 %v4131_v50, 0.0 }
 0x6de   : > { %v4224_v20 = vmax.f32 %v4128_v19, 0.0 }
 0x6df   : > { %v9701_v16 = vpop.f32.mrf.mxu2  ;;  %v4273_v24 = vpack.c.bf16 %v4222_v62, %v4219_v1  ;;  %v4129_v62 = vadd.f32 %v4033_v35, %v3800_v33  ;;  %v4127_v48 = vadd.f32 %v4031_v39, %v3798_v10 }
 0x6e0   : > { %v9707_v57 = vpop.f32.mrf.mxu3  ;;  %v4275_v51 = vpack.c.bf16 %v4227_v9, %v4224_v20 }
 0x6e1   : > { %4729 = vmatmul.bf16.gmra.mxu1 %v4273_v24  ;;  %v4225_v14 = vmax.f32 %v4129_v62, 0.0  ;;  %v4223_v26 = vmax.f32 %v4127_v48, 0.0 }
 0x6e3   : > { %v4276_v22 = vpack.c.bf16 %v4228_v41, %v4225_v14  ;;  %v4274_v49 = vpack.c.bf16 %v4226_v8, %v4223_v26 }
 0x6e5   : > { %v9721_v45 = vpop.f32.mrf.mxu1 }
 0x6e6   : > { %v9725_v42 = vpop.f32.mrf.mxu0 }
 0x6e7   : > { %v9728_v40 = vpop.f32.mrf.mxu2 }
 0x6e8   : > { %v9732_v1 = vpop.f32.mrf.mxu3 }
 0x6e9   : > { %4704 = vmatmul.bf16.gmra.mxu0 %v9643_v21 }
 0x6ec   : > { %4546 = vmatmul.bf16.gmra.mxu2 %v4268_v29 }
 0x6ed   : > { %v9737_v24 = vpop.f32.mrf.mxu1  ;;  %4635 = vmatmul.bf16.gmra.mxu3 %v4269_v63 }
 0x6ee   : > { %v9739_v28 = vpop.f32.mrf.mxu0 }
 0x6ef   : > { %v9741_v21 = vpop.f32.mrf.mxu2 }
 0x6f0   : > { %v9743_v23 = vpop.f32.mrf.mxu3 }
 0x6f1   : > { %4734 = vmatmul.bf16.gmra.mxu1 %v4276_v22 }
 0x6f5   : > { %v9745_v29 = vpop.f32.mrf.mxu1 }
 0x6f6   : > { %v9747_v47 = vpop.f32.mrf.mxu0 }
 0x6f7   : > { %v9749_v3 = vpop.f32.mrf.mxu2 }
 0x6f8   : > { %v9751_v63 = vpop.f32.mrf.mxu3 }
 0x6f9   : > { %4709 = vmatmul.bf16.gmra.mxu0 %v9699_v60  ;;  %v4483_v60 = vadd.f32 %v9757_v25, %v9651_v36  ;;  %v4589_v36 = vadd.f32 %v9675_v58, %v4500_v52  ;;  %v4488_v58 = vadd.f32 %v9757_v25, %v9721_v45 }
 0x6fc   : > { %4551 = vmatmul.bf16.gmra.mxu2 %v4271_v38  ;;  %v4503_v38 = vadd.f32 %v9757_v25, %v9701_v16  ;;  %v4505_v16 = vadd.f32 %v9757_v25, %v9728_v40  ;;  %v4508_v40 = vadd.f32 %v9757_v25, %v9741_v21 }
 0x6fd   : > { %4640 = vmatmul.bf16.gmra.mxu3 %v4272_v61  ;;  %v9759_v10 = vpop.f32.mrf.mxu1 }
 0x6fe   : > { %v9761_v18 = vpop.f32.mrf.mxu0  ;;  %v4592_v55 = vadd.f32 %v9707_v57, %v4503_v38  ;;  %v4490_v57 = vadd.f32 %v9757_v25, %v9737_v24  ;;  %v4594_v45 = vadd.f32 %v9732_v1, %v4505_v16  ;;  %v4493_v1 = vadd.f32 %v9757_v25, %v9745_v29 }
 0x6ff   : > { %v9763_v46 = vpop.f32.mrf.mxu2  ;;  %v4597_v8 = vadd.f32 %v9743_v23, %v4508_v40  ;;  %v4495_v20 = vadd.f32 %v9757_v25, %v9759_v10 }
 0x700   : > { %v9765_v6 = vpop.f32.mrf.mxu3 }
 0x705   : > { %v4571_v54 = vpop.f32.mrf.mxu1 }
 0x706   : > { %v4572_v53 = vadd.f32 %v4571_v54, %v4483_v60  ;;  %v4675_v17 = vpop.f32.mrf.mxu0 }
 0x707   : > { %v9775_v11 = vpop.f32.mrf.mxu2  ;;  %v4676_v12 = vadd.f32 %v4675_v17, %v4587_v37 }
 0x708   : > { %v9777_v7 = vpop.f32.mrf.mxu3  ;;  %v4661_v33 = vadd.f32 %v9657_v34, %v4572_v53 }
 0x709   : > { %4747 = vst.msk [vmem:[%s9782_s21 + $0x30] sm:$0xff] %vm4740_vm8, %v4676_v12  ;;  %4714 = vmatmul.bf16.gmra.mxu0 %v4264_v30  ;;  %v4515_v12 = vadd.f32 %v9757_v25, %v9775_v11 }
 0x70a   : > { %4741 = vst.msk [vmem:[%s9782_s21] sm:$0xff] %vm4740_vm8, %v4661_v33 }
 0x70c   : > { %4556 = vmatmul.bf16.gmra.mxu2 %v4274_v49  ;;  %v4510_v49 = vadd.f32 %v9757_v25, %v9749_v3  ;;  %v4513_v3 = vadd.f32 %v9757_v25, %v9763_v46 }
 0x70d   : > { %4645 = vmatmul.bf16.gmra.mxu3 %v4275_v51  ;;  %v4573_v34 = vpop.f32.mrf.mxu1 }
 0x70e   : > { %v4574_v2 = vadd.f32 %v4573_v34, %v4485_v5  ;;  %v4677_v0 = vpop.f32.mrf.mxu0  ;;  %v4599_v21 = vadd.f32 %v9751_v63, %v4510_v49  ;;  %v4602_v10 = vadd.f32 %v9765_v6, %v4513_v3 }
 0x70f   : > { %v9791_v43 = vpop.f32.mrf.mxu2  ;;  %v4678_v59 = vadd.f32 %v4677_v0, %v4589_v36 }
 0x710   : > { %v9793_v13 = vpop.f32.mrf.mxu3  ;;  %v4663_v56 = vadd.f32 %v9697_v31, %v4574_v2  ;;  %v4518_v6 = vadd.f32 %v9757_v25, %v9791_v43 }
 0x711   : > { %4748 = vst.msk [vmem:[%s9782_s21 + $0x38] sm:$0xff] %vm4740_vm8, %v4678_v59 }
 0x712   : > { %4742 = vst.msk [vmem:[%s9782_s21 + $0x8] sm:$0xff] %vm4740_vm8, %v4663_v56  ;;  %v4607_v36 = vadd.f32 %v9793_v13, %v4518_v6 }
 0x715   : > { %v4576_v61 = vpop.f32.mrf.mxu1 }
 0x716   : > { %v4577_v15 = vadd.f32 %v4576_v61, %v4488_v58  ;;  %v4680_v30 = vpop.f32.mrf.mxu0 }
 0x717   : > { %v4519_v39 = vpop.f32.mrf.mxu2  ;;  %v4681_v35 = vadd.f32 %v4680_v30, %v4592_v55 }
 0x718   : > { %v4608_v32 = vpop.f32.mrf.mxu3  ;;  %v4666_v31 = vadd.f32 %v9725_v42, %v4577_v15  ;;  %v4520_v59 = vadd.f32 %v9757_v25, %v4519_v39 }
 0x719   : > { %4749 = vst.msk [vmem:[%s9782_s21 + $0x40] sm:$0xff] %vm4740_vm8, %v4681_v35 }
 0x71a   : > { %4743 = vst.msk [vmem:[%s9782_s21 + $0x10] sm:$0xff] %vm4740_vm8, %v4666_v31 }
 0x71d   : > { %v4578_v27 = vpop.f32.mrf.mxu1 }
 0x71e   : > { %v4579_v50 = vadd.f32 %v4578_v27, %v4490_v57  ;;  %v4682_v4 = vpop.f32.mrf.mxu0 }
 0x71f   : > { %v4522_v62 = vpop.f32.mrf.mxu2  ;;  %v4683_v41 = vadd.f32 %v4682_v4, %v4594_v45 }
 0x720   : > { %v4611_v48 = vpop.f32.mrf.mxu3  ;;  %v4668_v42 = vadd.f32 %v9739_v28, %v4579_v50  ;;  %v4523_v55 = vadd.f32 %v9757_v25, %v4522_v62 }
 0x721   : > { %4750 = vst.msk [vmem:[%s9782_s21 + $0x48] sm:$0xff] %vm4740_vm8, %v4683_v41 }
 0x722   : > { %4744 = vst.msk [vmem:[%s9782_s21 + $0x18] sm:$0xff] %vm4740_vm8, %v4668_v42  ;;  %v4612_v13 = vadd.f32 %v4611_v48, %v4523_v55 }
 0x725   : > { %v4581_v14 = vpop.f32.mrf.mxu1 }
 0x726   : > { %v4582_v26 = vadd.f32 %v4581_v14, %v4493_v1  ;;  %v4685_v19 = vpop.f32.mrf.mxu0 }
 0x727   : > { %v4524_v9 = vpop.f32.mrf.mxu2  ;;  %v4686_v24 = vadd.f32 %v4685_v19, %v4597_v8 }
 0x728   : > { %v4613_v22 = vpop.f32.mrf.mxu3  ;;  %v4671_v28 = vadd.f32 %v9747_v47, %v4582_v26 }
 0x729   : > { %4751 = vst.msk [vmem:[%s9782_s21 + $0x50] sm:$0xff] %vm4740_vm8, %v4686_v24 }
 0x72a   : > { %4745 = vst.msk [vmem:[%s9782_s21 + $0x20] sm:$0xff] %vm4740_vm8, %v4671_v28 }
 0x72d   : > { %v4583_v23 = vpop.f32.mrf.mxu1 }
 0x72e   : > { %v4584_v51 = vadd.f32 %v4583_v23, %v4495_v20  ;;  %v4687_v29 = vpop.f32.mrf.mxu0 }
 0x72f   : > { %v4527_v44 = vpop.f32.mrf.mxu2  ;;  %v4688_v60 = vadd.f32 %v4687_v29, %v4599_v21 }
 0x730   : > { %v4616_v37 = vpop.f32.mrf.mxu3  ;;  %v4673_v47 = vadd.f32 %v9761_v18, %v4584_v51  ;;  %v4604_v18 = vadd.f32 %v9777_v7, %v4515_v12  ;;  %v4609_v7 = vadd.f32 %v4608_v32, %v4520_v59  ;;  %v4525_v32 = vadd.f32 %v9757_v25, %v4524_v9 }
 0x731   : > { %4752 = vst.msk [vmem:[%s9782_s21 + $0x58] sm:$0xff] %vm4740_vm8, %v4688_v60  ;;  %v4528_v62 = vadd.f32 %v9757_v25, %v4527_v44 }
 0x732   : > { %4746 = vst.msk [vmem:[%s9782_s21 + $0x28] sm:$0xff] %vm4740_vm8, %v4673_v47  ;;  %v4614_v31 = vadd.f32 %v4613_v22, %v4525_v32 }
 0x733   : > { %v4617_v42 = vadd.f32 %v4616_v37, %v4528_v62 }
 0x735   : > { %v4720_v61 = vpop.f32.mrf.mxu1 }
 0x736   : > { %v4690_v63 = vpop.f32.mrf.mxu0 }
 0x737   : > { %v4529_v54 = vpop.f32.mrf.mxu2  ;;  %v4691_v53 = vadd.f32 %v4690_v63, %v4602_v10 }
 0x738   : > { %v4618_v17 = vpop.f32.mrf.mxu3  ;;  %v4530_v19 = vadd.f32 %v9757_v25, %v4529_v54 }
 0x739   : > { %4753 = vst.msk [vmem:[%s9782_s21 + $0x60] sm:$0xff] %vm4740_vm8, %v4691_v53 }
 0x73a   : > { %v4619_v28 = vadd.f32 %v4618_v17, %v4530_v19 }
 0x73d   : > { %v4722_v57 = vpop.f32.mrf.mxu1 }
 0x73e   : > { %v4692_v46 = vpop.f32.mrf.mxu0 }
 0x73f   : > { %v4532_v33 = vpop.f32.mrf.mxu2  ;;  %v4693_v52 = vadd.f32 %v4692_v46, %v4604_v18 }
 0x740   : > { %v4621_v5 = vpop.f32.mrf.mxu3  ;;  %v4533_v29 = vadd.f32 %v9757_v25, %v4532_v33 }
 0x741   : > { %4754 = vst.msk [vmem:[%s9782_s21 + $0x68] sm:$0xff] %vm4740_vm8, %v4693_v52 }
 0x742   : > { %v4622_v47 = vadd.f32 %v4621_v5, %v4533_v29 }
 0x745   : > { %v4725_v9 = vpop.f32.mrf.mxu1 }
 0x746   : > { %v4695_v34 = vpop.f32.mrf.mxu0 }
 0x747   : > { %v4534_v2 = vpop.f32.mrf.mxu2  ;;  %v4696_v0 = vadd.f32 %v4695_v34, %v4607_v36 }
 0x748   : > { %v9853_v11 = vpop.f32.mrf.mxu3  ;;  %v4535_v17 = vadd.f32 %v9757_v25, %v4534_v2 }
 0x749   : > { %4755 = vst.msk [vmem:[%s9782_s21 + $0x70] sm:$0xff] %vm4740_vm8, %v4696_v0 }
 0x74a   : > { %v4624_v46 = vadd.f32 %v9853_v11, %v4535_v17 }
 0x74d   : > { %v4727_v60 = vpop.f32.mrf.mxu1 }
 0x74e   : > { %v4697_v56 = vpop.f32.mrf.mxu0 }
 0x74f   : > { %v9858_v38 = vpop.f32.mrf.mxu2  ;;  %v4698_v58 = vadd.f32 %v4697_v56, %v4609_v7 }
 0x750   : > { %v9860_v43 = vpop.f32.mrf.mxu3  ;;  %v4538_v2 = vadd.f32 %v9757_v25, %v9858_v38 }
 0x751   : > { %4756 = vst.msk [vmem:[%s9782_s21 + $0x78] sm:$0xff] %vm4740_vm8, %v4698_v58 }
 0x752   : > { %v4627_v11 = vadd.f32 %v9860_v43, %v4538_v2 }
 0x756   : > { %v4700_v15 = vpop.f32.mrf.mxu0 }
 0x757   : > { %v9865_v30 = vpop.f32.mrf.mxu2  ;;  %v4701_v39 = vadd.f32 %v4700_v15, %v4612_v13 }
 0x758   : > { %v9867_v35 = vpop.f32.mrf.mxu3  ;;  %v4540_v38 = vadd.f32 %v9757_v25, %v9865_v30 }
 0x759   : > { %4757 = vst.msk [vmem:[%s9782_s21 + $0x80] sm:$0xff] %vm4740_vm8, %v4701_v39 }
 0x75a   : > { %v4629_v43 = vadd.f32 %v9867_v35, %v4540_v38 }
 0x75e   : > { %v4702_v16 = vpop.f32.mrf.mxu0  ;;  %v4730_v33 = vpop.f32.mrf.mxu1 }
 0x75f   : > { %v4542_v45 = vpop.f32.mrf.mxu2  ;;  %v4703_v27 = vadd.f32 %v4702_v16, %v4614_v31 }
 0x760   : > { %v4543_v50 = vadd.f32 %v9757_v25, %v4542_v45  ;;  %v4631_v4 = vpop.f32.mrf.mxu3 }
 0x761   : > { %4758 = vst.msk [vmem:[%s9782_s21 + $0x88] sm:$0xff] %vm4740_vm8, %v4703_v27 }
 0x762   : > { %v4632_v41 = vadd.f32 %v4631_v4, %v4543_v50 }
 0x764   : > { %v4721_v48 = vadd.f32 %v4720_v61, %v4632_v41 }
 0x766   : > { %4765 = vst.msk [vmem:[%s9782_s21 + $0xc0] sm:$0xff] %vm4740_vm8, %v4721_v48  ;;  %v4705_v40 = vpop.f32.mrf.mxu0  ;;  %v4732_v56 = vpop.f32.mrf.mxu1 }
 0x767   : > { %v4544_v1 = vpop.f32.mrf.mxu2  ;;  %v4706_v8 = vadd.f32 %v4705_v40, %v4617_v42 }
 0x768   : > { %v4545_v14 = vadd.f32 %v9757_v25, %v4544_v1  ;;  %v4633_v26 = vpop.f32.mrf.mxu3 }
 0x769   : > { %4759 = vst.msk [vmem:[%s9782_s21 + $0x90] sm:$0xff] %vm4740_vm8, %v4706_v8 }
 0x76a   : > { %v4634_v24 = vadd.f32 %v4633_v26, %v4545_v14 }
 0x76c   : > { %v4723_v22 = vadd.f32 %v4722_v57, %v4634_v24 }
 0x76e   : > { %4766 = vst.msk [vmem:[%s9782_s21 + $0xc8] sm:$0xff] %vm4740_vm8, %v4723_v22  ;;  %v4707_v49 = vpop.f32.mrf.mxu0  ;;  %v4735_v27 = vpop.f32.mrf.mxu1 }
 0x76f   : > { %v4547_v20 = vpop.f32.mrf.mxu2  ;;  %v4708_v21 = vadd.f32 %v4707_v49, %v4619_v28 }
 0x770   : > { %v4548_v23 = vadd.f32 %v9757_v25, %v4547_v20  ;;  %v4636_v51 = vpop.f32.mrf.mxu3 }
 0x771   : > { %4760 = vst.msk [vmem:[%s9782_s21 + $0x98] sm:$0xff] %vm4740_vm8, %v4708_v21 }
 0x772   : > { %v4637_v44 = vadd.f32 %v4636_v51, %v4548_v23 }
 0x774   : > { %v4726_v37 = vadd.f32 %v4725_v9, %v4637_v44 }
 0x776   : > { %4767 = vst.msk [vmem:[%s9782_s21 + $0xd0] sm:$0xff] %vm4740_vm8, %v4726_v37  ;;  %v4710_v3 = vpop.f32.mrf.mxu0  ;;  %v4737_v48 = vpop.f32.mrf.mxu1 }
 0x777   : > { %v4549_v10 = vpop.f32.mrf.mxu2  ;;  %v4711_v63 = vadd.f32 %v4710_v3, %v4622_v47 }
 0x778   : > { %v4550_v54 = vadd.f32 %v9757_v25, %v4549_v10  ;;  %v4638_v53 = vpop.f32.mrf.mxu3 }
 0x779   : > { %4761 = vst.msk [vmem:[%s9782_s21 + $0xa0] sm:$0xff] %vm4740_vm8, %v4711_v63 }
 0x77a   : > { %v4639_v12 = vadd.f32 %v4638_v53, %v4550_v54 }
 0x77c   : > { %v4728_v18 = vadd.f32 %v4727_v60, %v4639_v12 }
 0x77e   : > { %4768 = vst.msk [vmem:[%s9782_s21 + $0xd8] sm:$0xff] %vm4740_vm8, %v4728_v18  ;;  %v4712_v52 = vpop.f32.mrf.mxu0 }
 0x77f   : > { %v4552_v5 = vpop.f32.mrf.mxu2  ;;  %v4713_v6 = vadd.f32 %v4712_v52, %v4624_v46 }
 0x780   : > { %v4553_v36 = vadd.f32 %v9757_v25, %v4552_v5  ;;  %v4641_v34 = vpop.f32.mrf.mxu3 }
 0x781   : > { %4762 = vst.msk [vmem:[%s9782_s21 + $0xa8] sm:$0xff] %vm4740_vm8, %v4713_v6 }
 0x782   : > { %v4642_v0 = vadd.f32 %v4641_v34, %v4553_v36 }
 0x784   : > { %v4731_v59 = vadd.f32 %v4730_v33, %v4642_v0 }
 0x786   : > { %4769 = vst.msk [vmem:[%s9782_s21 + $0xe0] sm:$0xff] %vm4740_vm8, %v4731_v59  ;;  %v4715_v7 = vpop.f32.mrf.mxu0 }
 0x787   : > { %v4554_v58 = vpop.f32.mrf.mxu2  ;;  %v4716_v55 = vadd.f32 %v4715_v7, %v4627_v11 }
 0x788   : > { %v4555_v13 = vadd.f32 %v9757_v25, %v4554_v58  ;;  %v4643_v61 = vpop.f32.mrf.mxu3 }
 0x789   : > { %4763 = vst.msk [vmem:[%s9782_s21 + $0xb0] sm:$0xff] %vm4740_vm8, %v4716_v55 }
 0x78a   : > { %v4644_v15 = vadd.f32 %v4643_v61, %v4555_v13 }
 0x78c   : > { %v4733_v39 = vadd.f32 %v4732_v56, %v4644_v15 }
 0x78e   : > { %4770 = vst.msk [vmem:[%s9782_s21 + $0xe8] sm:$0xff] %vm4740_vm8, %v4733_v39  ;;  %v4717_v32 = vpop.f32.mrf.mxu0 }
 0x78f   : > { %v4557_v31 = vpop.f32.mrf.mxu2  ;;  %v4718_v16 = vadd.f32 %v4717_v32, %v4629_v43 }
 0x790   : > { %v4558_v57 = vadd.f32 %v9757_v25, %v4557_v31  ;;  %v4646_v45 = vpop.f32.mrf.mxu3 }
 0x791   : > { %4764 = vst.msk [vmem:[%s9782_s21 + $0xb8] sm:$0xff] %vm4740_vm8, %v4718_v16 }
 0x792   : > { %v4647_v30 = vadd.f32 %v4646_v45, %v4558_v57 }
 0x794   : > { %v4736_v50 = vadd.f32 %v4735_v27, %v4647_v30 }
 0x796   : > { %4771 = vst.msk [vmem:[%s9782_s21 + $0xf0] sm:$0xff] %vm4740_vm8, %v4736_v50 }
 0x797   : > { %v4559_v35 = vpop.f32.mrf.mxu2 }
 0x798   : > { %v4560_v4 = vadd.f32 %v9757_v25, %v4559_v35  ;;  %v4648_v62 = vpop.f32.mrf.mxu3 }
 0x79a   : > { %v4649_v41 = vadd.f32 %v4648_v62, %v4560_v4 }
 0x79c   : > { %v4738_v42 = vadd.f32 %v4737_v48, %v4649_v41 }
 0x79e   : > { %4772 = vst.msk [vmem:[%s9782_s21 + $0xf8] sm:$0xff] %vm4740_vm8, %v4738_v42 }
 0x79f   : > { %6359 = shalt.err (!%p6356_p8)
}
 0x7a0   : > { %s6420_s18 = smov 128   ;;  %s6421_s21 = smov 8  }
 0x7a1   : > { %6141 = dma.vmem_to_hbm [thread:$0]  (%p6535_p5), %s4790_s24, 4096, %s4792_s5, %s4774_s17, %s6420_s18, %s6420_s18, %s6421_s21  }
 0x7a2 PF: > { %s10730_s19 = sld [smem:[#allocation8_spill]]  ;;  %p6153_p9 = scmp.ge.s32.totalorder %s6398_s16, 2 }
 0x7a4   : > { %p6148_p10 = pnand %p6153_p9, %p6539_p6 }
 0x7a6   : > { %p6149_p11 = pneg %p6148_p10 }
 0x7a8   : > { %s4809_s26 = sand.u32 1, %s10730_s19  }
 0x7a9   : > { %s4810_s27 = scalar_lea.sflag [#allocation4], %s4809_s26 }
 0x7aa   : > { %6381 = dma.done.wait (%p6149_p11), %s4810_s27, 4096  }
 0x7ab   : > { %6383 = vsyncadd (%p6149_p11), %s4810_s27, 4294963200  ;;  %s10732_s16 = sld [smem:[#allocation10_spill]]  ;;  %s10735_s29 = smov %s6390_s30 }
 0x7ac   : > { %s10733_s28 = sld [smem:[#allocation9_spill]] }
 0x7ad   : > { %s10734_s15 = sld [smem:[#allocation11_spill]] }
 0x7b1   : > { %p26_p12 = scmp.ge.s32.totalorder %s10732_s16, 4  }
 0x7b2   : > { %s10736_s30 = smov %s10733_s28 }
 0x7b3   :  { %28 = sbr.rel (!%p26_p12) target bundleno = 6 (0x6), region = 144 }
 0x7b8   :  { %4822 = vsyncpa [#allocation3], 1 }
 0x7b9   :  { %4824 = vsyncpa [#allocation3 + $0x1], 1 }
 0x7ba   :  { %4825 = vsyncpa [#allocation4], 1 }
 0x7bb   :  { %4827 = vsyncpa [#allocation4 + $0x1], 1 }

</bundles_post_ra>
